<compile_context>
chip_gen: v6e
topology: v6e:2x2x1
jax: 0.10.0
libtpu: 0.0.40
codegen_flags: <defaults>
</compile_context>

<pallas_src>
import math
from functools import partial

import jax
import jax.numpy as jnp
from jax.experimental import pallas as pl
from jax.experimental.pallas import tpu as pltpu

# Fixed (non-trainable) TS-fuzzy sub-system constants from TSFuzzyLayer.__init__
_SUB_MAT = (
    (-0.2, -0.1, -0.05, -0.05, -0.05, -0.01, -0.055, -0.01, 0.0),
    (0.0, -0.002, -0.001, -0.001, -0.001, -0.0002, 0.0008, -0.0002, 0.0),
)
_SUB_BIAS = (1.0, 0.7, 0.275, 0.4, 0.25, 0.07, 0.2225, 0.07, 0.0)
# gaussmf rules: (mean, sigma) for x1_{s,m,l} then x2_{s,m,l}
_GAUSS = ((0.0, 0.75), (2.0, 0.75), (4.0, 0.75), (0.0, 30.0), (90.0, 30.0), (180.0, 30.0))


def _acos(x):
    # TODO(synk): torch.acos has no direct Mosaic lowering; Abramowitz&Stegun 4.4.46
    # polynomial (|err| <= 2e-8 rad) is numerically equivalent in fp32.
    xa = jnp.abs(x)
    p = jnp.float32(-0.0012624911)
    for c in (0.0066700901, -0.0170881256, 0.0308918810, -0.0501743046,
              0.0889789874, -0.2145988016, 1.5707963050):
        p = p * xa + jnp.float32(c)
    r = p * jnp.sqrt(jnp.maximum(1.0 - xa, 0.0))
    return jnp.where(x < 0.0, jnp.float32(math.pi) - r, r)


def _gauss(x, mean, sigma):
    return jnp.exp(-((x - mean) ** 2) / (2.0 * sigma * sigma))


def _fam_gnn_kernel(dims, feat_ref, edge_ref, node_ref, emask_ref, nmask_ref,
                    w1_ref, w2_ref, out_ref):
    (N, T, F, E, H, O, R, U, RF_pad, RH_pad) = dims
    NT, ET = N * T, E * T
    f32, bf16 = jnp.float32, jnp.bfloat16

    feat = feat_ref[...]                                     # (NT, F)  f32

    # ---------- unpack packed constant slabs (static slices) ----------
    eS = edge_ref[...]                                       # (ET, 2NT+1+H+O) f32
    gsrc = eS[:, 0:NT]                                       # src-gather one-hot
    gdst = eS[:, NT:2 * NT]                                  # dst-gather one-hot
    prio = eS[:, 2 * NT:2 * NT + 1]                          # priority-edge flag
    mb1e = eS[:, 2 * NT + 1:2 * NT + 1 + H]                  # per-edge m_bias (layer 1)
    mb2e = eS[:, 2 * NT + 1 + H:2 * NT + 1 + H + O]          # per-edge m_bias (layer 2)

    nS = node_ref[...]                                       # (NT, ET+H+O) f32
    scat = nS[:, 0:ET]                                       # scatter-sum by dst
    hb1n = nS[:, ET:ET + H]                                  # per-node h_bias (layer 1)
    hb2n = nS[:, ET + H:ET + H + O]                          # per-node h_bias (layer 2)

    eM = emask_ref[...]                                      # (ET, R*(H+F)) bf16
    relmask2 = eM[:, 0:R * H]
    relmask1 = eM[:, R * H:R * H + R * F]

    nM = nmask_ref[...]                                      # (NT, U*(H+F)) bf16
    ntymask2 = nM[:, 0:U * H]
    ntymask1 = nM[:, U * H:U * H + U * F]

    wS1 = w1_ref[...]                                        # (RF_pad+U*F, H) bf16
    w1s = wS1[0:R * F, :]
    lw1s = wS1[RF_pad:RF_pad + U * F, :]
    wS2 = w2_ref[...]                                        # (RH_pad+U*H, O) bf16
    w2s = wS2[0:R * H, :]
    lw2s = wS2[RH_pad:RH_pad + U * H, :]

    # ---------------- TSFuzzyLayer: per-edge attention (f32 path) ----------------
    src_h = jnp.dot(gsrc, feat, preferred_element_type=f32)  # (ET, F) — reused by layer 1
    dst_h = jnp.dot(gdst, feat, preferred_element_type=f32)  # (ET, F)
    vec = dst_h - src_h
    alpha = vec[:, 0:2]                                      # static lane slices (no matmul)
    beta = vec[:, 2:4] + vec[:, 4:6]

    x1sq = jnp.sum(alpha * alpha, axis=1, keepdims=True)
    x1 = jnp.sqrt(x1sq)                                      # (ET, 1)
    w12 = jnp.sum((-alpha) * beta, axis=1, keepdims=True)
    w22 = jnp.sum(beta * beta, axis=1, keepdims=True)
    cos_v = w12 * jax.lax.rsqrt(jnp.maximum(x1sq * w22, f32(1e-12)))   # EUP rsqrt
    cos_v = jnp.clip(cos_v, f32(-1.0 + 1e-8), f32(1.0 - 1e-8))
    x2 = _acos(cos_v) * f32(180.0 / math.pi)                 # degrees, (ET, 1)

    lv = ([_gauss(x1, m, s) for (m, s) in _GAUSS[:3]] +
          [_gauss(x2, m, s) for (m, s) in _GAUSS[3:]])
    num = jnp.zeros_like(x1)
    den = jnp.zeros_like(x1)
    k = 0
    for i in range(3):
        for j in range(3):
            t_val = jnp.minimum(lv[i], lv[3 + j])            # truth value of rule k
            c_val = (x1 * f32(_SUB_MAT[0][k]) + x2 * f32(_SUB_MAT[1][k])
                     + f32(_SUB_BIAS[k]))                    # consequence of rule k
            num = num + t_val * c_val
            den = den + t_val
            k += 1
    att = num * pl.reciprocal(den, approx=True)              # EUP reciprocal, not VPU divide
    att = jnp.where(prio > 0.5, f32(1.0), att)               # priority edges -> 1.0

    # ---------------- FAM_GNNLayer (x2): R/U loops fused into single matmuls ----------------
    def gnn_layer(h_nodes, src_edges, relmask, ntymask, ws, lws, mbe, hbn):
        # per-edge message: select W[rel[e]] with a wide 0/1 mask, single bf16 MXU matmul
        src_wide = jnp.concatenate([src_edges.astype(bf16)] * R, axis=1)       # (ET, R*Din)
        raw = jnp.dot(relmask * src_wide, ws, preferred_element_type=f32) + mbe
        msg = att * raw                                                        # (ET, Dout)
        agg = jnp.dot(scat, msg, preferred_element_type=f32)                   # sum over in-edges
        # self-loop: select loop_weight[ntype[n]] the same way
        h_wide = jnp.concatenate([h_nodes.astype(bf16)] * U, axis=1)           # (NT, U*Din)
        loop = jnp.dot(ntymask * h_wide, lws, preferred_element_type=f32) + hbn
        return jnp.maximum(agg + loop, 0.0)                                    # relu

    h1 = gnn_layer(feat, src_h, relmask1, ntymask1, w1s, lw1s, mb1e, hb1n)     # (NT, H)
    src_h1 = jnp.dot(gsrc, h1, preferred_element_type=f32)                     # (ET, H)
    h2 = gnn_layer(h1, src_h1, relmask2, ntymask2, w2s, lw2s, mb2e, hb2n)      # (NT, O)

    # -------- final stack: (x[0], x[1], mean/max/min over x[2:]) without 20-way concat --------
    h3 = h2.reshape(T, N, O)
    nidx = jax.lax.broadcasted_iota(jnp.int32, (T, N, O), 1)
    rest = nidx >= 2
    row0 = jnp.sum(jnp.where(nidx == 0, h3, 0.0), axis=1)                      # (T, O)
    row1 = jnp.sum(jnp.where(nidx == 1, h3, 0.0), axis=1)
    mean_r = jnp.sum(jnp.where(rest, h3, 0.0), axis=1) * f32(1.0 / (N - 2))
    max_r = jnp.max(jnp.where(rest, h3, -jnp.inf), axis=1)
    min_r = jnp.min(jnp.where(rest, h3, jnp.inf), axis=1)
    out_ref[...] = jnp.concatenate([row0, row1, mean_r, max_r, min_r], axis=0)  # (5T, O)


def fam_gnn_forward(feat, src, dst, etypes, ntypes, params):
    """feat: (N, T, F) fp32; src/dst/etypes: (E,) int32; ntypes: (N,) int32."""
    N, T, F = feat.shape
    E = src.shape[0]
    R, _, H = params["w1"].shape
    U = params["lw1"].shape[0]
    O = params["w2"].shape[2]
    NT, ET = N * T, E * T
    f32, bf16 = jnp.float32, jnp.bfloat16

    # ------- graph / parameter "glue" precompute (plain JAX, static per graph) -------
    t_e = jnp.repeat(jnp.arange(T), E)
    e_i = jnp.tile(jnp.arange(E), T)
    n_i = jnp.tile(jnp.arange(N), T)
    etype_e = etypes[e_i]                                       # (ET,)
    ntype_n = ntypes[n_i]                                       # (NT,)

    gsrc = jax.nn.one_hot(t_e * N + src[e_i], NT, dtype=f32)    # (ET, NT)
    gdst = jax.nn.one_hot(t_e * N + dst[e_i], NT, dtype=f32)    # (ET, NT)
    scat = gdst.T                                               # (NT, ET)
    prio = (((etype_e == 0) | (etype_e == 4)).astype(f32))[:, None]
    mb1e = params["mb1"][etype_e].astype(f32)                   # (ET, H)
    mb2e = params["mb2"][etype_e].astype(f32)                   # (ET, O)
    hb1n = params["hb1"][ntype_n].astype(f32)                   # (NT, H)
    hb2n = params["hb2"][ntype_n].astype(f32)                   # (NT, O)

    edge_slab = jnp.concatenate([gsrc, gdst, prio, mb1e, mb2e], axis=1)   # (ET, 2NT+1+H+O)
    node_slab = jnp.concatenate([scat, hb1n, hb2n], axis=1)               # (NT, ET+H+O)

    # wide 0/1 relation / ntype selection masks (exact in bf16); big block first (lane-aligned)
    rel_oh = jax.nn.one_hot(etype_e, R, dtype=bf16)             # (ET, R)
    nty_oh = jax.nn.one_hot(ntype_n, U, dtype=bf16)             # (NT, U)
    emask_slab = jnp.concatenate([jnp.repeat(rel_oh, H, axis=1),
                                  jnp.repeat(rel_oh, F, axis=1)], axis=1)  # (ET, R*(H+F))
    nmask_slab = jnp.concatenate([jnp.repeat(nty_oh, H, axis=1),
                                  jnp.repeat(nty_oh, F, axis=1)], axis=1)  # (NT, U*(H+F))

    # stacked relation / loop weights (bf16), blocks aligned to 16 rows (bf16 sublane pack)
    RF_pad = ((R * F + 15) // 16) * 16
    RH_pad = ((R * H + 15) // 16) * 16

    def pad_rows(x, rows):
        if x.shape[0] == rows:
            return x
        return jnp.concatenate([x, jnp.zeros((rows - x.shape[0], x.shape[1]), x.dtype)], 0)

    w1_slab = jnp.concatenate(
        [pad_rows(params["w1"].reshape(R * F, H).astype(bf16), RF_pad),
         params["lw1"].reshape(U * F, H).astype(bf16)], axis=0)            # (RF_pad+U*F, H)
    w2_slab = jnp.concatenate(
        [pad_rows(params["w2"].reshape(R * H, O).astype(bf16), RH_pad),
         params["lw2"].reshape(U * H, O).astype(bf16)], axis=0)            # (RH_pad+U*H, O)

    feat_rows = jnp.transpose(feat, (1, 0, 2)).reshape(NT, F).astype(f32)

    dims = (N, T, F, E, H, O, R, U, RF_pad, RH_pad)
    vmem = pl.BlockSpec(memory_space=pltpu.MemorySpace.VMEM)
    out = pl.pallas_call(
        partial(_fam_gnn_kernel, dims),
        out_shape=jax.ShapeDtypeStruct((5 * T, O), f32),
        in_specs=[vmem] * 7,
        out_specs=vmem,
    )(feat_rows, edge_slab, node_slab, emask_slab, nmask_slab, w1_slab, w2_slab)
    return out.reshape(5, T, O)


def init_params(key, input_dim, h_dim, out_dim, num_rels, num_ntypes):
    gain = 5.0 / 3.0  # nn.init.calculate_gain('tanh')
    k1, k2, k3, k4 = jax.random.split(key, 4)

    def xavier(k, shape):
        fan_in = shape[1] * shape[2]
        fan_out = shape[0] * shape[2]
        bound = gain * math.sqrt(6.0 / (fan_in + fan_out))
        return jax.random.uniform(k, shape, jnp.float32, -bound, bound)

    return dict(
        w1=xavier(k1, (num_rels, input_dim, h_dim)),
        mb1=jnp.zeros((num_rels, h_dim), jnp.float32),
        lw1=xavier(k2, (num_ntypes, input_dim, h_dim)),
        hb1=jnp.zeros((num_ntypes, h_dim), jnp.float32),
        w2=xavier(k3, (num_rels, h_dim, out_dim)),
        mb2=jnp.zeros((num_rels, out_dim), jnp.float32),
        lw2=xavier(k4, (num_ntypes, h_dim, out_dim)),
        hb2=jnp.zeros((num_ntypes, out_dim), jnp.float32),
    )


def fam_gnn_reference(feat, src, dst, etypes, ntypes, params):
    """Pure-JAX mirror of the PyTorch forward pass, for validation."""
    N, T, F = feat.shape
    E = src.shape[0]
    sub_mat = jnp.array(_SUB_MAT, jnp.float32)
    sub_bias = jnp.array(_SUB_BIAS, jnp.float32)

    vec = feat[dst] - feat[src]
    alpha = vec[..., 0:2]
    beta = vec[..., 2:4] + vec[..., 4:6]
    x1 = jnp.sqrt(jnp.sum(alpha * alpha, axis=2))
    v1 = -alpha
    w12 = jnp.sum(v1 * beta, axis=2)
    w11 = jnp.sum(v1 * v1, axis=2)
    w22 = jnp.sum(beta * beta, axis=2)
    cos = jnp.clip(w12 / jnp.sqrt(jnp.maximum(w11 * w22, 1e-12)), -1 + 1e-8, 1 - 1e-8)
    x2 = jnp.degrees(jnp.arccos(cos))

    m = [_gauss(x1, a, b) for (a, b) in _GAUSS[:3]] + [_gauss(x2, a, b) for (a, b) in _GAUSS[3:]]
    truth = jnp.stack([jnp.minimum(m[i], m[3 + j]) for i in range(3) for j in range(3)], axis=2)
    premises = jnp.stack([x1, x2], axis=2).reshape(-1, 2)
    conseq = (premises @ sub_mat + sub_bias).reshape(E, T, 9)
    att = jnp.sum(truth * conseq, axis=2) / jnp.sum(truth, axis=2)
    prio = (etypes == 0) | (etypes == 4)
    att = jnp.where(prio[:, None], 1.0, att)[:, :, None]

    def layer(h, W, mb, LW, hb):
        out = W.shape[2]
        raw = jnp.einsum('etd,edo->eto', h[src], W[etypes]) + mb[etypes][:, None, :]
        msg = att * raw
        agg = jnp.zeros((N, T, out), jnp.float32).at[dst].add(msg)
        loop = jnp.einsum('ntd,ndo->nto', h, LW[ntypes]) + hb[ntypes][:, None, :]
        return agg + loop

    x = jax.nn.relu(layer(feat, params["w1"], params["mb1"], params["lw1"], params["hb1"]))
    x = jax.nn.relu(layer(x, params["w2"], params["mb2"], params["lw2"], params["hb2"]))
    return jnp.stack([x[0], x[1], jnp.mean(x[2:], axis=0),
                      jnp.max(x[2:], axis=0), jnp.min(x[2:], axis=0)], axis=0)


if __name__ == "__main__":
    N, T = 8, 4                      # nodes, time steps
    input_dim, h_dim, out_dim = 6, 32, 8
    num_rels, num_ntypes = 5, 3

    key = jax.random.PRNGKey(0)
    kf, kp = jax.random.split(key)
    feat = jax.random.normal(kf, (N, T, input_dim), jnp.float32)

    # small fixed graph (E = 12 directed edges)
    src = jnp.array([0, 1, 2, 3, 4, 5, 6, 7, 2, 3, 4, 5], jnp.int32)
    dst = jnp.array([1, 2, 3, 4, 5, 6, 7, 0, 0, 1, 2, 6], jnp.int32)
    etypes = jnp.array([0, 1, 2, 3, 4, 0, 1, 2, 3, 4, 1, 2], jnp.int32)
    ntypes = jnp.array([0, 1, 2, 0, 1, 2, 0, 1], jnp.int32)

    params = init_params(kp, input_dim, h_dim, out_dim, num_rels, num_ntypes)

    out = jax.block_until_ready(fam_gnn_forward(feat, src, dst, etypes, ntypes, params))
    ref = jax.block_until_ready(fam_gnn_reference(feat, src, dst, etypes, ntypes, params))

    assert out.shape == (5, T, out_dim)
    assert bool(jnp.all(jnp.isfinite(out)))
    assert bool(jnp.allclose(out, ref, rtol=2e-2, atol=2e-2))
    print("KERNEL_OK")
</pallas_src>

<mosaic_0001>
module attributes {stable_mosaic.version = 11 : i64} {
  func.func @_fam_gnn_kernel(%arg0: memref<32x6xf32, #tpu.memory_space<vmem>>, %arg1: memref<48x105xf32, #tpu.memory_space<vmem>>, %arg2: memref<32x88xf32, #tpu.memory_space<vmem>>, %arg3: memref<48x190xbf16, #tpu.memory_space<vmem>>, %arg4: memref<32x114xbf16, #tpu.memory_space<vmem>>, %arg5: memref<50x32xbf16, #tpu.memory_space<vmem>>, %arg6: memref<256x8xbf16, #tpu.memory_space<vmem>>, %arg7: memref<20x8xf32, #tpu.memory_space<vmem>>) attributes {dimension_semantics = [], scalar_prefetch = 0 : i64, scratch_operands = 0 : i64, tpu.core_type = #tpu.core_type<tc>} {
    %c0 = arith.constant 0 : index
    %c0_0 = arith.constant 0 : index
    %0 = vector.load %arg0[%c0, %c0_0] : memref<32x6xf32, #tpu.memory_space<vmem>>, vector<32x6xf32>
    %c0_1 = arith.constant 0 : index
    %c0_2 = arith.constant 0 : index
    %1 = vector.load %arg1[%c0_1, %c0_2] : memref<48x105xf32, #tpu.memory_space<vmem>>, vector<48x105xf32>
    %2 = vector.extract_strided_slice %1 {offsets = [0, 0], sizes = [48, 32], strides = [1, 1]} : vector<48x105xf32> to vector<48x32xf32>
    %3 = vector.extract_strided_slice %1 {offsets = [0, 32], sizes = [48, 32], strides = [1, 1]} : vector<48x105xf32> to vector<48x32xf32>
    %4 = vector.extract_strided_slice %1 {offsets = [0, 64], sizes = [48, 1], strides = [1, 1]} : vector<48x105xf32> to vector<48x1xf32>
    %5 = vector.extract_strided_slice %1 {offsets = [0, 65], sizes = [48, 32], strides = [1, 1]} : vector<48x105xf32> to vector<48x32xf32>
    %6 = vector.extract_strided_slice %1 {offsets = [0, 97], sizes = [48, 8], strides = [1, 1]} : vector<48x105xf32> to vector<48x8xf32>
    %c0_3 = arith.constant 0 : index
    %c0_4 = arith.constant 0 : index
    %7 = vector.load %arg2[%c0_3, %c0_4] : memref<32x88xf32, #tpu.memory_space<vmem>>, vector<32x88xf32>
    %8 = vector.extract_strided_slice %7 {offsets = [0, 0], sizes = [32, 48], strides = [1, 1]} : vector<32x88xf32> to vector<32x48xf32>
    %9 = vector.extract_strided_slice %7 {offsets = [0, 48], sizes = [32, 32], strides = [1, 1]} : vector<32x88xf32> to vector<32x32xf32>
    %10 = vector.extract_strided_slice %7 {offsets = [0, 80], sizes = [32, 8], strides = [1, 1]} : vector<32x88xf32> to vector<32x8xf32>
    %c0_5 = arith.constant 0 : index
    %c0_6 = arith.constant 0 : index
    %11 = vector.load %arg3[%c0_5, %c0_6] : memref<48x190xbf16, #tpu.memory_space<vmem>>, vector<48x190xbf16>
    %12 = vector.extract_strided_slice %11 {offsets = [0, 0], sizes = [48, 160], strides = [1, 1]} : vector<48x190xbf16> to vector<48x160xbf16>
    %13 = vector.extract_strided_slice %11 {offsets = [0, 160], sizes = [48, 30], strides = [1, 1]} : vector<48x190xbf16> to vector<48x30xbf16>
    %c0_7 = arith.constant 0 : index
    %c0_8 = arith.constant 0 : index
    %14 = vector.load %arg4[%c0_7, %c0_8] : memref<32x114xbf16, #tpu.memory_space<vmem>>, vector<32x114xbf16>
    %15 = vector.extract_strided_slice %14 {offsets = [0, 0], sizes = [32, 96], strides = [1, 1]} : vector<32x114xbf16> to vector<32x96xbf16>
    %16 = vector.extract_strided_slice %14 {offsets = [0, 96], sizes = [32, 18], strides = [1, 1]} : vector<32x114xbf16> to vector<32x18xbf16>
    %c0_9 = arith.constant 0 : index
    %c0_10 = arith.constant 0 : index
    %17 = vector.load %arg5[%c0_9, %c0_10] : memref<50x32xbf16, #tpu.memory_space<vmem>>, vector<50x32xbf16>
    %18 = vector.extract_strided_slice %17 {offsets = [0, 0], sizes = [30, 32], strides = [1, 1]} : vector<50x32xbf16> to vector<30x32xbf16>
    %19 = vector.extract_strided_slice %17 {offsets = [32, 0], sizes = [18, 32], strides = [1, 1]} : vector<50x32xbf16> to vector<18x32xbf16>
    %c0_11 = arith.constant 0 : index
    %c0_12 = arith.constant 0 : index
    %20 = vector.load %arg6[%c0_11, %c0_12] : memref<256x8xbf16, #tpu.memory_space<vmem>>, vector<256x8xbf16>
    %21 = vector.extract_strided_slice %20 {offsets = [0, 0], sizes = [160, 8], strides = [1, 1]} : vector<256x8xbf16> to vector<160x8xbf16>
    %22 = vector.extract_strided_slice %20 {offsets = [160, 0], sizes = [96, 8], strides = [1, 1]} : vector<256x8xbf16> to vector<96x8xbf16>
    %cst = arith.constant dense<0.000000e+00> : vector<48x6xf32>
    %23 = tpu.matmul %2, %0, %cst {dimension_numbers = #tpu.dot_dimension_numbers<[1], [0], [0], [1], [0, 0, 1, 1], [], []>} : vector<48x32xf32>, vector<32x6xf32>, vector<48x6xf32> -> vector<48x6xf32>
    %cst_13 = arith.constant dense<0.000000e+00> : vector<48x6xf32>
    %24 = tpu.matmul %3, %0, %cst_13 {dimension_numbers = #tpu.dot_dimension_numbers<[1], [0], [0], [1], [0, 0, 1, 1], [], []>} : vector<48x32xf32>, vector<32x6xf32>, vector<48x6xf32> -> vector<48x6xf32>
    %25 = arith.subf %24, %23 : vector<48x6xf32>
    %26 = vector.extract_strided_slice %25 {offsets = [0, 0], sizes = [48, 2], strides = [1, 1]} : vector<48x6xf32> to vector<48x2xf32>
    %27 = vector.extract_strided_slice %25 {offsets = [0, 2], sizes = [48, 2], strides = [1, 1]} : vector<48x6xf32> to vector<48x2xf32>
    %28 = vector.extract_strided_slice %25 {offsets = [0, 4], sizes = [48, 2], strides = [1, 1]} : vector<48x6xf32> to vector<48x2xf32>
    %29 = arith.addf %27, %28 : vector<48x2xf32>
    %30 = arith.mulf %26, %26 : vector<48x2xf32>
    %cst_14 = arith.constant dense<0.000000e+00> : vector<48xf32>
    %31 = vector.multi_reduction <add>, %30, %cst_14 [1] : vector<48x2xf32> to vector<48xf32>
    %32 = vector.shape_cast %31 : vector<48xf32> to vector<48x1xf32>
    %33 = math.sqrt %32 : vector<48x1xf32>
    %cst_15 = arith.constant 0.000000e+00 : f32
    %34 = vector.broadcast %cst_15 : f32 to vector<48x2xf32>
    %35 = arith.subf %34, %26 : vector<48x2xf32>
    %36 = arith.mulf %35, %29 : vector<48x2xf32>
    %cst_16 = arith.constant dense<0.000000e+00> : vector<48xf32>
    %37 = vector.multi_reduction <add>, %36, %cst_16 [1] : vector<48x2xf32> to vector<48xf32>
    %38 = vector.shape_cast %37 : vector<48xf32> to vector<48x1xf32>
    %39 = arith.mulf %29, %29 : vector<48x2xf32>
    %cst_17 = arith.constant dense<0.000000e+00> : vector<48xf32>
    %40 = vector.multi_reduction <add>, %39, %cst_17 [1] : vector<48x2xf32> to vector<48xf32>
    %41 = vector.shape_cast %40 : vector<48xf32> to vector<48x1xf32>
    %42 = arith.mulf %32, %41 : vector<48x1xf32>
    %cst_18 = arith.constant 9.99999996E-13 : f32
    %43 = vector.broadcast %cst_18 : f32 to vector<48x1xf32>
    %44 = arith.maximumf %42, %43 : vector<48x1xf32>
    %45 = math.rsqrt %44 : vector<48x1xf32>
    %46 = arith.mulf %38, %45 : vector<48x1xf32>
    %cst_19 = arith.constant -1.000000e+00 : f32
    %cst_20 = arith.constant 1.000000e+00 : f32
    %47 = vector.broadcast %cst_19 : f32 to vector<48x1xf32>
    %48 = arith.maximumf %47, %46 : vector<48x1xf32>
    %49 = vector.broadcast %cst_20 : f32 to vector<48x1xf32>
    %50 = arith.minimumf %49, %48 : vector<48x1xf32>
    %51 = math.absf %50 : vector<48x1xf32>
    %cst_21 = arith.constant -0.0012624911 : f32
    %52 = vector.broadcast %cst_21 : f32 to vector<48x1xf32>
    %53 = arith.mulf %52, %51 : vector<48x1xf32>
    %cst_22 = arith.constant 6.670090e-03 : f32
    %54 = vector.broadcast %cst_22 : f32 to vector<48x1xf32>
    %55 = arith.addf %53, %54 : vector<48x1xf32>
    %56 = arith.mulf %55, %51 : vector<48x1xf32>
    %cst_23 = arith.constant -0.0170881264 : f32
    %57 = vector.broadcast %cst_23 : f32 to vector<48x1xf32>
    %58 = arith.addf %56, %57 : vector<48x1xf32>
    %59 = arith.mulf %58, %51 : vector<48x1xf32>
    %cst_24 = arith.constant 0.0308918804 : f32
    %60 = vector.broadcast %cst_24 : f32 to vector<48x1xf32>
    %61 = arith.addf %59, %60 : vector<48x1xf32>
    %62 = arith.mulf %61, %51 : vector<48x1xf32>
    %cst_25 = arith.constant -0.0501743034 : f32
    %63 = vector.broadcast %cst_25 : f32 to vector<48x1xf32>
    %64 = arith.addf %62, %63 : vector<48x1xf32>
    %65 = arith.mulf %64, %51 : vector<48x1xf32>
    %cst_26 = arith.constant 0.0889789909 : f32
    %66 = vector.broadcast %cst_26 : f32 to vector<48x1xf32>
    %67 = arith.addf %65, %66 : vector<48x1xf32>
    %68 = arith.mulf %67, %51 : vector<48x1xf32>
    %cst_27 = arith.constant -0.214598805 : f32
    %69 = vector.broadcast %cst_27 : f32 to vector<48x1xf32>
    %70 = arith.addf %68, %69 : vector<48x1xf32>
    %71 = arith.mulf %70, %51 : vector<48x1xf32>
    %cst_28 = arith.constant 1.57079625 : f32
    %72 = vector.broadcast %cst_28 : f32 to vector<48x1xf32>
    %73 = arith.addf %71, %72 : vector<48x1xf32>
    %cst_29 = arith.constant 1.000000e+00 : f32
    %74 = vector.broadcast %cst_29 : f32 to vector<48x1xf32>
    %75 = arith.subf %74, %51 : vector<48x1xf32>
    %cst_30 = arith.constant 0.000000e+00 : f32
    %76 = vector.broadcast %cst_30 : f32 to vector<48x1xf32>
    %77 = arith.maximumf %75, %76 : vector<48x1xf32>
    %78 = math.sqrt %77 : vector<48x1xf32>
    %79 = arith.mulf %73, %78 : vector<48x1xf32>
    %cst_31 = arith.constant 0.000000e+00 : f32
    %80 = vector.broadcast %cst_31 : f32 to vector<48x1xf32>
    %81 = arith.cmpf olt, %50, %80 : vector<48x1xf32>
    %cst_32 = arith.constant 3.14159274 : f32
    %82 = vector.broadcast %cst_32 : f32 to vector<48x1xf32>
    %83 = arith.subf %82, %79 : vector<48x1xf32>
    %84 = arith.select %81, %83, %79 : vector<48x1xi1>, vector<48x1xf32>
    %cst_33 = arith.constant 57.2957802 : f32
    %85 = vector.broadcast %cst_33 : f32 to vector<48x1xf32>
    %86 = arith.mulf %84, %85 : vector<48x1xf32>
    %cst_34 = arith.constant 0.000000e+00 : f32
    %87 = vector.broadcast %cst_34 : f32 to vector<48x1xf32>
    %88 = arith.subf %33, %87 : vector<48x1xf32>
    %89 = arith.mulf %88, %88 : vector<48x1xf32>
    %cst_35 = arith.constant 0.000000e+00 : f32
    %90 = vector.broadcast %cst_35 : f32 to vector<48x1xf32>
    %91 = arith.subf %90, %89 : vector<48x1xf32>
    %cst_36 = arith.constant 1.125000e+00 : f32
    %92 = vector.broadcast %cst_36 : f32 to vector<48x1xf32>
    %93 = arith.divf %91, %92 : vector<48x1xf32>
    %94 = math.exp %93 : vector<48x1xf32>
    %cst_37 = arith.constant 2.000000e+00 : f32
    %95 = vector.broadcast %cst_37 : f32 to vector<48x1xf32>
    %96 = arith.subf %33, %95 : vector<48x1xf32>
    %97 = arith.mulf %96, %96 : vector<48x1xf32>
    %cst_38 = arith.constant 0.000000e+00 : f32
    %98 = vector.broadcast %cst_38 : f32 to vector<48x1xf32>
    %99 = arith.subf %98, %97 : vector<48x1xf32>
    %cst_39 = arith.constant 1.125000e+00 : f32
    %100 = vector.broadcast %cst_39 : f32 to vector<48x1xf32>
    %101 = arith.divf %99, %100 : vector<48x1xf32>
    %102 = math.exp %101 : vector<48x1xf32>
    %cst_40 = arith.constant 4.000000e+00 : f32
    %103 = vector.broadcast %cst_40 : f32 to vector<48x1xf32>
    %104 = arith.subf %33, %103 : vector<48x1xf32>
    %105 = arith.mulf %104, %104 : vector<48x1xf32>
    %cst_41 = arith.constant 0.000000e+00 : f32
    %106 = vector.broadcast %cst_41 : f32 to vector<48x1xf32>
    %107 = arith.subf %106, %105 : vector<48x1xf32>
    %cst_42 = arith.constant 1.125000e+00 : f32
    %108 = vector.broadcast %cst_42 : f32 to vector<48x1xf32>
    %109 = arith.divf %107, %108 : vector<48x1xf32>
    %110 = math.exp %109 : vector<48x1xf32>
    %cst_43 = arith.constant 0.000000e+00 : f32
    %111 = vector.broadcast %cst_43 : f32 to vector<48x1xf32>
    %112 = arith.subf %86, %111 : vector<48x1xf32>
    %113 = arith.mulf %112, %112 : vector<48x1xf32>
    %cst_44 = arith.constant 0.000000e+00 : f32
    %114 = vector.broadcast %cst_44 : f32 to vector<48x1xf32>
    %115 = arith.subf %114, %113 : vector<48x1xf32>
    %cst_45 = arith.constant 1.800000e+03 : f32
    %116 = vector.broadcast %cst_45 : f32 to vector<48x1xf32>
    %117 = arith.divf %115, %116 : vector<48x1xf32>
    %118 = math.exp %117 : vector<48x1xf32>
    %cst_46 = arith.constant 9.000000e+01 : f32
    %119 = vector.broadcast %cst_46 : f32 to vector<48x1xf32>
    %120 = arith.subf %86, %119 : vector<48x1xf32>
    %121 = arith.mulf %120, %120 : vector<48x1xf32>
    %cst_47 = arith.constant 0.000000e+00 : f32
    %122 = vector.broadcast %cst_47 : f32 to vector<48x1xf32>
    %123 = arith.subf %122, %121 : vector<48x1xf32>
    %cst_48 = arith.constant 1.800000e+03 : f32
    %124 = vector.broadcast %cst_48 : f32 to vector<48x1xf32>
    %125 = arith.divf %123, %124 : vector<48x1xf32>
    %126 = math.exp %125 : vector<48x1xf32>
    %cst_49 = arith.constant 1.800000e+02 : f32
    %127 = vector.broadcast %cst_49 : f32 to vector<48x1xf32>
    %128 = arith.subf %86, %127 : vector<48x1xf32>
    %129 = arith.mulf %128, %128 : vector<48x1xf32>
    %cst_50 = arith.constant 0.000000e+00 : f32
    %130 = vector.broadcast %cst_50 : f32 to vector<48x1xf32>
    %131 = arith.subf %130, %129 : vector<48x1xf32>
    %cst_51 = arith.constant 1.800000e+03 : f32
    %132 = vector.broadcast %cst_51 : f32 to vector<48x1xf32>
    %133 = arith.divf %131, %132 : vector<48x1xf32>
    %134 = math.exp %133 : vector<48x1xf32>
    %cst_52 = arith.constant 0.000000e+00 : f32
    %135 = vector.broadcast %cst_52 : f32 to vector<48x1xf32>
    %cst_53 = arith.constant 0.000000e+00 : f32
    %136 = vector.broadcast %cst_53 : f32 to vector<48x1xf32>
    %137 = arith.minimumf %94, %118 : vector<48x1xf32>
    %cst_54 = arith.constant -2.000000e-01 : f32
    %138 = vector.broadcast %cst_54 : f32 to vector<48x1xf32>
    %139 = arith.mulf %33, %138 : vector<48x1xf32>
    %cst_55 = arith.constant 0.000000e+00 : f32
    %140 = vector.broadcast %cst_55 : f32 to vector<48x1xf32>
    %141 = arith.mulf %86, %140 : vector<48x1xf32>
    %142 = arith.addf %139, %141 : vector<48x1xf32>
    %cst_56 = arith.constant 1.000000e+00 : f32
    %143 = vector.broadcast %cst_56 : f32 to vector<48x1xf32>
    %144 = arith.addf %142, %143 : vector<48x1xf32>
    %145 = arith.mulf %137, %144 : vector<48x1xf32>
    %146 = arith.addf %135, %145 : vector<48x1xf32>
    %147 = arith.addf %136, %137 : vector<48x1xf32>
    %148 = arith.minimumf %94, %126 : vector<48x1xf32>
    %cst_57 = arith.constant -1.000000e-01 : f32
    %149 = vector.broadcast %cst_57 : f32 to vector<48x1xf32>
    %150 = arith.mulf %33, %149 : vector<48x1xf32>
    %cst_58 = arith.constant -2.000000e-03 : f32
    %151 = vector.broadcast %cst_58 : f32 to vector<48x1xf32>
    %152 = arith.mulf %86, %151 : vector<48x1xf32>
    %153 = arith.addf %150, %152 : vector<48x1xf32>
    %cst_59 = arith.constant 0.699999988 : f32
    %154 = vector.broadcast %cst_59 : f32 to vector<48x1xf32>
    %155 = arith.addf %153, %154 : vector<48x1xf32>
    %156 = arith.mulf %148, %155 : vector<48x1xf32>
    %157 = arith.addf %146, %156 : vector<48x1xf32>
    %158 = arith.addf %147, %148 : vector<48x1xf32>
    %159 = arith.minimumf %94, %134 : vector<48x1xf32>
    %cst_60 = arith.constant -5.000000e-02 : f32
    %160 = vector.broadcast %cst_60 : f32 to vector<48x1xf32>
    %161 = arith.mulf %33, %160 : vector<48x1xf32>
    %cst_61 = arith.constant -1.000000e-03 : f32
    %162 = vector.broadcast %cst_61 : f32 to vector<48x1xf32>
    %163 = arith.mulf %86, %162 : vector<48x1xf32>
    %164 = arith.addf %161, %163 : vector<48x1xf32>
    %cst_62 = arith.constant 2.750000e-01 : f32
    %165 = vector.broadcast %cst_62 : f32 to vector<48x1xf32>
    %166 = arith.addf %164, %165 : vector<48x1xf32>
    %167 = arith.mulf %159, %166 : vector<48x1xf32>
    %168 = arith.addf %157, %167 : vector<48x1xf32>
    %169 = arith.addf %158, %159 : vector<48x1xf32>
    %170 = arith.minimumf %102, %118 : vector<48x1xf32>
    %cst_63 = arith.constant -5.000000e-02 : f32
    %171 = vector.broadcast %cst_63 : f32 to vector<48x1xf32>
    %172 = arith.mulf %33, %171 : vector<48x1xf32>
    %cst_64 = arith.constant -1.000000e-03 : f32
    %173 = vector.broadcast %cst_64 : f32 to vector<48x1xf32>
    %174 = arith.mulf %86, %173 : vector<48x1xf32>
    %175 = arith.addf %172, %174 : vector<48x1xf32>
    %cst_65 = arith.constant 4.000000e-01 : f32
    %176 = vector.broadcast %cst_65 : f32 to vector<48x1xf32>
    %177 = arith.addf %175, %176 : vector<48x1xf32>
    %178 = arith.mulf %170, %177 : vector<48x1xf32>
    %179 = arith.addf %168, %178 : vector<48x1xf32>
    %180 = arith.addf %169, %170 : vector<48x1xf32>
    %181 = arith.minimumf %102, %126 : vector<48x1xf32>
    %cst_66 = arith.constant -5.000000e-02 : f32
    %182 = vector.broadcast %cst_66 : f32 to vector<48x1xf32>
    %183 = arith.mulf %33, %182 : vector<48x1xf32>
    %cst_67 = arith.constant -1.000000e-03 : f32
    %184 = vector.broadcast %cst_67 : f32 to vector<48x1xf32>
    %185 = arith.mulf %86, %184 : vector<48x1xf32>
    %186 = arith.addf %183, %185 : vector<48x1xf32>
    %cst_68 = arith.constant 2.500000e-01 : f32
    %187 = vector.broadcast %cst_68 : f32 to vector<48x1xf32>
    %188 = arith.addf %186, %187 : vector<48x1xf32>
    %189 = arith.mulf %181, %188 : vector<48x1xf32>
    %190 = arith.addf %179, %189 : vector<48x1xf32>
    %191 = arith.addf %180, %181 : vector<48x1xf32>
    %192 = arith.minimumf %102, %134 : vector<48x1xf32>
    %cst_69 = arith.constant -0.00999999977 : f32
    %193 = vector.broadcast %cst_69 : f32 to vector<48x1xf32>
    %194 = arith.mulf %33, %193 : vector<48x1xf32>
    %cst_70 = arith.constant -2.000000e-04 : f32
    %195 = vector.broadcast %cst_70 : f32 to vector<48x1xf32>
    %196 = arith.mulf %86, %195 : vector<48x1xf32>
    %197 = arith.addf %194, %196 : vector<48x1xf32>
    %cst_71 = arith.constant 7.000000e-02 : f32
    %198 = vector.broadcast %cst_71 : f32 to vector<48x1xf32>
    %199 = arith.addf %197, %198 : vector<48x1xf32>
    %200 = arith.mulf %192, %199 : vector<48x1xf32>
    %201 = arith.addf %190, %200 : vector<48x1xf32>
    %202 = arith.addf %191, %192 : vector<48x1xf32>
    %203 = arith.minimumf %110, %118 : vector<48x1xf32>
    %cst_72 = arith.constant -5.500000e-02 : f32
    %204 = vector.broadcast %cst_72 : f32 to vector<48x1xf32>
    %205 = arith.mulf %33, %204 : vector<48x1xf32>
    %cst_73 = arith.constant 8.000000e-04 : f32
    %206 = vector.broadcast %cst_73 : f32 to vector<48x1xf32>
    %207 = arith.mulf %86, %206 : vector<48x1xf32>
    %208 = arith.addf %205, %207 : vector<48x1xf32>
    %cst_74 = arith.constant 2.225000e-01 : f32
    %209 = vector.broadcast %cst_74 : f32 to vector<48x1xf32>
    %210 = arith.addf %208, %209 : vector<48x1xf32>
    %211 = arith.mulf %203, %210 : vector<48x1xf32>
    %212 = arith.addf %201, %211 : vector<48x1xf32>
    %213 = arith.addf %202, %203 : vector<48x1xf32>
    %214 = arith.minimumf %110, %126 : vector<48x1xf32>
    %cst_75 = arith.constant -0.00999999977 : f32
    %215 = vector.broadcast %cst_75 : f32 to vector<48x1xf32>
    %216 = arith.mulf %33, %215 : vector<48x1xf32>
    %cst_76 = arith.constant -2.000000e-04 : f32
    %217 = vector.broadcast %cst_76 : f32 to vector<48x1xf32>
    %218 = arith.mulf %86, %217 : vector<48x1xf32>
    %219 = arith.addf %216, %218 : vector<48x1xf32>
    %cst_77 = arith.constant 7.000000e-02 : f32
    %220 = vector.broadcast %cst_77 : f32 to vector<48x1xf32>
    %221 = arith.addf %219, %220 : vector<48x1xf32>
    %222 = arith.mulf %214, %221 : vector<48x1xf32>
    %223 = arith.addf %212, %222 : vector<48x1xf32>
    %224 = arith.addf %213, %214 : vector<48x1xf32>
    %225 = arith.minimumf %110, %134 : vector<48x1xf32>
    %cst_78 = arith.constant 0.000000e+00 : f32
    %226 = vector.broadcast %cst_78 : f32 to vector<48x1xf32>
    %227 = arith.mulf %33, %226 : vector<48x1xf32>
    %cst_79 = arith.constant 0.000000e+00 : f32
    %228 = vector.broadcast %cst_79 : f32 to vector<48x1xf32>
    %229 = arith.mulf %86, %228 : vector<48x1xf32>
    %230 = arith.addf %227, %229 : vector<48x1xf32>
    %cst_80 = arith.constant 0.000000e+00 : f32
    %231 = vector.broadcast %cst_80 : f32 to vector<48x1xf32>
    %232 = arith.addf %230, %231 : vector<48x1xf32>
    %233 = arith.mulf %225, %232 : vector<48x1xf32>
    %234 = arith.addf %223, %233 : vector<48x1xf32>
    %235 = arith.addf %224, %225 : vector<48x1xf32>
    %236 = tpu.reciprocal %235 {approx = true} : vector<48x1xf32> -> vector<48x1xf32>
    %237 = arith.mulf %234, %236 : vector<48x1xf32>
    %cst_81 = arith.constant 5.000000e-01 : f32
    %238 = vector.broadcast %cst_81 : f32 to vector<48x1xf32>
    %239 = arith.cmpf ogt, %4, %238 : vector<48x1xf32>
    %cst_82 = arith.constant 1.000000e+00 : f32
    %240 = vector.broadcast %cst_82 : f32 to vector<48x1xf32>
    %241 = arith.select %239, %240, %237 : vector<48x1xi1>, vector<48x1xf32>
    %242 = arith.truncf %23 : vector<48x6xf32> to vector<48x6xbf16>
    %243 = tpu.concatenate %242, %242, %242, %242, %242 in 1 : vector<48x6xbf16>, vector<48x6xbf16>, vector<48x6xbf16>, vector<48x6xbf16>, vector<48x6xbf16> -> vector<48x30xbf16>
    %244 = arith.mulf %13, %243 : vector<48x30xbf16>
    %cst_83 = arith.constant dense<0.000000e+00> : vector<48x32xf32>
    %245 = tpu.matmul %244, %18, %cst_83 {dimension_numbers = #tpu.dot_dimension_numbers<[1], [0], [0], [1], [0, 0, 1, 1], [], []>} : vector<48x30xbf16>, vector<30x32xbf16>, vector<48x32xf32> -> vector<48x32xf32>
    %246 = arith.addf %245, %5 : vector<48x32xf32>
    %247 = vector.broadcast %241 : vector<48x1xf32> to vector<48x32xf32>
    %248 = arith.mulf %247, %246 : vector<48x32xf32>
    %cst_84 = arith.constant dense<0.000000e+00> : vector<32x32xf32>
    %249 = tpu.matmul %8, %248, %cst_84 {dimension_numbers = #tpu.dot_dimension_numbers<[1], [0], [0], [1], [0, 0, 1, 1], [], []>} : vector<32x48xf32>, vector<48x32xf32>, vector<32x32xf32> -> vector<32x32xf32>
    %250 = arith.truncf %0 : vector<32x6xf32> to vector<32x6xbf16>
    %251 = tpu.concatenate %250, %250, %250 in 1 : vector<32x6xbf16>, vector<32x6xbf16>, vector<32x6xbf16> -> vector<32x18xbf16>
    %252 = arith.mulf %16, %251 : vector<32x18xbf16>
    %cst_85 = arith.constant dense<0.000000e+00> : vector<32x32xf32>
    %253 = tpu.matmul %252, %19, %cst_85 {dimension_numbers = #tpu.dot_dimension_numbers<[1], [0], [0], [1], [0, 0, 1, 1], [], []>} : vector<32x18xbf16>, vector<18x32xbf16>, vector<32x32xf32> -> vector<32x32xf32>
    %254 = arith.addf %253, %9 : vector<32x32xf32>
    %255 = arith.addf %249, %254 : vector<32x32xf32>
    %cst_86 = arith.constant 0.000000e+00 : f32
    %256 = vector.broadcast %cst_86 : f32 to vector<32x32xf32>
    %257 = arith.maximumf %255, %256 : vector<32x32xf32>
    %cst_87 = arith.constant dense<0.000000e+00> : vector<48x32xf32>
    %258 = tpu.matmul %2, %257, %cst_87 {dimension_numbers = #tpu.dot_dimension_numbers<[1], [0], [0], [1], [0, 0, 1, 1], [], []>} : vector<48x32xf32>, vector<32x32xf32>, vector<48x32xf32> -> vector<48x32xf32>
    %259 = arith.truncf %258 : vector<48x32xf32> to vector<48x32xbf16>
    %260 = tpu.concatenate %259, %259, %259, %259, %259 in 1 : vector<48x32xbf16>, vector<48x32xbf16>, vector<48x32xbf16>, vector<48x32xbf16>, vector<48x32xbf16> -> vector<48x160xbf16>
    %261 = arith.mulf %12, %260 : vector<48x160xbf16>
    %cst_88 = arith.constant dense<0.000000e+00> : vector<48x8xf32>
    %262 = tpu.matmul %261, %21, %cst_88 {dimension_numbers = #tpu.dot_dimension_numbers<[1], [0], [0], [1], [0, 0, 1, 1], [], []>} : vector<48x160xbf16>, vector<160x8xbf16>, vector<48x8xf32> -> vector<48x8xf32>
    %263 = arith.addf %262, %6 : vector<48x8xf32>
    %264 = vector.broadcast %241 : vector<48x1xf32> to vector<48x8xf32>
    %265 = arith.mulf %264, %263 : vector<48x8xf32>
    %cst_89 = arith.constant dense<0.000000e+00> : vector<32x8xf32>
    %266 = tpu.matmul %8, %265, %cst_89 {dimension_numbers = #tpu.dot_dimension_numbers<[1], [0], [0], [1], [0, 0, 1, 1], [], []>} : vector<32x48xf32>, vector<48x8xf32>, vector<32x8xf32> -> vector<32x8xf32>
    %267 = arith.truncf %257 : vector<32x32xf32> to vector<32x32xbf16>
    %268 = tpu.concatenate %267, %267, %267 in 1 : vector<32x32xbf16>, vector<32x32xbf16>, vector<32x32xbf16> -> vector<32x96xbf16>
    %269 = arith.mulf %15, %268 : vector<32x96xbf16>
    %cst_90 = arith.constant dense<0.000000e+00> : vector<32x8xf32>
    %270 = tpu.matmul %269, %22, %cst_90 {dimension_numbers = #tpu.dot_dimension_numbers<[1], [0], [0], [1], [0, 0, 1, 1], [], []>} : vector<32x96xbf16>, vector<96x8xbf16>, vector<32x8xf32> -> vector<32x8xf32>
    %271 = arith.addf %270, %10 : vector<32x8xf32>
    %272 = arith.addf %266, %271 : vector<32x8xf32>
    %cst_91 = arith.constant 0.000000e+00 : f32
    %273 = vector.broadcast %cst_91 : f32 to vector<32x8xf32>
    %274 = arith.maximumf %272, %273 : vector<32x8xf32>
    %275 = vector.shape_cast %274 : vector<32x8xf32> to vector<4x8x8xf32>
    %276 = tpu.iota {dimensions = array<i32: 1>} : vector<4x8x8xi32>
    %c2_i32 = arith.constant 2 : i32
    %277 = vector.broadcast %c2_i32 : i32 to vector<4x8x8xi32>
    %278 = arith.cmpi sge, %276, %277 : vector<4x8x8xi32>
    %c0_i32 = arith.constant 0 : i32
    %279 = vector.broadcast %c0_i32 : i32 to vector<4x8x8xi32>
    %280 = arith.cmpi eq, %276, %279 : vector<4x8x8xi32>
    %cst_92 = arith.constant 0.000000e+00 : f32
    %281 = vector.broadcast %cst_92 : f32 to vector<4x8x8xf32>
    %282 = arith.select %280, %275, %281 : vector<4x8x8xi1>, vector<4x8x8xf32>
    %cst_93 = arith.constant dense<0.000000e+00> : vector<4x8xf32>
    %283 = vector.multi_reduction <add>, %282, %cst_93 [1] : vector<4x8x8xf32> to vector<4x8xf32>
    %c1_i32 = arith.constant 1 : i32
    %284 = vector.broadcast %c1_i32 : i32 to vector<4x8x8xi32>
    %285 = arith.cmpi eq, %276, %284 : vector<4x8x8xi32>
    %cst_94 = arith.constant 0.000000e+00 : f32
    %286 = vector.broadcast %cst_94 : f32 to vector<4x8x8xf32>
    %287 = arith.select %285, %275, %286 : vector<4x8x8xi1>, vector<4x8x8xf32>
    %cst_95 = arith.constant dense<0.000000e+00> : vector<4x8xf32>
    %288 = vector.multi_reduction <add>, %287, %cst_95 [1] : vector<4x8x8xf32> to vector<4x8xf32>
    %cst_96 = arith.constant 0.000000e+00 : f32
    %289 = vector.broadcast %cst_96 : f32 to vector<4x8x8xf32>
    %290 = arith.select %278, %275, %289 : vector<4x8x8xi1>, vector<4x8x8xf32>
    %cst_97 = arith.constant dense<0.000000e+00> : vector<4x8xf32>
    %291 = vector.multi_reduction <add>, %290, %cst_97 [1] : vector<4x8x8xf32> to vector<4x8xf32>
    %cst_98 = arith.constant 0.166666672 : f32
    %292 = vector.broadcast %cst_98 : f32 to vector<4x8xf32>
    %293 = arith.mulf %291, %292 : vector<4x8xf32>
    %cst_99 = arith.constant 0xFF800000 : f32
    %294 = vector.broadcast %cst_99 : f32 to vector<4x8x8xf32>
    %295 = arith.select %278, %275, %294 : vector<4x8x8xi1>, vector<4x8x8xf32>
    %cst_100 = arith.constant dense<0xFF800000> : vector<4x8xf32>
    %296 = vector.multi_reduction <maximumf>, %295, %cst_100 [1] : vector<4x8x8xf32> to vector<4x8xf32>
    %cst_101 = arith.constant 0x7F800000 : f32
    %297 = vector.broadcast %cst_101 : f32 to vector<4x8x8xf32>
    %298 = arith.select %278, %275, %297 : vector<4x8x8xi1>, vector<4x8x8xf32>
    %cst_102 = arith.constant dense<0x7F800000> : vector<4x8xf32>
    %299 = vector.multi_reduction <minimumf>, %298, %cst_102 [1] : vector<4x8x8xf32> to vector<4x8xf32>
    %300 = tpu.concatenate %283, %288, %293, %296, %299 in 0 : vector<4x8xf32>, vector<4x8xf32>, vector<4x8xf32>, vector<4x8xf32>, vector<4x8xf32> -> vector<20x8xf32>
    %c0_103 = arith.constant 0 : index
    %c0_104 = arith.constant 0 : index
    %301 = vector.load %arg7[%c0_103, %c0_104] : memref<20x8xf32, #tpu.memory_space<vmem>>, vector<20x8xf32>
    tpu.vector_store %arg7[%c0_103, %c0_104], %300 {strides = array<i32>} : memref<20x8xf32, #tpu.memory_space<vmem>>, vector<20x8xf32>,
    return
  }
}

</mosaic_0001>

<bundles_post_ra>
// kernel: tpu_custom_call.1
= control target key start
LH: loop header
LB: loop body
LE: loop exit
PB: predicated region body
PF: predicated region fallthrough
CT: control target
= control target key end

     0   :  { %vm90_vm0 = vcmask 261120   ;;  %s3155_s28 = smov 96   ;;  %s3157_s22 = smov 6   ;;  %vm1506_vm1 = vcmask 1046528   ;;  %v3158_v54 = vmov 0.0   ;;  %vm3161_vm2 = vmmov 0   ;;  %s4582_s1 = inlined_call_operand.vmem [shape: f32[48,105], index: 1, kind: input, shape index: {}]   ;;  %s4583_s0 = inlined_call_operand.vmem [shape: f32[32,6], index: 0, kind: input, shape index: {}]   ;;  %s4584_s5 = inlined_call_operand.vmem [shape: bf16[50,32], index: 5, kind: input, shape index: {}]   ;;  %s4585_s3 = inlined_call_operand.vmem [shape: bf16[48,190], index: 3, kind: input, shape index: {}]   ;;  %s4586_s4 = inlined_call_operand.vmem [shape: bf16[32,114], index: 4, kind: input, shape index: {}]   ;;  %s4587_s2 = inlined_call_operand.vmem [shape: f32[32,88], index: 2, kind: input, shape index: {}]   ;;  %s4588_s6 = inlined_call_operand.vmem [shape: bf16[256,8], index: 6, kind: input, shape index: {}]   ;;  %s4589_s7 = inlined_call_operand.vmem [shape: f32[20,8], index: 7, kind: output, shape index: {}]  }
   0x1   :  { %v31_v0 = vld [vmem:[%s4582_s1] sm:$0xff]  ;;  %v33_v1 = vld [vmem:[%s4582_s1 + $0x10] sm:$0xff]  ;;  %v32_v2 = vld [vmem:[%s4582_s1 + $0x8] sm:$0xff]  ;;  %s3159_s27 = smov 18   ;;  %s3160_s8 = smov 12   ;;  %vm365_vm3 = vcmask 15360  }
   0x2   :  { %204 = vrot.lane.b32.xlu0 %v31_v0, %s3155_s28  ;;  %208 = vrot.lane.b32.xlu1 %v33_v1, %s3155_s28  ;;  %v34_v3 = vld [vmem:[%s4582_s1 + $0x18] sm:$0xff]  ;;  %v3235_v5 = vld [vmem:[%s4583_s0 + $0x10] sm:$0xff]  ;;  %s3162_s9 = smov 24   ;;  %vm1364_vm4 = vcmask 48128   ;;  %vm1374_vm5 = vcmask 97280   ;;  %vm1381_vm6 = vcmask 146432  }
   0x3   :  { %v3228_v4 = vld [vmem:[%s4583_s0 + $0x18] sm:$0xff]  ;;  %2862 = vmatprep.mubr.msk.f32.mxu0 %vm90_vm0, %v31_v0  ;;  %v3245_v6 = vld [vmem:[%s4583_s0 + $0x8] sm:$0xff]  ;;  %v35_v7 = vld [vmem:[%s4582_s1 + $0x20] sm:$0xff]  ;;  %vm1388_vm7 = vcmask 195584   ;;  %vm1496_vm8 = vcmask 244736   ;;  %s3165_s12 = smov 32  }
   0x4   :  { %2854 = vmatprep.subr.mxu0 %v3228_v4  ;;  %2871 = vmatprep.subr.mxu1 %v3228_v4  ;;  %v36_v8 = vld [vmem:[%s4582_s1 + $0x28] sm:$0xff]  ;;  %v3261_v9 = vld [vmem:[%s4583_s0] sm:$0xff]  ;;  %s3156_s0 = smov 126   ;;  %v43_v60 = vld [vmem:[%s4585_s3 + $0x10] sm:$0xff]  ;;  %s3166_s25 = smov 80  }
   0x5   :  { %2855 = vmatpush3.msra.mxu0 %v3228_v4  ;;  %2872 = vmatpush3.msra.mxu1 %v3228_v4  ;;  %v3000_v52 = vld [vmem:[%s4584_s5 + $0x8] sm:$0xff]   ;;  %v3001_v56 = vld [vmem:[%s4584_s5] sm:$0xff]   ;;  %v44_v62 = vld [vmem:[%s4585_s3 + $0x18] sm:$0xff] }
   0x6   :  { %206 = vrot.lane.b32.xlu0 %v32_v2, %s3155_s28  ;;  %210 = vrot.lane.b32.xlu1 %v34_v3, %s3155_s28  ;;  %v1508_v55 = vsel %vm1506_vm1, %v3000_v52, 0  ;;  %v41_v57 = vld [vmem:[%s4585_s3] sm:$0xff]  ;;  %v42_v59 = vld [vmem:[%s4585_s3 + $0x8] sm:$0xff] }
   0x7   :  { %2856 = vmatprep.subr.mxu0 %v3235_v5  ;;  %2873 = vmatprep.subr.mxu1 %v3235_v5  ;;  %v45_v63 = vld [vmem:[%s4585_s3 + $0x20] sm:$0xff]  ;;  %v46_v0 = vld [vmem:[%s4585_s3 + $0x28] sm:$0xff] }
   0x8   :  { %2857 = vmatpush3.msra.mxu0 %v3235_v5  ;;  %2874 = vmatpush3.msra.mxu1 %v3235_v5 }
   0x9   :  { %2858 = vmatprep.subr.mxu0 %v3245_v6  ;;  %2875 = vmatprep.subr.mxu1 %v3245_v6 }
   0xa   :  { %212 = vrot.lane.b32.xlu0 %v35_v7, %s3155_s28  ;;  %214 = vrot.lane.b32.xlu1 %v36_v8, %s3155_s28 }
   0xb   :  { %2859 = vmatpush3.msra.mxu0 %v3245_v6  ;;  %2876 = vmatpush3.msra.mxu1 %v3245_v6 }
   0xc   :  { %2860 = vmatprep.subr.mxu0 %v3261_v9  ;;  %2877 = vmatprep.subr.mxu1 %v3261_v9 }
   0xd   :  { %2861 = vmatpush3.msra.mxu0 %v3261_v9  ;;  %2878 = vmatpush3.msra.mxu1 %v3261_v9 }
   0xe   :  { %2863 = vmatmul.mubr.msk.f32.vlgmr.msra.gmra.mxu0 %vm90_vm0, %v32_v2  ;;  %2888 = vmatprep.subr.bf16.mxu0 %v3158_v54 }
   0xf   :  { %2865 = vmatprep.mubr.msk.f32.mxu0 %vm90_vm0, %v33_v1  ;;  %2889 = vmatpush3.bf16.msra.mxu0 %v1508_v55 }
  0x10   :  { %2890 = vmatprep.subr.bf16.mxu0 %v3158_v54 }
  0x12   :  { %2866 = vmatmul.mubr.msk.f32.gmra.mxu0 %vm90_vm0, %v34_v3 }
  0x13   :  { %2868 = vmatprep.mubr.msk.f32.mxu0 %vm90_vm0, %v35_v7  ;;  %2891 = vmatpush3.bf16.msra.mxu0 %v3001_v56 }
  0x16   :  { %2869 = vmatmul.mubr.msk.f32.gmra.mxu0 %vm90_vm0, %v36_v8 }
  0x17   :  { %2892 = vmatprep.mubr.msk.bf16.mxu0 %vm3161_vm2, %v3158_v54 }
  0x74   :  { %v205_v10 = vpop.permute.xlu0 %204  ;;  %v209_v11 = vpop.permute.xlu1 %208 }
  0x75   :  { %2879 = vmatprep.mubr.msk.f32.mxu1 %vm90_vm0, %v205_v10 }
  0x78   :  { %v207_v12 = vpop.permute.xlu0 %206  ;;  %v211_v13 = vpop.permute.xlu1 %210 }
  0x79   :  { %2880 = vmatmul.mubr.msk.f32.vlgmr.msra.gmra.mxu1 %vm90_vm0, %v207_v12 }
  0x7a   :  { %2882 = vmatprep.mubr.msk.f32.mxu1 %vm90_vm0, %v209_v11 }
  0x7c   :  { %v213_v14 = vpop.permute.xlu0 %212  ;;  %v215_v15 = vpop.permute.xlu1 %214 }
  0x7d   :  { %2883 = vmatmul.mubr.msk.f32.gmra.mxu1 %vm90_vm0, %v211_v13 }
  0x7e   :  { %2885 = vmatprep.mubr.msk.f32.mxu1 %vm90_vm0, %v213_v14 }
  0x81   :  { %2886 = vmatmul.mubr.msk.f32.gmra.mxu1 %vm90_vm0, %v215_v15 }
  0xce   :  { %v2864_v16 = vpop.f32.mrf.mxu0 }
  0xd0   :  { %v175_v17 = vpop.f32.mrf.mxu0 }
  0xd1   :  { %v3317_v34 = vpack.c.bf16 %v2864_v16, %v175_v17 }
  0xd2   :  { %v3283_v18 = vpop.f32.mrf.mxu0 }
  0xd4   :  { %v3285_v21 = vpop.f32.mrf.mxu0 }
  0xd5   :  { %v3360_v58 = vpack.c.bf16 %v3283_v18, %v3285_v21 }
  0xd6   :  { %v3287_v23 = vpop.f32.mrf.mxu0 }
  0xd8   :  { %v3292_v27 = vpop.f32.mrf.mxu0 }
  0xd9   :  { %v3378_v61 = vpack.c.bf16 %v3287_v23, %v3292_v27 }
 0x139   :  { %v2881_v19 = vpop.f32.mrf.mxu1 }
 0x13a   :  { %v3309_v32 = vsub.f32 %v2881_v19, %v2864_v16 }
 0x13b   :  { %v294_v20 = vpop.f32.mrf.mxu1 }
 0x13c   :  { %v3313_v33 = vsub.f32 %v294_v20, %v175_v17 }
 0x13d   :  { %v2884_v22 = vpop.f32.mrf.mxu1 }
 0x13e   :  { %v3300_v30 = vsub.f32 %v2884_v22, %v3283_v18 }
 0x13f   :  { %v304_v24 = vpop.f32.mrf.mxu1 }
 0x140   :  { %v3305_v31 = vsub.f32 %v304_v24, %v3285_v21  ;;  %v362_v8 = vmul.f32 %v3300_v30, %v3300_v30 }
 0x141   :  { %v2887_v25 = vpop.f32.mrf.mxu1 }
 0x142   :  { %v3290_v26 = vsub.f32 %v2887_v25, %v3287_v23  ;;  %v375_v10 = vsel %vm365_vm3, %v362_v8, 0.0  ;;  %v428_v55 = vsub.f32 0.0, %v3305_v31 }
 0x143   :  { %v314_v28 = vpop.f32.mrf.mxu1 }
 0x144   :  { %v3295_v29 = vsub.f32 %v314_v28, %v3292_v27  ;;  %345 = vrot.lane.b32.xlu0 %v3290_v26, %s3156_s0  ;;  %v364_v1 = vmul.f32 %v3290_v26, %v3290_v26  ;;  %v361_v27 = vmul.f32 %v3305_v31, %v3305_v31 }
 0x146   :  { %343 = vrot.lane.b32.xlu1 %v3295_v29, %s3156_s0  ;;  %v381_v2 = vsel %vm365_vm3, %v364_v1, 0.0  ;;  %v363_v3 = vmul.f32 %v3295_v29, %v3295_v29  ;;  %v426_v1 = vsub.f32 0.0, %v3313_v33 }
 0x148   :  { %341 = vrot.lane.b32.xlu0 %v3300_v30, %s3156_s0  ;;  %v378_v7 = vsel %vm365_vm3, %v363_v3, 0.0 }
 0x14a   :  { %339 = vrot.lane.b32.xlu1 %v3305_v31, %s3156_s0 }
 0x14c   :  { %337 = vrot.lane.b32.xlu0 %v3309_v32, %s3156_s0 }
 0x14e   :  { %335 = vrot.lane.b32.xlu1 %v3313_v33, %s3156_s0 }
 0x150   :  { %1340 = vrot.lane.b32.xlu0 %v3317_v34, %s3157_s22 }
 0x1b6   :  { %v346_v35 = vpop.permute.xlu0 %345 }
 0x1b7   :  { %v358_v49 = vadd.f32 %v346_v35, %v3290_v26 }
 0x1b8   :  { %v344_v36 = vpop.permute.xlu1 %343 }
 0x1b9   :  { %v357_v50 = vadd.f32 %v344_v36, %v3295_v29  ;;  %v485_v51 = vmul.f32 %v358_v49, %v358_v49 }
 0x1ba   :  { %v342_v37 = vpop.permute.xlu0 %341 }
 0x1bb   :  { %v356_v45 = vadd.f32 %v342_v37, %v3300_v30  ;;  %v484_v53 = vmul.f32 %v357_v50, %v357_v50  ;;  %v372_v37 = vsel %vm365_vm3, %v361_v27, 0.0 }
 0x1bc   :  { %v340_v38 = vpop.permute.xlu1 %339 }
 0x1bd   :  { %v355_v46 = vadd.f32 %v340_v38, %v3305_v31  ;;  %v483_v47 = vmul.f32 %v356_v45, %v356_v45  ;;  %v360_v38 = vmul.f32 %v3309_v32, %v3309_v32 }
 0x1be   :  { %v338_v39 = vpop.permute.xlu0 %337 }
 0x1bf   :  { %v354_v40 = vadd.f32 %v338_v39, %v3309_v32  ;;  %v482_v48 = vmul.f32 %v355_v46, %v355_v46 }
 0x1c0   :  { %v336_v41 = vpop.permute.xlu1 %335 }
 0x1c1   :  { %v353_v42 = vadd.f32 %v336_v41, %v3313_v33  ;;  %440 = vrot.lane.b32.xlu0 %v354_v40, %s3156_s0  ;;  %v481_v43 = vmul.f32 %v354_v40, %v354_v40 }
 0x1c2   :  { %v1341_v11 = vpop.permute.xlu0 %1340 }
 0x1c3   :  { %438 = vrot.lane.b32.xlu1 %v353_v42, %s3156_s0  ;;  %v480_v44 = vmul.f32 %v353_v42, %v353_v42  ;;  %v1367_v39 = vsel %vm1364_vm4, %v3317_v34, %v1341_v11 }
 0x1c5   :  { %494 = vrot.lane.b32.xlu0 %v481_v43, %s3156_s0 }
 0x1c7   :  { %492 = vrot.lane.b32.xlu1 %v480_v44, %s3156_s0  ;;  %v359_v44 = vmul.f32 %v3313_v33, %v3313_v33 }
 0x1c9   :  { %444 = vrot.lane.b32.xlu0 %v356_v45, %s3156_s0  ;;  %v430_v45 = vsub.f32 0.0, %v3295_v29 }
 0x1cb   :  { %442 = vrot.lane.b32.xlu1 %v355_v46, %s3156_s0  ;;  %v369_v46 = vsel %vm365_vm3, %v360_v38, 0.0 }
 0x1cd   :  { %498 = vrot.lane.b32.xlu0 %v483_v47, %s3156_s0 }
 0x1cf   :  { %496 = vrot.lane.b32.xlu1 %v482_v48, %s3156_s0  ;;  %v431_v48 = vsub.f32 0.0, %v3290_v26 }
 0x1d1   :  { %448 = vrot.lane.b32.xlu0 %v358_v49, %s3156_s0 }
 0x1d3   :  { %446 = vrot.lane.b32.xlu1 %v357_v50, %s3156_s0 }
 0x1d5   :  { %502 = vrot.lane.b32.xlu0 %v485_v51, %s3156_s0 }
 0x1d7   :  { %500 = vrot.lane.b32.xlu1 %v484_v53, %s3156_s0  ;;  %v366_v53 = vsel %vm365_vm3, %v359_v44, 0.0  ;;  %s3164_s0 = smov 63  }
 0x1d9   :  { %1352 = vrot.lane.b32.xlu0 %v3317_v34, %s3159_s27 }
 0x1db   :  { %1346 = vrot.lane.b32.xlu1 %v3317_v34, %s3160_s8 }
 0x1dd   :  { %1401 = vrot.lane.b32.xlu0 %v41_v57, %s3155_s28 }
 0x1df   :  { %1358 = vrot.lane.b32.xlu1 %v3317_v34, %s3162_s9 }
 0x1e1   :  { %1342 = vrot.lane.b32.xlu0 %v3360_v58, %s3157_s22 }
 0x1e3   :  { %1403 = vrot.lane.b32.xlu1 %v42_v59, %s3155_s28  ;;  %v429_v59 = vsub.f32 0.0, %v3300_v30 }
 0x1e5   :  { %1354 = vrot.lane.b32.xlu0 %v3360_v58, %s3159_s27 }
 0x1e7   :  { %1348 = vrot.lane.b32.xlu1 %v3360_v58, %s3160_s8 }
 0x1e9   :  { %1405 = vrot.lane.b32.xlu0 %v43_v60, %s3155_s28 }
 0x1eb   :  { %1360 = vrot.lane.b32.xlu1 %v3360_v58, %s3162_s9 }
 0x1ed   :  { %1344 = vrot.lane.b32.xlu0 %v3378_v61, %s3157_s22 }
 0x1ef   :  { %1407 = vrot.lane.b32.xlu1 %v44_v62, %s3155_s28 }
 0x1f1   :  { %1356 = vrot.lane.b32.xlu0 %v3378_v61, %s3159_s27 }
 0x1f3   :  { %1350 = vrot.lane.b32.xlu1 %v3378_v61, %s3160_s8 }
 0x1f5   :  { %1409 = vrot.lane.b32.xlu0 %v45_v63, %s3155_s28 }
 0x1f7   :  { %1362 = vrot.lane.b32.xlu1 %v3378_v61, %s3162_s9 }
 0x1fb   :  { %1411 = vrot.lane.b32.xlu1 %v46_v0, %s3155_s28 }
 0x214   :  { %382 = vadd.xlane.f32.xlu0 %v381_v2 }
 0x218   :  { %379 = vadd.xlane.f32.xlu0 %v378_v7 }
 0x21f   :  { %376 = vadd.xlane.f32.xlu1 %v375_v10  ;;  %v427_v10 = vsub.f32 0.0, %v3309_v32 }
 0x233   :  { %v3408_v12 = vpop.permute.xlu0 %440 }
 0x235   :  { %v3410_v13 = vpop.permute.xlu1 %438 }
 0x237   :  { %v495_v14 = vpop.permute.xlu0 %494 }
 0x238   :  { %v513_v42 = vsel %vm365_vm3, %v495_v14, 0.0  ;;  %v456_v14 = vmul.f32 %v3410_v13, %v426_v1 }
 0x239   :  { %v493_v15 = vpop.permute.xlu1 %492 }
 0x23a   :  { %v510_v51 = vsel %vm365_vm3, %v493_v15, 0.0 }
 0x23b   :  { %v445_v16 = vpop.permute.xlu0 %444 }
 0x23c   :  { %v459_v3 = vmul.f32 %v445_v16, %v429_v59 }
 0x23d   :  { %v443_v17 = vpop.permute.xlu1 %442 }
 0x23e   :  { %v458_v62 = vmul.f32 %v443_v17, %v428_v55  ;;  %v471_v32 = vsel %vm365_vm3, %v459_v3, 0.0 }
 0x23f   :  { %v499_v18 = vpop.permute.xlu0 %498 }
 0x240   :  { %v519_v19 = vsel %vm365_vm3, %v499_v18, 0.0  ;;  %v468_v17 = vsel %vm365_vm3, %v458_v62, 0.0  ;;  %v457_v18 = vmul.f32 %v3408_v12, %v427_v10 }
 0x241   :  { %v497_v20 = vpop.permute.xlu1 %496  ;;  %520 = vadd.xlane.f32.xlu0 %v519_v19 }
 0x242   :  { %v516_v22 = vsel %vm365_vm3, %v497_v20, 0.0  ;;  %v462_v20 = vsel %vm365_vm3, %v456_v14, 0.0  ;;  %v465_v12 = vsel %vm365_vm3, %v457_v18, 0.0 }
 0x243   :  { %v449_v21 = vpop.permute.xlu0 %448 }
 0x244   :  { %v461_v29 = vmul.f32 %v449_v21, %v431_v48  ;;  %v3464_v48 = vpack.c.bf16 %v3245_v6, %v3261_v9 }
 0x245   :  { %v447_v23 = vpop.permute.xlu1 %446  ;;  %517 = vadd.xlane.f32.xlu0 %v516_v22 }
 0x246   :  { %v460_v49 = vmul.f32 %v447_v23, %v430_v45  ;;  %v477_v31 = vsel %vm365_vm3, %v461_v29, 0.0 }
 0x247   :  { %v503_v24 = vpop.permute.xlu0 %502 }
 0x248   :  { %v525_v25 = vsel %vm365_vm3, %v503_v24, 0.0  ;;  %v474_v0 = vsel %vm365_vm3, %v460_v49, 0.0 }
 0x249   :  { %526 = vadd.xlane.f32.xlu1 %v525_v25  ;;  %v501_v28 = vpop.permute.xlu1 %500 }
 0x24a   :  { %v522_v35 = vsel %vm365_vm3, %v501_v28, 0.0 }
 0x24b   :  { %v1353_v36 = vpop.permute.xlu0 %1352  ;;  %523 = vadd.xlane.f32.xlu0 %v522_v35 }
 0x24d   :  { %373 = vadd.xlane.f32.xlu1 %v372_v37  ;;  %v1347_v40 = vpop.permute.xlu1 %1346 }
 0x24e   :  { %v1376_v41 = vsel %vm1374_vm5, %v1367_v39, %v1347_v40 }
 0x24f   :  { %v1402_v43 = vpop.permute.xlu0 %1401  ;;  %514 = vadd.xlane.f32.xlu0 %v513_v42  ;;  %v1383_v34 = vsel %vm1381_vm6, %v1376_v41, %v1353_v36 }
 0x250   :  { %v1413_v56 = vrot.slane %v1402_v43, 4 }
 0x251   :  { %370 = vadd.xlane.f32.xlu1 %v369_v46  ;;  %v1359_v47 = vpop.permute.xlu1 %1358 }
 0x252   :  { %v1390_v50 = vsel %vm1388_vm7, %v1383_v34, %v1359_v47 }
 0x253   :  { %v1343_v52 = vpop.permute.xlu0 %1342  ;;  %511 = vadd.xlane.f32.xlu0 %v510_v51  ;;  %v2710_v57 = vcombine.low %v1390_v50, %v1390_v50  ;;  %v2711_v26 = vcombine.high %v1390_v50, %v1390_v50  ;;  %v3468_v51 = vpack.c.bf16 %v3228_v4, %v3235_v5 }
 0x254   :  { %v1370_v30 = vsel %vm1364_vm4, %v3360_v58, %v1343_v52 }
 0x255   :  { %367 = vadd.xlane.f32.xlu1 %v366_v53  ;;  %v1404_v60 = vpop.permute.xlu1 %1403  ;;  %v1446_v7 = vmul.bf16 %v2710_v57, %v1413_v56 }
 0x256   :  { %v1414_v63 = vrot.slane %v1404_v60, 4 }
 0x257   :  { %v1355_v2 = vpop.permute.xlu0 %1354  ;;  %475 = vadd.xlane.f32.xlu0 %v474_v0 }
 0x258   :  { %v1447_v8 = vmul.bf16 %v2711_v26, %v1414_v63 }
 0x259   :  { %478 = vadd.xlane.f32.xlu1 %v477_v31  ;;  %v1349_v11 = vpop.permute.xlu1 %1348 }
 0x25a   :  { %v2716_v15 = vcombine.low %v1446_v7, %v1447_v8  ;;  %v1378_v33 = vsel %vm1374_vm5, %v1370_v30, %v1349_v11 }
 0x25b   :  { %v1406_v16 = vpop.permute.xlu0 %1405  ;;  %469 = vadd.xlane.f32.xlu0 %v468_v17  ;;  %v1385_v58 = vsel %vm1381_vm6, %v1378_v33, %v1355_v2 }
 0x25c   :  { %2893 = vmatmul.mubr.msk.bf16.vlgmr.msra.gmra.mxu0 %vm1496_vm8, %v2716_v15  ;;  %v1415_v22 = vrot.slane %v1406_v16, 4 }
 0x25d   :  { %472 = vadd.xlane.f32.xlu1 %v471_v32  ;;  %v1361_v19 = vpop.permute.xlu1 %1360  ;;  %2896 = vmatprep.mubr.msk.bf16.mxu0 %vm3161_vm2, %v3158_v54 }
 0x25e   :  { %v1392_v13 = vsel %vm1388_vm7, %v1385_v58, %v1361_v19 }
 0x25f   :  { %v1345_v21 = vpop.permute.xlu0 %1344  ;;  %463 = vadd.xlane.f32.xlu0 %v462_v20  ;;  %v2712_v23 = vcombine.low %v1392_v13, %v1392_v13  ;;  %v2713_v25 = vcombine.high %v1392_v13, %v1392_v13  ;;  %v3163_v13 = vmov 64  }
 0x260   :  { %v1373_v36 = vsel %vm1364_vm4, %v3378_v61, %v1345_v21  ;;  %2999 = vset.pattern.permute.xlu1 %v3163_v13  ;;  %2998 = vset.pattern.permute.xlu0 %v3163_v13 }
 0x261   :  { %466 = vadd.xlane.f32.xlu1 %v465_v12  ;;  %v1408_v24 = vpop.permute.xlu1 %1407  ;;  %v1448_v28 = vmul.bf16 %v2712_v23, %v1415_v22 }
 0x262   :  { %v1416_v27 = vrot.slane %v1408_v24, 4 }
 0x263   :  { %v1357_v37 = vpop.permute.xlu0 %1356 }
 0x264   :  { %v1449_v35 = vmul.bf16 %v2713_v25, %v1416_v27 }
 0x265   :  { %v1351_v38 = vpop.permute.xlu1 %1350 }
 0x266   :  { %v2717_v39 = vcombine.low %v1448_v28, %v1449_v35  ;;  %v1380_v40 = vsel %vm1374_vm5, %v1373_v36, %v1351_v38 }
 0x267   :  { %v1387_v41 = vsel %vm1381_vm6, %v1380_v40, %v1357_v37  ;;  %v1410_v43 = vpop.permute.xlu0 %1409 }
 0x268   :  { %2897 = vmatmul.mubr.msk.bf16.gmra.mxu0 %vm1496_vm8, %v2717_v39  ;;  %v1417_v46 = vrot.slane %v1410_v43, 4 }
 0x269   :  { %v1363_v42 = vpop.permute.xlu1 %1362  ;;  %2900 = vmatprep.mubr.msk.bf16.mxu0 %vm3161_vm2, %v3158_v54 }
 0x26a   :  { %v1394_v44 = vsel %vm1388_vm7, %v1387_v41, %v1363_v42 }
 0x26b   :  { %v2714_v45 = vcombine.low %v1394_v44, %v1394_v44  ;;  %v2715_v61 = vcombine.high %v1394_v44, %v1394_v44 }
 0x26d   :  { %v1412_v34 = vpop.permute.xlu1 %1411  ;;  %v1450_v49 = vmul.bf16 %v2714_v45, %v1417_v46 }
 0x26e   :  { %v1418_v47 = vrot.slane %v1412_v34, 4 }
 0x270   :  { %v1451_v50 = vmul.bf16 %v2715_v61, %v1418_v47 }
 0x272   :  { %v2718_v52 = vcombine.low %v1450_v49, %v1451_v50  ;;  %1607 = vrot.lane.b32.xlu1 %v3464_v48, %s3157_s22 }
 0x274   :  { %2901 = vmatmul.mubr.msk.bf16.gmra.mxu0 %vm1496_vm8, %v2718_v52 }
 0x275   :  { %1609 = vrot.lane.b32.xlu0 %v3468_v51, %s3157_s22 }
 0x276   :  { %1611 = vrot.lane.b32.xlu1 %v3464_v48, %s3160_s8 }
 0x27a   :  { %1613 = vrot.lane.b32.xlu1 %v3468_v51, %s3160_s8 }
 0x29d   :  { %v383_v6 = vpop.xlane.xlu0 %382 }
 0x29e   :  { %3020 = vrsqrt.f32 %v383_v6  ;;  %vm421_vm9 = vcmp.eq.f32.partialorder %v383_v6, inf  ;;  %v424_v56 = vand.u32 2147483648, %v383_v6  ;;  %vm423_vm10 = vcmp.eq.f32.partialorder %v383_v6, 0.0 }
 0x2a1   :  { %v380_v9 = vpop.xlane.xlu0 %379 }
 0x2a2   :  { %3022 = vrsqrt.f32 %v380_v9  ;;  %vm414_vm11 = vcmp.eq.f32.partialorder %v380_v9, inf  ;;  %v417_v62 = vand.u32 2147483648, %v380_v9  ;;  %vm416_vm12 = vcmp.eq.f32.partialorder %v380_v9, 0.0 }
 0x2a8   :  { %v3479_v4 = vpop.xlane.xlu1 %376 }
 0x2a9   :  { %3024 = vrsqrt.f32 %v3479_v4  ;;  %vm407_vm13 = vcmp.eq.f32.partialorder %v3479_v4, inf  ;;  %v410_v30 = vand.u32 2147483648, %v3479_v4  ;;  %vm409_vm14 = vcmp.eq.f32.partialorder %v3479_v4, 0.0 }
 0x2ab   :  { %v3021_v5 = vpop.eup %3020 }
 0x2ac   :  { %v420_v54 = vmul.f32 %v3021_v5, %v383_v6 }
 0x2ae   :  { %v422_v55 = vsel %vm421_vm9, %v383_v6, %v420_v54 }
 0x2af   :  { %v3023_v53 = vpop.eup %3022  ;;  %v3482_v59 = vsel %vm423_vm10, %v424_v56, %v422_v55 }
 0x2b0   :  { %v413_v29 = vmul.f32 %v3023_v53, %v380_v9  ;;  %v2691_v26 = vadd.f32 -2.0, %v3482_v59  ;;  %v743_v2 = vmul.f32 %v3482_v59, %v3482_v59  ;;  %v2697_v3 = vadd.f32 -4.0, %v3482_v59 }
 0x2b2   :  { %v415_v60 = vsel %vm414_vm11, %v380_v9, %v413_v29  ;;  %v780_v7 = vmul.f32 %v2691_v26, %v2691_v26  ;;  %v749_v11 = vsub.f32 0.0, %v743_v2  ;;  %v816_v14 = vmul.f32 %v2697_v3, %v2697_v3 }
 0x2b3   :  { %v3486_v1 = vsel %vm416_vm12, %v417_v62, %v415_v60 }
 0x2b4   :  { %v2690_v8 = vadd.f32 -2.0, %v3486_v1  ;;  %v2696_v10 = vadd.f32 -4.0, %v3486_v1  ;;  %v742_v33 = vmul.f32 %v3486_v1, %v3486_v1  ;;  %v786_v16 = vsub.f32 0.0, %v780_v7 }
 0x2b5   :  { %v756_v20 = vmul.f32 0.8888889, %v749_v11  ;;  %v822_v21 = vsub.f32 0.0, %v816_v14  ;;  %v3520_v60 = vmul.f32 -0.1, %v3486_v1 }
 0x2b6   :  { %v3025_v57 = vpop.eup %3024  ;;  %v779_v18 = vmul.f32 %v2690_v8, %v2690_v8  ;;  %v815_v58 = vmul.f32 %v2696_v10, %v2696_v10  ;;  %v748_v24 = vsub.f32 0.0, %v742_v33  ;;  %v792_v35 = vmul.f32 0.8888889, %v786_v16 }
 0x2b7   :  { %v406_v63 = vmul.f32 %v3025_v57, %v3479_v4  ;;  %v828_v40 = vmul.f32 0.8888889, %v822_v21  ;;  %v767_v43 = vmul.f32 1.442695, %v756_v20  ;;  %v3517_v57 = vmul.f32 -0.2, %v3486_v1 }
 0x2b8   :  { %v785_v36 = vsub.f32 0.0, %v779_v18  ;;  %v821_v38 = vsub.f32 0.0, %v815_v58  ;;  %v755_v44 = vmul.f32 0.8888889, %v748_v24  ;;  %v803_v46 = vmul.f32 1.442695, %v792_v35 }
 0x2b9   :  { %v408_v31 = vsel %vm407_vm13, %v3479_v4, %v406_v63  ;;  %v839_v50 = vmul.f32 1.442695, %v828_v40  ;;  %v3526_v3 = vmul.f32 -0.01, %v3486_v1  ;;  %v3529_v8 = vmul.f32 -0.055, %v3486_v1 }
 0x2ba   :  { %v3499_v17 = vsel %vm409_vm14, %v410_v30, %v408_v31  ;;  %v791_v34 = vmul.f32 0.8888889, %v785_v36  ;;  %v827_v49 = vmul.f32 0.8888889, %v821_v38  ;;  %v3532_v31 = vmul.f32 0.0, %v3486_v1 }
 0x2bb   :  { %v741_v22 = vmul.f32 %v3499_v17, %v3499_v17  ;;  %v2689_v23 = vadd.f32 -2.0, %v3499_v17  ;;  %v2695_v25 = vadd.f32 -4.0, %v3499_v17  ;;  %v3536_v30 = vmul.f32 -0.2, %v3499_v17 }
 0x2bc   :  { %v801_v53 = vmul.f32 1.442695, %v791_v34  ;;  %v837_v56 = vmul.f32 1.442695, %v827_v49  ;;  %v3539_v11 = vmul.f32 -0.1, %v3499_v17 }
 0x2bd   :  { %v747_v41 = vsub.f32 0.0, %v741_v22  ;;  %v778_v42 = vmul.f32 %v2689_v23, %v2689_v23  ;;  %v814_v45 = vmul.f32 %v2695_v25, %v2695_v25  ;;  %v3545_v18 = vmul.f32 -0.05, %v3499_v17 }
 0x2bf   :  { %v754_v52 = vmul.f32 0.8888889, %v747_v41  ;;  %v820_v5 = vsub.f32 0.0, %v814_v45 }
 0x2c1   :  { %v763_v62 = vmul.f32 1.442695, %v754_v52 }
 0x2ca   :  { %v521_v0 = vpop.xlane.xlu0 %520 }
 0x2cb   :  { %v531_v54 = vmul.f32 %v521_v0, %v3479_v4  ;;  %v3523_v4 = vmul.f32 -0.05, %v3486_v1  ;;  %v826_v0 = vmul.f32 0.8888889, %v820_v5 }
 0x2cd   :  { %v537_v2 = vmax.f32 %v531_v54, 1e-12 }
 0x2ce   :  { %v518_v15 = vpop.xlane.xlu0 %517 }
 0x2d2   :  { %v527_v32 = vpop.xlane.xlu1 %526 }
 0x2d3   :  { %v533_v19 = vmul.f32 %v527_v32, %v383_v6  ;;  %v784_v6 = vsub.f32 0.0, %v778_v42  ;;  %v3547_v32 = vmul.f32 1.442695, %v826_v0 }
 0x2d4   :  { %v524_v12 = vpop.xlane.xlu0 %523 }
 0x2d5   :  { %v539_v27 = vmax.f32 %v533_v19, 1e-12  ;;  %v532_v28 = vmul.f32 %v524_v12, %v380_v9  ;;  %v765_v9 = vmul.f32 1.442695, %v755_v44  ;;  %v790_v26 = vmul.f32 0.8888889, %v784_v6 }
 0x2d6   :  { %v3505_v37 = vpop.xlane.xlu1 %373 }
 0x2d7   :  { %3026 = vrsqrt.f32 %v539_v27  ;;  %v538_v39 = vmax.f32 %v532_v28, 1e-12  ;;  %v530_v29 = vmul.f32 %v518_v15, %v3505_v37  ;;  %v799_v15 = vmul.f32 1.442695, %v790_v26 }
 0x2d8   :  { %3028 = vrsqrt.f32 %v3505_v37  ;;  %v515_v61 = vpop.xlane.xlu0 %514  ;;  %vm400_vm15 = vcmp.eq.f32.partialorder %v3505_v37, inf  ;;  %vm402_vm1 = vcmp.eq.f32.partialorder %v3505_v37, 0.0  ;;  %v403_v20 = vand.u32 2147483648, %v3505_v37 }
 0x2d9   :  { %3030 = vrsqrt.f32 %v538_v39  ;;  %v536_v7 = vmax.f32 %v530_v29, 1e-12 }
 0x2da   :  { %v3508_v47 = vpop.xlane.xlu1 %370 }
 0x2db   :  { %3032 = vrsqrt.f32 %v3508_v47  ;;  %v3542_v16 = vmul.f32 %v515_v61, %v3508_v47  ;;  %vm393_vm2 = vcmp.eq.f32.partialorder %v3508_v47, inf  ;;  %vm395_vm3 = vcmp.eq.f32.partialorder %v3508_v47, 0.0 }
 0x2dc   :  { %3034 = vpow2.f32 %v767_v43  ;;  %v512_v63 = vpop.xlane.xlu0 %511  ;;  %v396_v25 = vand.u32 2147483648, %v3508_v47 }
 0x2dd   :  { %3036 = vpow2.f32 %v803_v46  ;;  %v535_v27 = vmax.f32 %v3542_v16, 1e-12  ;;  %v3614_v16 = vmul.f32 -0.01, %v3499_v17 }
 0x2de   :  { %v3512_v55 = vpop.xlane.xlu1 %367 }
 0x2df   :  { %3038 = vrsqrt.f32 %v3512_v55  ;;  %v528_v10 = vmul.f32 %v512_v63, %v3512_v55  ;;  %vm386_vm7 = vcmp.eq.f32.partialorder %v3512_v55, inf  ;;  %vm388_vm8 = vcmp.eq.f32.partialorder %v3512_v55, 0.0 }
 0x2e0   :  { %3040 = vpow2.f32 %v839_v50  ;;  %v476_v21 = vpop.xlane.xlu0 %475  ;;  %v389_v44 = vand.u32 2147483648, %v3512_v55 }
 0x2e1   :  { %3042 = vpow2.f32 %v765_v9  ;;  %v534_v23 = vmax.f32 %v528_v10, 1e-12 }
 0x2e2   :  { %3044 = vpow2.f32 %v801_v53  ;;  %v479_v33 = vpop.xlane.xlu1 %478 }
 0x2e3   :  { %3046 = vpow2.f32 %v837_v56 }
 0x2e4   :  { %v3027_v14 = vpop.eup %3026  ;;  %3048 = vpow2.f32 %v763_v62 }
 0x2e5   :  { %v3029_v1 = vpop.eup %3028  ;;  %3050 = vrsqrt.f32 %v537_v2  ;;  %v3550_v58 = vmul.f32 %v3027_v14, %v479_v33 }
 0x2e6   :  { %v3031_v19 = vpop.eup %3030  ;;  %v399_v13 = vmul.f32 %v3029_v1, %v3505_v37  ;;  %3052 = vrsqrt.f32 %v536_v7 }
 0x2e7   :  { %v3557_v22 = vmul.f32 %v3031_v19, %v476_v21  ;;  %v4593_v41 = vclamps-f32 %v3550_v58, 1.0  ;;  %3054 = vrsqrt.f32 %v534_v23 }
 0x2e8   :  { %v3033_v12 = vpop.eup %3032  ;;  %v401_v24 = vsel %vm400_vm15, %v3505_v37, %v399_v13  ;;  %3056 = vpow2.f32 %v799_v15 }
 0x2e9   :  { %v3563_v28 = vsel %vm402_vm1, %v403_v20, %v401_v24  ;;  %v392_v35 = vmul.f32 %v3033_v12, %v3508_v47  ;;  %v4594_v36 = vclamps-f32 %v3557_v22, 1.0  ;;  %v3568_v38 = vpop.eup %3034  ;;  %3058 = vpow2.f32 %v3547_v32 }
 0x2ea   :  { %4617 = vst [vmem:[#allocation2_spill] sm:$0xff] %v3568_v38  ;;  %v740_v39 = vmul.f32 %v3563_v28, %v3563_v28  ;;  %v2688_v37 = vadd.f32 -2.0, %v3563_v28  ;;  %v2694_v40 = vadd.f32 -4.0, %v3563_v28  ;;  %v3575_v42 = vpop.eup %3036  ;;  %3060 = vrsqrt.f32 %v535_v27 }
 0x2eb   :  { %4618 = vst [vmem:[#allocation3_spill] sm:$0xff] %v3575_v42  ;;  %v394_v43 = vsel %vm393_vm2, %v3508_v47, %v392_v35  ;;  %v3583_v45 = vand.u32 2147483647, %v4594_v36  ;;  %v3600_v47 = vand.u32 2147483647, %v4593_v41 }
 0x2ec   :  { %v3039_v46 = vpop.eup %3038  ;;  %v746_v34 = vsub.f32 0.0, %v740_v39  ;;  %v777_v61 = vmul.f32 %v2688_v37, %v2688_v37  ;;  %v813_v49 = vmul.f32 %v2694_v40, %v2694_v40  ;;  %v3587_v50 = vsel %vm395_vm3, %v396_v25, %v394_v43 }
 0x2ed   :  { %v3589_v52 = vpop.eup %3040  ;;  %v739_v6 = vmul.f32 %v3587_v50, %v3587_v50  ;;  %v2687_v9 = vadd.f32 -2.0, %v3587_v50  ;;  %v2693_v5 = vadd.f32 -4.0, %v3587_v50  ;;  %v385_v54 = vmul.f32 %v3039_v46, %v3512_v55 }
 0x2ee   :  { %4619 = vst [vmem:[#allocation4_spill] sm:$0xff] %v3589_v52  ;;  %v3596_v53 = vpop.eup %3042  ;;  %v753_v29 = vmul.f32 0.8888889, %v746_v34  ;;  %v783_v56 = vsub.f32 0.0, %v777_v61  ;;  %v819_v62 = vsub.f32 0.0, %v813_v49  ;;  %v470_v34 = vpop.xlane.xlu0 %469  ;;  %v3629_v61 = vmul.f32 0.0, %v3499_v17 }
 0x2ef   :  { %v3602_v26 = vpop.eup %3044  ;;  %v745_v63 = vsub.f32 0.0, %v739_v6  ;;  %v776_v0 = vmul.f32 %v2687_v9, %v2687_v9  ;;  %v812_v2 = vmul.f32 %v2693_v5, %v2693_v5  ;;  %v387_v7 = vsel %vm386_vm7, %v3512_v55, %v385_v54 }
 0x2f0   :  { %v3607_v10 = vpop.eup %3046  ;;  %v789_v14 = vmul.f32 0.8888889, %v783_v56  ;;  %v3611_v33 = vsel %vm388_vm8, %v389_v44, %v387_v7  ;;  %v761_v19 = vmul.f32 1.442695, %v753_v29  ;;  %v574_v21 = vmul.f32 -0.0012624911, %v3583_v45 }
 0x2f1   :  { %4620 = vst [vmem:[#allocation5_spill] sm:$0xff] %v3611_v33  ;;  %v3616_v1 = vpop.eup %3048  ;;  %v782_v13 = vsub.f32 0.0, %v776_v0  ;;  %v738_v20 = vmul.f32 %v3611_v33, %v3611_v33  ;;  %v825_v15 = vmul.f32 0.8888889, %v819_v62  ;;  %v752_v12 = vmul.f32 0.8888889, %v745_v63  ;;  %v473_v62 = vpop.xlane.xlu1 %472 }
 0x2f2   :  { %v3051_v23 = vpop.eup %3050  ;;  %v2686_v55 = vadd.f32 -2.0, %v3611_v33  ;;  %v797_v25 = vmul.f32 1.442695, %v789_v14  ;;  %v818_v35 = vsub.f32 0.0, %v812_v2  ;;  %v575_v39 = vmul.f32 -0.0012624911, %v3600_v47 }
 0x2f3   :  { %v3053_v24 = vpop.eup %3052  ;;  %v788_v37 = vmul.f32 0.8888889, %v782_v13  ;;  %v744_v40 = vsub.f32 0.0, %v738_v20  ;;  %v2692_v44 = vadd.f32 -4.0, %v3611_v33  ;;  %3062 = vpow2.f32 %v761_v19 }
 0x2f4   :  { %v775_v43 = vmul.f32 %v2686_v55, %v2686_v55  ;;  %v580_v46 = vadd.f32 0.00667009, %v574_v21  ;;  %v3626_v32 = vmul.f32 -0.055, %v3499_v17  ;;  %v833_v49 = vmul.f32 1.442695, %v825_v15  ;;  %v3055_v63 = vpop.eup %3054 }
 0x2f5   :  { %v759_v6 = vmul.f32 1.442695, %v752_v12  ;;  %v811_v9 = vmul.f32 %v2692_v44, %v2692_v44  ;;  %v3631_v5 = vmul.f32 %v3053_v24, %v470_v34  ;;  %v658_v29 = vsub.f32 1.0, %v3583_v45  ;;  %v464_v44 = vpop.xlane.xlu0 %463  ;;  %v467_v36 = vpop.xlane.xlu1 %466 }
 0x2f6   :  { %v781_v27 = vsub.f32 0.0, %v775_v43  ;;  %v586_v54 = vmul.f32 %v580_v46, %v3583_v45  ;;  %v581_v56 = vadd.f32 0.00667009, %v575_v39  ;;  %3064 = vpow2.f32 %v797_v25 }
 0x2f7   :  { %v795_v0 = vmul.f32 1.442695, %v788_v37  ;;  %v824_v2 = vmul.f32 0.8888889, %v818_v35  ;;  %v751_v7 = vmul.f32 0.8888889, %v744_v40  ;;  %3066 = vpow2.f32 %v833_v49  ;;  %v3647_v37 = vpop.eup %3056 }
 0x2f8   :  { %v592_v14 = vadd.f32 -0.017088126, %v586_v54  ;;  %v3635_v17 = vmax.f32 %v658_v29, 0.0  ;;  %v587_v19 = vmul.f32 %v581_v56, %v3600_v47  ;;  %v659_v13 = vsub.f32 1.0, %v3600_v47 }
 0x2f9   :  { %v817_v20 = vsub.f32 0.0, %v811_v9  ;;  %v4592_v21 = vclamps-f32 %v3631_v5, 1.0  ;;  %v3640_v15 = vmul.f32 %v3051_v23, %v473_v62  ;;  %v787_v12 = vmul.f32 0.8888889, %v781_v27  ;;  %v3659_v9 = vpop.eup %3058 }
 0x2fa   :  { %v598_v55 = vmul.f32 %v592_v14, %v3583_v45  ;;  %3068 = vrsqrt.f32 %v3635_v17  ;;  %v3645_v24 = vmul.f32 -0.2, %v3482_v59  ;;  %v831_v25 = vmul.f32 1.442695, %v824_v2  ;;  %v3061_v56 = vpop.eup %3060 }
 0x2fb   :  { %3070 = vpow2.f32 %v759_v6  ;;  %v757_v35 = vmul.f32 1.442695, %v751_v7  ;;  %v593_v39 = vadd.f32 -0.017088126, %v587_v19  ;;  %v3649_v43 = vmax.f32 %v659_v13, 0.0 }
 0x2fc   :  { %4621 = vst [vmem:[#allocation6_spill] sm:$0xff] %v3645_v24  ;;  %3072 = vpow2.f32 %v795_v0  ;;  %v604_v40 = vadd.f32 0.03089188, %v598_v55  ;;  %v3653_v23 = vand.u32 2147483647, %v4592_v21  ;;  %v4591_v49 = vclamps-f32 %v3640_v15, 1.0 }
 0x2fd   :  { %v823_v46 = vmul.f32 0.8888889, %v817_v20  ;;  %v599_v34 = vmul.f32 %v593_v39, %v3600_v47  ;;  %v3657_v6 = vmul.f32 %v3055_v63, %v464_v44  ;;  %v793_v27 = vmul.f32 1.442695, %v787_v12 }
 0x2fe   :  { %v610_v54 = vmul.f32 %v604_v40, %v3583_v45  ;;  %3074 = vrsqrt.f32 %v3649_v43  ;;  %v3664_v29 = vmul.f32 -0.1, %v3482_v59  ;;  %v572_v0 = vmul.f32 -0.0012624911, %v3653_v23 }
 0x2ff   :  { %3076 = vpow2.f32 %v831_v25  ;;  %v605_v62 = vadd.f32 0.03089188, %v599_v34  ;;  %v656_v2 = vsub.f32 1.0, %v3653_v23  ;;  %v3670_v7 = vand.u32 2147483647, %v4591_v49 }
 0x300   :  { %4622 = vst [vmem:[#allocation7_spill] sm:$0xff] %v3664_v29  ;;  %3078 = vpow2.f32 %v757_v35  ;;  %v616_v63 = vadd.f32 -0.050174303, %v610_v54  ;;  %v4590_v14 = vclamps-f32 %v3657_v6, 1.0  ;;  %v3673_v19 = vpop.eup %3062  ;;  %v829_v13 = vmul.f32 1.442695, %v823_v46 }
 0x301   :  { %v611_v20 = vmul.f32 %v605_v62, %v3600_v47  ;;  %v578_v12 = vadd.f32 0.00667009, %v572_v0  ;;  %v3676_v55 = vmax.f32 %v656_v2, 0.0  ;;  %v573_v39 = vmul.f32 -0.0012624911, %v3670_v7 }
 0x302   :  { %v622_v25 = vmul.f32 %v616_v63, %v3583_v45  ;;  %v657_v35 = vsub.f32 1.0, %v3670_v7  ;;  %v3683_v40 = vand.u32 2147483647, %v4590_v14  ;;  %vm696_vm9 = vcmp.eq.f32.partialorder %v3635_v17, inf }
 0x303   :  { %v617_v44 = vadd.f32 -0.050174303, %v611_v20  ;;  %v584_v46 = vmul.f32 %v578_v12, %v3653_v23  ;;  %3080 = vrsqrt.f32 %v3676_v55  ;;  %v3688_v34 = vpop.eup %3064  ;;  %vm698_vm10 = vcmp.eq.f32.partialorder %v3635_v17, 0.0 }
 0x304   :  { %4623 = vst [vmem:[#allocation8_spill] sm:$0xff] %v3688_v34  ;;  %3082 = vpow2.f32 %v793_v27  ;;  %v628_v54 = vadd.f32 0.08897899, %v622_v25  ;;  %v699_v62 = vand.u32 2147483648, %v3635_v17  ;;  %v579_v0 = vadd.f32 0.00667009, %v573_v39  ;;  %v3696_v49 = vpop.eup %3066 }
 0x305   :  { %v623_v2 = vmul.f32 %v617_v44, %v3600_v47  ;;  %v590_v63 = vadd.f32 -0.017088126, %v584_v46  ;;  %v3693_v14 = vmax.f32 %v657_v35, 0.0  ;;  %v570_v20 = vmul.f32 -0.0012624911, %v3683_v40  ;;  %4624 = vst [vmem:[#allocation9_spill] sm:$0xff] %v3696_v49 }
 0x306   :  { %3084 = vpow2.f32 %v829_v13  ;;  %v634_v12 = vmul.f32 %v628_v54, %v3583_v45  ;;  %vm703_vm11 = vcmp.eq.f32.partialorder %v3649_v43, inf  ;;  %v585_v27 = vmul.f32 %v579_v0, %v3670_v7 }
 0x307   :  { %v3069_v25 = vpop.eup %3068  ;;  %v629_v21 = vadd.f32 0.08897899, %v623_v2  ;;  %vm705_vm12 = vcmp.eq.f32.partialorder %v3649_v43, 0.0  ;;  %v596_v39 = vmul.f32 %v590_v63, %v3653_v23  ;;  %3086 = vrsqrt.f32 %v3693_v14 }
 0x308   :  { %v654_v35 = vsub.f32 1.0, %v3683_v40  ;;  %v3705_v44 = vpop.eup %3070  ;;  %v640_v46 = vadd.f32 -0.2145988, %v634_v12  ;;  %v695_v13 = vmul.f32 %v3069_v25, %v3635_v17  ;;  %v706_v54 = vand.u32 2147483648, %v3649_v43 }
 0x309   :  { %v591_v41 = vadd.f32 -0.017088126, %v585_v27  ;;  %v3709_v0 = vpop.eup %3072  ;;  %v4625_v2 = vclamps-f32 %v3557_v22, 1.0  ;;  %v635_v63 = vmul.f32 %v629_v21, %v3600_v47  ;;  %v602_v52 = vadd.f32 0.03089188, %v596_v39 }
 0x30a   :  { %v576_v42 = vadd.f32 0.00667009, %v570_v20  ;;  %v3718_v29 = vmul.f32 %v3061_v56, %v467_v36  ;;  %v646_v12 = vmul.f32 %v640_v46, %v3583_v45  ;;  %v697_v27 = vsel %vm696_vm9, %v3635_v17, %v695_v13 }
 0x30b   :  { %vm3713_vm13 = vcmp.lt.f32.partialorder %v4625_v2, 0.0  ;;  %vm682_vm14 = vcmp.eq.f32.partialorder %v3676_v55, inf  ;;  %v597_v22 = vmul.f32 %v591_v41, %v3670_v7  ;;  %v3075_v25 = vpop.eup %3074  ;;  %v641_v2 = vadd.f32 -0.2145988, %v635_v63 }
 0x30c   :  { %v608_v24 = vmul.f32 %v602_v52, %v3653_v23  ;;  %v582_v21 = vmul.f32 %v576_v42, %v3683_v40  ;;  %v3728_v39 = vmax.f32 %v654_v35, 0.0  ;;  %v3730_v36 = vpop.eup %3076  ;;  %v652_v56 = vadd.f32 1.5707963, %v646_v12 }
 0x30d   :  { %v702_v45 = vmul.f32 %v3075_v25, %v3649_v43  ;;  %v4628_v20 = vclamps-f32 %v3550_v58, 1.0  ;;  %vm684_vm1 = vcmp.eq.f32.partialorder %v3676_v55, 0.0  ;;  %v603_v41 = vadd.f32 0.03089188, %v597_v22  ;;  %v3740_v13 = vpop.eup %3078 }
 0x30e   :  { %4631 = vst [vmem:[#allocation10_spill] sm:$0xff] %v3740_v13  ;;  %v700_v42 = vsel %vm698_vm10, %v699_v62, %v697_v27  ;;  %v647_v52 = vmul.f32 %v641_v2, %v3600_v47  ;;  %v614_v35 = vadd.f32 -0.050174303, %v608_v24  ;;  %v588_v63 = vadd.f32 -0.017088126, %v582_v21 }
 0x30f   :  { %vm3735_vm15 = vcmp.lt.f32.partialorder %v4628_v20, 0.0  ;;  %v712_v12 = vmul.f32 %v700_v42, %v652_v56  ;;  %v704_v58 = vsel %vm703_vm11, %v3649_v43, %v702_v45  ;;  %v685_v25 = vand.u32 2147483648, %v3676_v55 }
 0x310   :  { %v609_v20 = vmul.f32 %v603_v41, %v3670_v7  ;;  %v653_v38 = vadd.f32 1.5707963, %v647_v52  ;;  %v620_v22 = vmul.f32 %v614_v35, %v3653_v23  ;;  %v594_v13 = vmul.f32 %v588_v63, %v3683_v40  ;;  %v3081_v17 = vpop.eup %3080 }
 0x311   :  { %3088 = vrsqrt.f32 %v3728_v39  ;;  %v724_v47 = vsub.f32 3.1415927, %v712_v12  ;;  %v707_v24 = vsel %vm705_vm12, %v706_v54, %v704_v58  ;;  %v4601_v27 = vclamps-f32 %v3718_v29, 1.0  ;;  %v3756_v2 = vpop.eup %3082 }
 0x312   :  { %v615_v62 = vadd.f32 -0.050174303, %v609_v20  ;;  %4632 = vst [vmem:[#allocation11_spill] sm:$0xff] %v3756_v2  ;;  %v713_v21 = vmul.f32 %v707_v24, %v653_v38  ;;  %v626_v56 = vadd.f32 0.08897899, %v620_v22  ;;  %v681_v45 = vmul.f32 %v3081_v17, %v3676_v55 }
 0x313   :  { %v600_v41 = vadd.f32 0.03089188, %v594_v13  ;;  %v730_v42 = vsel %vm3713_vm13, %v724_v47, %v712_v12  ;;  %v3765_v43 = vand.u32 2147483647, %v4601_v27  ;;  %v3767_v54 = vpop.eup %3084  ;;  %vm689_vm2 = vcmp.eq.f32.partialorder %v3693_v14, inf }
 0x314   :  { %v621_v52 = vmul.f32 %v615_v62, %v3670_v7  ;;  %4633 = vst [vmem:[#allocation12_spill] sm:$0xff] %v3767_v54  ;;  %v3769_v63 = vmul.f32 57.29578, %v730_v42  ;;  %v725_v38 = vsub.f32 3.1415927, %v713_v21  ;;  %v632_v58 = vmul.f32 %v626_v56, %v3653_v23  ;;  %v3087_v13 = vpop.eup %3086 }
 0x315   :  { %v683_v33 = vsel %vm682_vm14, %v3676_v55, %v681_v45  ;;  %v606_v22 = vmul.f32 %v600_v41, %v3683_v40  ;;  %v3779_v17 = vmul.f32 -0.0012624911, %v3765_v43  ;;  %v688_v41 = vmul.f32 %v3087_v13, %v3693_v14 }
 0x316   :  { %v686_v12 = vsel %vm684_vm1, %v685_v25, %v683_v33  ;;  %v627_v20 = vadd.f32 0.08897899, %v621_v52  ;;  %v845_v47 = vmul.f32 %v3769_v63, %v3769_v63  ;;  %v2702_v24 = vadd.f32 -90.0, %v3769_v63 }
 0x317   :  { %v2708_v62 = vadd.f32 -180.0, %v3769_v63  ;;  %v731_v56 = vsel %vm3735_vm15, %v725_v38, %v713_v21  ;;  %v638_v25 = vadd.f32 -0.2145988, %v632_v58  ;;  %vm691_vm3 = vcmp.eq.f32.partialorder %v3693_v14, 0.0 }
 0x318   :  { %v3788_v55 = vmul.f32 57.29578, %v731_v56  ;;  %v633_v45 = vmul.f32 %v627_v20, %v3670_v7  ;;  %v851_v42 = vsub.f32 0.0, %v845_v47  ;;  %v882_v52 = vmul.f32 %v2702_v24, %v2702_v24 }
 0x319   :  { %v918_v33 = vmul.f32 %v2708_v62, %v2708_v62  ;;  %v612_v27 = vadd.f32 -0.050174303, %v606_v22  ;;  %v644_v38 = vmul.f32 %v638_v25, %v3653_v23  ;;  %v4635_v58 = vclamps-f32 %v3631_v5, 1.0 }
 0x31a   :  { %4634 = vst [vmem:[#allocation13_spill] sm:$0xff] %v3788_v55  ;;  %v846_v35 = vmul.f32 %v3788_v55, %v3788_v55  ;;  %v2703_v46 = vadd.f32 -90.0, %v3788_v55  ;;  %v2709_v21 = vadd.f32 -180.0, %v3788_v55  ;;  %v858_v13 = vmul.f32 0.00055555557, %v851_v42 }
 0x31b   :  { %vm3800_vm7 = vcmp.lt.f32.partialorder %v4635_v58, 0.0  ;;  %v888_v47 = vsub.f32 0.0, %v882_v52  ;;  %v924_v24 = vsub.f32 0.0, %v918_v33  ;;  %v639_v62 = vadd.f32 -0.2145988, %v633_v45 }
 0x31c   :  { %v852_v22 = vsub.f32 0.0, %v846_v35  ;;  %v883_v56 = vmul.f32 %v2703_v46, %v2703_v46  ;;  %v919_v54 = vmul.f32 %v2709_v21, %v2709_v21  ;;  %v650_v2 = vadd.f32 1.5707963, %v644_v38  ;;  %v3812_v42 = vpop.f32.mrf.mxu0 }
 0x31d   :  { %vm668_vm8 = vcmp.eq.f32.partialorder %v3728_v39, inf  ;;  %v868_v49 = vmul.f32 1.442695, %v858_v13  ;;  %v894_v55 = vmul.f32 0.00055555557, %v888_v47  ;;  %v645_v23 = vmul.f32 %v639_v62, %v3670_v7  ;;  %4641 = vst [vmem:[#allocation14_spill] sm:$0xff] %v3812_v42 }
 0x31e   :  { %v930_v34 = vmul.f32 0.00055555557, %v924_v24  ;;  %v4638_v5 = vclamps-f32 %v3640_v15, 1.0  ;;  %v3089_v45 = vpop.eup %3088  ;;  %v859_v35 = vmul.f32 0.00055555557, %v852_v22  ;;  %v889_v52 = vsub.f32 0.0, %v883_v56  ;;  %v2894_v7 = vpop.f32.mrf.mxu0 }
 0x31f   :  { %v925_v33 = vsub.f32 0.0, %v919_v54  ;;  %v710_v46 = vmul.f32 %v686_v12, %v650_v2  ;;  %vm670_vm10 = vcmp.eq.f32.partialorder %v3728_v39, 0.0  ;;  %3090 = vpow2.f32 %v868_v49 }
 0x320   :  { %vm3808_vm9 = vcmp.lt.f32.partialorder %v4638_v5, 0.0  ;;  %v904_v21 = vmul.f32 1.442695, %v894_v55  ;;  %v940_v38 = vmul.f32 1.442695, %v930_v34  ;;  %v690_v24 = vsel %vm689_vm2, %v3693_v14, %v688_v41  ;;  %v3823_v54 = vpop.f32.mrf.mxu0 }
 0x321   :  { %v651_v58 = vadd.f32 1.5707963, %v645_v23  ;;  %v870_v13 = vmul.f32 1.442695, %v859_v35  ;;  %v895_v15 = vmul.f32 0.00055555557, %v889_v52  ;;  %v618_v49 = vmul.f32 %v612_v27, %v3683_v40 }
 0x322   :  { %v931_v47 = vmul.f32 0.00055555557, %v925_v33  ;;  %3092 = vpow2.f32 %v904_v21  ;;  %v722_v62 = vsub.f32 3.1415927, %v710_v46  ;;  %v4642_v22 = vand.u32 2147483648, %v3693_v14  ;;  %4643 = vst [vmem:[#allocation15_spill] sm:$0xff] %v3823_v54  ;;  %v2895_v35 = vpop.f32.mrf.mxu0 }
 0x323   :  { %3094 = vpow2.f32 %v940_v38  ;;  %v906_v34 = vmul.f32 1.442695, %v895_v15  ;;  %v671_v55 = vand.u32 2147483648, %v3728_v39  ;;  %v624_v23 = vadd.f32 0.08897899, %v618_v49 }
 0x324   :  { %v693_v2 = vsel %vm691_vm3, %v4642_v22, %v690_v24  ;;  %v942_v56 = vmul.f32 1.442695, %v931_v47  ;;  %v728_v41 = vsel %vm3800_vm7, %v722_v62, %v710_v46  ;;  %v667_v5 = vmul.f32 %v3089_v45, %v3728_v39  ;;  %v3837_v46 = vpop.permute.xlu1 %1607 }
 0x325   :  { %v711_v12 = vmul.f32 %v693_v2, %v651_v58  ;;  %3096 = vpow2.f32 %v870_v13  ;;  %v3829_v14 = vmul.f32 57.29578, %v728_v41  ;;  %v577_v27 = vadd.f32 0.00667009, %v3779_v17 }
 0x326   :  { %3098 = vpow2.f32 %v906_v34  ;;  %v630_v33 = vmul.f32 %v624_v23, %v3683_v40  ;;  %v669_v21 = vsel %vm668_vm8, %v3728_v39, %v667_v5  ;;  %v655_v20 = vsub.f32 1.0, %v3765_v43 }
 0x327   :  { %v723_v52 = vsub.f32 3.1415927, %v711_v12  ;;  %v843_v45 = vmul.f32 %v3829_v14, %v3829_v14  ;;  %v2700_v38 = vadd.f32 -90.0, %v3829_v14  ;;  %v2706_v58 = vadd.f32 -180.0, %v3829_v14 }
 0x328   :  { %v636_v13 = vadd.f32 -0.2145988, %v630_v33  ;;  %v672_v15 = vsel %vm670_vm10, %v671_v55, %v669_v21  ;;  %v583_v47 = vmul.f32 %v577_v27, %v3765_v43  ;;  %v3850_v2 = vmax.f32 %v655_v20, 0.0  ;;  %v3857_v41 = vpop.f32.mrf.mxu0  ;;  %v1612_v21 = vpop.permute.xlu1 %1611 }
 0x329   :  { %v729_v17 = vsel %vm3808_vm9, %v723_v52, %v711_v12  ;;  %v849_v24 = vsub.f32 0.0, %v843_v45  ;;  %v880_v62 = vmul.f32 %v2700_v38, %v2700_v38  ;;  %v916_v22 = vmul.f32 %v2706_v58, %v2706_v58  ;;  %4644 = vst [vmem:[#allocation16_spill] sm:$0xff] %v3857_v41 }
 0x32a   :  { %v3845_v7 = vmul.f32 57.29578, %v729_v17  ;;  %v642_v12 = vmul.f32 %v636_v13, %v3683_v40  ;;  %v589_v5 = vadd.f32 -0.017088126, %v583_v47  ;;  %v2898_v20 = vpop.f32.mrf.mxu0  ;;  %3100 = vpow2.f32 %v942_v56 }
 0x32b   :  { %v856_v39 = vmul.f32 0.00055555557, %v849_v24  ;;  %v886_v55 = vsub.f32 0.0, %v880_v62  ;;  %v922_v23 = vsub.f32 0.0, %v916_v22  ;;  %3102 = vrsqrt.f32 %v3850_v2 }
 0x32c   :  { %v844_v49 = vmul.f32 %v3845_v7, %v3845_v7  ;;  %v2701_v34 = vadd.f32 -90.0, %v3845_v7  ;;  %v2707_v25 = vadd.f32 -180.0, %v3845_v7  ;;  %v648_v33 = vadd.f32 1.5707963, %v642_v12  ;;  %v3859_v45 = vpop.eup %3090  ;;  %v3862_v62 = vpop.f32.mrf.mxu0 }
 0x32d   :  { %v864_v38 = vmul.f32 1.442695, %v856_v39  ;;  %v892_v58 = vmul.f32 0.00055555557, %v886_v55  ;;  %v928_v17 = vmul.f32 0.00055555557, %v922_v23  ;;  %v595_v42 = vmul.f32 %v589_v5, %v3765_v43 }
 0x32e   :  { %v850_v35 = vsub.f32 0.0, %v844_v49  ;;  %v881_v52 = vmul.f32 %v2701_v34, %v2701_v34  ;;  %v917_v27 = vmul.f32 %v2707_v25, %v2707_v25  ;;  %v708_v24 = vmul.f32 %v672_v15, %v648_v33  ;;  %4645 = vst [vmem:[#allocation17_spill] sm:$0xff] %v3862_v62  ;;  %v2899_v55 = vpop.f32.mrf.mxu0 }
 0x32f   :  { %v3864_v47 = vpop.eup %3092  ;;  %v900_v22 = vmul.f32 1.442695, %v892_v58  ;;  %v936_v49 = vmul.f32 1.442695, %v928_v17  ;;  %v601_v34 = vadd.f32 0.03089188, %v595_v42  ;;  %3104 = vpow2.f32 %v864_v38 }
 0x330   :  { %v857_v40 = vmul.f32 0.00055555557, %v850_v35  ;;  %v887_v13 = vsub.f32 0.0, %v881_v52  ;;  %v923_v54 = vsub.f32 0.0, %v917_v27  ;;  %v3866_v25 = vpop.eup %3094  ;;  %v3870_v23 = vmul.f32 0.0, %v3482_v59  ;;  %v1610_v52 = vpop.permute.xlu0 %1609 }
 0x331   :  { %v720_v5 = vsub.f32 3.1415927, %v708_v24  ;;  %v607_v35 = vmul.f32 %v601_v34, %v3765_v43  ;;  %3106 = vpow2.f32 %v900_v22  ;;  %v4646_v42 = vclamps-f32 %v3657_v6, 1.0  ;;  %v1614_v27 = vpop.permute.xlu1 %1613 }
 0x332   :  { %v893_v12 = vmul.f32 0.00055555557, %v887_v13  ;;  %v929_v39 = vmul.f32 0.00055555557, %v923_v54  ;;  %v866_v15 = vmul.f32 1.442695, %v857_v40  ;;  %v3873_v56 = vpop.eup %3096  ;;  %3108 = vpow2.f32 %v936_v49 }
 0x333   :  { %vm714_vm11 = vcmp.lt.f32.partialorder %v4646_v42, 0.0  ;;  %v3878_v54 = vmul.f32 -0.05, %v3482_v59  ;;  %v3881_v33 = vmul.f32 -0.01, %v3482_v59  ;;  %v3883_v20 = vpop.eup %3098  ;;  %v1617_v6 = vsel %vm1364_vm4, %v3464_v48, %v3837_v46 }
 0x334   :  { %v902_v38 = vmul.f32 1.442695, %v893_v12  ;;  %v726_v58 = vsel %vm714_vm11, %v720_v5, %v708_v24  ;;  %v613_v17 = vadd.f32 -0.050174303, %v607_v35  ;;  %v3885_v40 = vmul.f32 1.442695, %v929_v39  ;;  %v3901_v35 = vpop.f32.mrf.mxu0 }
 0x335   :  { %v3887_v13 = vmul.f32 57.29578, %v726_v58  ;;  %v1620_v22 = vsel %vm1364_vm4, %v3468_v51, %v1610_v52  ;;  %3110 = vpow2.f32 %v866_v15  ;;  %v1622_v55 = vsel %vm1374_vm5, %v1617_v6, %v1612_v21  ;;  %4648 = vst [vmem:[#allocation19_spill] sm:$0xff] %v3901_v35 }
 0x336   :  { %v619_v34 = vmul.f32 %v613_v17, %v3765_v43  ;;  %v1624_v49 = vsel %vm1374_vm5, %v1620_v22, %v1614_v27  ;;  %v2724_v5 = vcombine.low %v1622_v55, %v1622_v55  ;;  %vm675_vm4 = vcmp.eq.f32.partialorder %v3850_v2, inf  ;;  %v2902_v58 = vpop.f32.mrf.mxu0 }
 0x337   :  { %4647 = vst [vmem:[#allocation18_spill] sm:$0xff] %v3887_v13  ;;  %v841_v24 = vmul.f32 %v3887_v13, %v3887_v13  ;;  %v2698_v12 = vadd.f32 -90.0, %v3887_v13  ;;  %v2704_v39 = vadd.f32 -180.0, %v3887_v13  ;;  %v678_v51 = vand.u32 2147483648, %v3850_v2  ;;  %v3922_v58 = vpop.eup %3100 }
 0x338   :  { %v625_v48 = vadd.f32 0.08897899, %v619_v34  ;;  %v2725_v46 = vcombine.high %v1622_v55, %v1622_v55  ;;  %v2726_v15 = vcombine.low %v1624_v49, %v1624_v49  ;;  %vm677_vm5 = vcmp.eq.f32.partialorder %v3850_v2, 0.0  ;;  %1635 = vrot.lane.b32.xlu0 %v2724_v5, %s3155_s28 }
 0x339   :  { %v847_v21 = vsub.f32 0.0, %v841_v24  ;;  %v878_v52 = vmul.f32 %v2698_v12, %v2698_v12  ;;  %v914_v42 = vmul.f32 %v2704_v39, %v2704_v39  ;;  %v2727_v27 = vcombine.high %v1624_v49, %v1624_v49  ;;  %v3915_v39 = vpop.f32.mrf.mxu0 }
 0x33a   :  { %v631_v17 = vmul.f32 %v625_v48, %v3765_v43  ;;  %1637 = vrot.lane.b32.xlu1 %v2725_v46, %s3155_s28  ;;  %v3910_v6 = vmul.f32 0.0, %v3769_v63  ;;  %v996_v22 = vmin.f32 %v3596_v53, %v3864_v47  ;;  %v1008_v34 = vmul.f32 -0.002, %v3769_v63  ;;  %4649 = vst [vmem:[#allocation20_spill] sm:$0xff] %v3915_v39 }
 0x33b   :  { %v854_v55 = vmul.f32 0.00055555557, %v847_v21  ;;  %v884_v24 = vsub.f32 0.0, %v878_v52  ;;  %v920_v12 = vsub.f32 0.0, %v914_v42  ;;  %v948_v49 = vmin.f32 %v3596_v53, %v3859_v45  ;;  %v2903_v21 = vpop.f32.mrf.mxu0  ;;  %v3103_v42 = vpop.eup %3102 }
 0x33c   :  { %3112 = vpow2.f32 %v902_v38  ;;  %v637_v5 = vadd.f32 -0.2145988, %v631_v17  ;;  %v966_v48 = vadd.f32 %v3910_v6, %v3517_v57  ;;  %v1014_v46 = vadd.f32 %v1008_v34, %v3520_v60  ;;  %1639 = vrot.lane.b32.xlu0 %v2726_v15, %s3155_s28 }
 0x33d   :  { %v860_v41 = vmul.f32 1.442695, %v854_v55  ;;  %v890_v62 = vmul.f32 0.00055555557, %v884_v24  ;;  %v926_v35 = vmul.f32 0.00055555557, %v920_v12  ;;  %v1038_v52 = vadd.f32 %v996_v22, %v948_v49  ;;  %v3934_v55 = vpop.eup %3104 }
 0x33e   :  { %v643_v39 = vmul.f32 %v637_v5, %v3765_v43  ;;  %v4650_v38 = vclamps-f32 %v3718_v29, 1.0  ;;  %1641 = vrot.lane.b32.xlu1 %v2727_v27, %s3155_s28  ;;  %v972_v57 = vadd.f32 1.0, %v966_v48  ;;  %v1020_v60 = vadd.f32 0.7, %v1014_v46  ;;  %v3939_v29 = vpop.eup %3106 }
 0x33f   :  { %v1056_v34 = vmul.f32 -0.001, %v3769_v63  ;;  %v896_v15 = vmul.f32 1.442695, %v890_v62  ;;  %v932_v24 = vmul.f32 1.442695, %v926_v35  ;;  %v674_v12 = vmul.f32 %v3103_v42, %v3850_v2  ;;  %v3942_v48 = vpop.eup %3108 }
 0x340   :  { %vm3928_vm12 = vcmp.lt.f32.partialorder %v4650_v38, 0.0  ;;  %v1044_v43 = vmin.f32 %v3596_v53, %v3866_v25  ;;  %v649_v5 = vadd.f32 1.5707963, %v643_v39  ;;  %v978_v21 = vmul.f32 %v972_v57, %v948_v49 }
 0x341   :  { %v1026_v38 = vmul.f32 %v1020_v60, %v996_v22  ;;  %v1062_v27 = vadd.f32 %v1056_v34, %v3523_v4  ;;  %3114 = vpow2.f32 %v3885_v40  ;;  %v676_v62 = vsel %vm675_vm4, %v3850_v2, %v674_v12  ;;  %v3955_v4 = vld [vmem:[%s4582_s1 + $0x28] sm:$0xff] }
 0x342   :  { %v1086_v35 = vadd.f32 %v1044_v43, %v1038_v52  ;;  %v1092_v46 = vmin.f32 %v3602_v26, %v3859_v45  ;;  %3116 = vpow2.f32 %v860_v41  ;;  %v679_v53 = vsel %vm677_vm5, %v678_v51, %v676_v62  ;;  %4653 = vst [vmem:[#allocation21_spill] sm:$0xff] %v3955_v4  ;;  %1488 = vrot.lane.b32.xlu1 %v3955_v4, %s3164_s0  ;;  %v3959_v39 = vpop.eup %3110 }
 0x343   :  { %v1032_v40 = vadd.f32 %v1026_v38, %v978_v21  ;;  %v1068_v22 = vadd.f32 0.275, %v1062_v27  ;;  %3118 = vpow2.f32 %v896_v15  ;;  %v709_v49 = vmul.f32 %v679_v53, %v649_v5  ;;  %v3969_v15 = vld [vmem:[%s4582_s1 + $0x20] sm:$0xff] }
 0x344   :  { %v1116_v52 = vadd.f32 %v1092_v46, %v1086_v35  ;;  %v1122_v2 = vmin.f32 %v3602_v26, %v3864_v47  ;;  %3120 = vpow2.f32 %v932_v24  ;;  %v1098_v51 = vadd.f32 0.4, %v1062_v27 }
 0x345   :  { %v1074_v41 = vmul.f32 %v1068_v22, %v1044_v43  ;;  %v1164_v42 = vmul.f32 -0.0002, %v3769_v63  ;;  %v721_v57 = vsub.f32 3.1415927, %v709_v49  ;;  %v1128_v60 = vadd.f32 0.25, %v1062_v27 }
 0x346   :  { %v1146_v34 = vadd.f32 %v1122_v2, %v1116_v52  ;;  %v1152_v12 = vmin.f32 %v3602_v26, %v3866_v25  ;;  %1486 = vrot.lane.b32.xlu1 %v3969_v15, %s3164_s0  ;;  %v1104_v24 = vmul.f32 %v1098_v51, %v1092_v46  ;;  %v1212_v21 = vmul.f32 0.0008, %v3769_v63 }
 0x347   :  { %v1080_v5 = vadd.f32 %v1074_v41, %v1032_v40  ;;  %v1170_v43 = vadd.f32 %v1164_v42, %v3526_v3  ;;  %v727_v38 = vsel %vm3928_vm12, %v721_v57, %v709_v49  ;;  %v1134_v27 = vmul.f32 %v1128_v60, %v1122_v2 }
 0x348   :  { %v1194_v62 = vadd.f32 %v1152_v12, %v1146_v34  ;;  %v1200_v26 = vmin.f32 %v3607_v10, %v3859_v45  ;;  %v733_v35 = vmul.f32 57.29578, %v727_v38  ;;  %v1218_v22 = vadd.f32 %v1212_v21, %v3529_v8  ;;  %v3990_v45 = vld [vmem:[%s4582_s1 + $0x18] sm:$0xff] }
 0x349   :  { %v1110_v53 = vadd.f32 %v1104_v24, %v1080_v5  ;;  %v1248_v40 = vmin.f32 %v3607_v10, %v3864_v47  ;;  %v3982_v46 = vpop.eup %3112  ;;  %v1176_v3 = vadd.f32 0.07, %v1170_v43  ;;  %v1272_v63 = vmin.f32 %v3607_v10, %v3866_v25  ;;  %4654 = vst [vmem:[#allocation22_spill] sm:$0xff] %v3990_v45 }
 0x34a   :  { %v1242_v52 = vadd.f32 %v1200_v26, %v1194_v62  ;;  %v951_v17 = vmul.f32 -0.2, %v3587_v50  ;;  %v842_v49 = vmul.f32 %v733_v35, %v733_v35  ;;  %v2699_v2 = vadd.f32 -90.0, %v733_v35  ;;  %1484 = vrot.lane.b32.xlu1 %v3990_v45, %s3164_s0 }
 0x34b   :  { %v2705_v41 = vadd.f32 -180.0, %v733_v35  ;;  %v1140_v8 = vadd.f32 %v1134_v27, %v1110_v53  ;;  %v1182_v47 = vmul.f32 %v1176_v3, %v1152_v12  ;;  %v1224_v51 = vadd.f32 0.2225, %v1218_v22 }
 0x34c   :  { %v1266_v42 = vadd.f32 %v1248_v40, %v1242_v52  ;;  %v999_v57 = vmul.f32 -0.1, %v3587_v50  ;;  %v848_v10 = vsub.f32 0.0, %v842_v49  ;;  %v879_v25 = vmul.f32 %v2699_v2, %v2699_v2 }
 0x34d   :  { %v915_v60 = vmul.f32 %v2705_v41, %v2705_v41  ;;  %v3995_v34 = vmul.f32 0.0, %v733_v35  ;;  %v1188_v5 = vadd.f32 %v1182_v47, %v1140_v8  ;;  %v1230_v24 = vmul.f32 %v1224_v51, %v1200_v26 }
 0x34e   :  { %v1308_v43 = vadd.f32 %v1272_v63, %v1266_v42  ;;  %v1005_v21 = vmul.f32 -0.002, %v733_v35  ;;  %v3997_v38 = vpop.eup %3114  ;;  %v855_v62 = vmul.f32 0.00055555557, %v848_v10  ;;  %v885_v4 = vsub.f32 0.0, %v879_v25 }
 0x34f   :  { %v921_v45 = vsub.f32 0.0, %v915_v60  ;;  %v1254_v27 = vmul.f32 %v1248_v40, %v1176_v3  ;;  %v3999_v12 = vpop.eup %3116  ;;  %v1236_v53 = vadd.f32 %v1230_v24, %v1188_v5  ;;  %v963_v22 = vadd.f32 %v3995_v34, %v951_v17 }
 0x350   :  { %4655 = vst [vmem:[#allocation23_spill] sm:$0xff] %v3999_v12  ;;  %3122 = vrcp.f32 %v1308_v43  ;;  %v1011_v52 = vadd.f32 %v1005_v21, %v999_v57  ;;  %v4002_v49 = vpop.eup %3118  ;;  %v862_v2 = vmul.f32 1.442695, %v855_v62  ;;  %v891_v41 = vmul.f32 0.00055555557, %v885_v4 }
 0x351   :  { %4656 = vst [vmem:[#allocation24_spill] sm:$0xff] %v4002_v49  ;;  %v927_v26 = vmul.f32 0.00055555557, %v921_v45  ;;  %v947_v8 = vmin.f32 %v3616_v1, %v3959_v39  ;;  %v4006_v47 = vpop.eup %3120  ;;  %v1260_v51 = vadd.f32 %v1254_v27, %v1236_v53  ;;  %v1284_v40 = vadd.f32 %v3532_v31, %v3910_v6 }
 0x352   :  { %4657 = vst [vmem:[#allocation25_spill] sm:$0xff] %v4006_v47  ;;  %v1047_v3 = vmul.f32 -0.05, %v3587_v50  ;;  %v1053_v42 = vmul.f32 -0.001, %v733_v35  ;;  %3124 = vpow2.f32 %v862_v2  ;;  %v4014_v45 = vadd.f32 1.0, %v963_v22 }
 0x353   :  { %v898_v17 = vmul.f32 1.442695, %v891_v41  ;;  %v934_v57 = vmul.f32 1.442695, %v927_v26  ;;  %v4012_v10 = vmul.f32 -0.055, %v3482_v59  ;;  %v1296_v4 = vmul.f32 %v1284_v40, %v1272_v63 }
 0x354   :  { %v4016_v25 = vadd.f32 0.7, %v1011_v52  ;;  %v1059_v60 = vadd.f32 %v1053_v42, %v1047_v3  ;;  %vm1326_vm13 = vcmp.gt.f32.partialorder %v3969_v15, 0.5  ;;  %v1155_v31 = vmul.f32 -0.01, %v3587_v50 }
 0x355   :  { %4658 = vst [vmem:[#allocation26_spill] sm:$0xff] %v4012_v10  ;;  %3126 = vpow2.f32 %v898_v17  ;;  %v1161_v6 = vmul.f32 -0.0002, %v733_v35  ;;  %v1209_v5 = vmul.f32 0.0008, %v733_v35  ;;  %v1302_v24 = vadd.f32 %v1296_v4, %v1260_v51 }
 0x356   :  { %3128 = vpow2.f32 %v934_v57  ;;  %v1203_v43 = vmul.f32 -0.055, %v3587_v50  ;;  %v1275_v59 = vmul.f32 0.0, %v3587_v50  ;;  %v4022_v21 = vadd.f32 0.275, %v1059_v60 }
 0x357   :  { %v1095_v63 = vadd.f32 0.4, %v1059_v60  ;;  %v4024_v62 = vadd.f32 0.25, %v1059_v60  ;;  %v4027_v27 = vmul.f32 0.0, %v3845_v7  ;;  %v995_v53 = vmin.f32 %v3616_v1, %v3982_v46 }
 0x358   :  { %v1007_v22 = vmul.f32 -0.002, %v3845_v7  ;;  %v1043_v35 = vmin.f32 %v3616_v1, %v3997_v38  ;;  %v1055_v52 = vmul.f32 -0.001, %v3845_v7  ;;  %v1167_v2 = vadd.f32 %v1161_v6, %v1155_v31 }
 0x359   :  { %v1215_v50 = vadd.f32 %v1209_v5, %v1203_v43  ;;  %v965_v41 = vadd.f32 %v4027_v27, %v3536_v30  ;;  %v1091_v26 = vmin.f32 %v3647_v37, %v3959_v39  ;;  %v1037_v40 = vadd.f32 %v995_v53, %v947_v8 }
 0x35a   :  { %v1013_v51 = vadd.f32 %v1007_v22, %v3539_v11  ;;  %v1061_v3 = vadd.f32 %v1055_v52, %v3545_v18  ;;  %v1121_v42 = vmin.f32 %v3647_v37, %v3982_v46  ;;  %v1151_v1 = vmin.f32 %v3647_v37, %v3997_v38 }
 0x35b   :  { %v971_v17 = vadd.f32 1.0, %v965_v41  ;;  %v1163_v57 = vmul.f32 -0.0002, %v3845_v7  ;;  %v1199_v30 = vmin.f32 %v3659_v9, %v3959_v39  ;;  %v1085_v31 = vadd.f32 %v1043_v35, %v1037_v40 }
 0x35c   :  { %v1019_v4 = vadd.f32 0.7, %v1013_v51  ;;  %v1067_v60 = vadd.f32 0.275, %v1061_v3  ;;  %v1097_v6 = vadd.f32 0.4, %v1061_v3 }
 0x35d   :  { %v3123_v11 = vpop.eup %3122  ;;  %v977_v5 = vmul.f32 %v971_v17, %v947_v8  ;;  %v1127_v43 = vadd.f32 0.25, %v1061_v3  ;;  %v1169_v18 = vadd.f32 %v1163_v57, %v3614_v16  ;;  %v1211_v22 = vmul.f32 0.0008, %v3845_v7 }
 0x35e   :  { %v1320_v52 = vmul.f32 %v3123_v11, %v1302_v24  ;;  %v1025_v41 = vmul.f32 %v1019_v4, %v995_v53  ;;  %v1073_v47 = vmul.f32 %v1067_v60, %v1043_v35  ;;  %v1103_v37 = vmul.f32 %v1097_v6, %v1091_v26 }
 0x35f   :  { %v1115_v49 = vadd.f32 %v1091_v26, %v1085_v31  ;;  %v1133_v13 = vmul.f32 %v1127_v43, %v1121_v42  ;;  %v1175_v12 = vadd.f32 0.07, %v1169_v18  ;;  %v1217_v39 = vadd.f32 %v1211_v22, %v3626_v32  ;;  %v3125_v51 = vpop.eup %3124 }
 0x360   :  { %v1332_v40 = vsel %vm1326_vm13, 1.0, %v1320_v52  ;;  %v1031_v10 = vadd.f32 %v1025_v41, %v977_v5  ;;  %v1247_v8 = vmin.f32 %v3659_v9, %v3982_v46  ;;  %v1271_v16 = vmin.f32 %v3659_v9, %v3997_v38 }
 0x361   :  { %1589 = vperm.xlu1 %2999, %v1332_v40   ;;  %v945_v7 = vmin.f32 %v3705_v44, %v3125_v51  ;;  %v1089_v24 = vmin.f32 %v3709_v0, %v3125_v51  ;;  %v1197_v53 = vmin.f32 %v3730_v36, %v3125_v51  ;;  %v1145_v35 = vadd.f32 %v1121_v42, %v1115_v49 }
 0x362   :  { %v3127_v32 = vpop.eup %3126  ;;  %v4061_v26 = vadd.f32 %v1275_v59, %v3995_v34  ;;  %v1079_v3 = vadd.f32 %v1073_v47, %v1031_v10  ;;  %v1181_v17 = vmul.f32 %v1175_v12, %v1151_v1  ;;  %v1253_v57 = vmul.f32 %v1247_v8, %v1175_v12 }
 0x363   :  { %v3129_v4 = vpop.eup %3128  ;;  %v993_v46 = vmin.f32 %v3705_v44, %v3127_v32  ;;  %v1119_v9 = vmin.f32 %v3709_v0, %v3127_v32  ;;  %v1173_v38 = vadd.f32 0.07, %v1167_v2  ;;  %v1221_v60 = vadd.f32 0.2225, %v1215_v50 }
 0x364   :  { %v975_v31 = vmul.f32 %v4014_v45, %v945_v7  ;;  %v1041_v6 = vmin.f32 %v3705_v44, %v3129_v4  ;;  %v1149_v49 = vmin.f32 %v3709_v0, %v3129_v4  ;;  %v1223_v42 = vadd.f32 0.2225, %v1217_v39 }
 0x365   :  { %v1023_v34 = vmul.f32 %v4016_v25, %v993_v46  ;;  %v1035_v59 = vadd.f32 %v993_v46, %v945_v7  ;;  %v1101_v47 = vmul.f32 %v1095_v63, %v1089_v24  ;;  %v1227_v10 = vmul.f32 %v1221_v60, %v1197_v53 }
 0x366   :  { %v1131_v12 = vmul.f32 %v4024_v62, %v1119_v9  ;;  %v1245_v11 = vmin.f32 %v3730_v36, %v3127_v32  ;;  %v1269_v5 = vmin.f32 %v3730_v36, %v3129_v4  ;;  %v1109_v2 = vadd.f32 %v1103_v37, %v1079_v3 }
 0x367   :  { %v1029_v50 = vadd.f32 %v1023_v34, %v975_v31  ;;  %v1071_v45 = vmul.f32 %v4022_v21, %v1041_v6  ;;  %v1083_v43 = vadd.f32 %v1041_v6, %v1035_v59  ;;  %v1193_v44 = vadd.f32 %v1151_v1, %v1145_v35 }
 0x368   :  { %v1179_v18 = vmul.f32 %v1173_v38, %v1149_v49  ;;  %v1139_v0 = vadd.f32 %v1133_v13, %v1109_v2  ;;  %v1229_v22 = vmul.f32 %v1223_v42, %v1199_v30  ;;  %v1283_v25 = vadd.f32 %v3629_v61, %v4027_v27 }
 0x369   :  { %v1077_v63 = vadd.f32 %v1071_v45, %v1029_v50  ;;  %v1113_v52 = vadd.f32 %v1089_v24, %v1083_v43  ;;  %v1241_v41 = vadd.f32 %v1199_v30, %v1193_v44  ;;  %v946_v62 = vmin.f32 %v3673_v19, %v3934_v55 }
 0x36a   :  { %v1187_v39 = vadd.f32 %v1181_v17, %v1139_v0  ;;  %v1295_v36 = vmul.f32 %v1283_v25, %v1271_v16  ;;  %v952_v37 = vmul.f32 -0.2, %v3563_v28  ;;  %v4079_v21 = vmul.f32 0.0, %v3829_v14 }
 0x36b   :  { %v1107_v1 = vadd.f32 %v1101_v47, %v1077_v63  ;;  %v1143_v51 = vadd.f32 %v1119_v9, %v1113_v52  ;;  %v1265_v13 = vadd.f32 %v1247_v8, %v1241_v41  ;;  %v994_v40 = vmin.f32 %v3673_v19, %v3939_v29 }
 0x36c   :  { %v1235_v61 = vadd.f32 %v1229_v22, %v1187_v39  ;;  %v964_v27 = vadd.f32 %v4079_v21, %v952_v37  ;;  %v1000_v30 = vmul.f32 -0.1, %v3563_v28  ;;  %v1006_v7 = vmul.f32 -0.002, %v3829_v14 }
 0x36d   :  { %v1137_v24 = vadd.f32 %v1131_v12, %v1107_v1  ;;  %v1191_v35 = vadd.f32 %v1149_v49, %v1143_v51  ;;  %v1307_v32 = vadd.f32 %v1271_v16, %v1265_v13  ;;  %v1036_v3 = vadd.f32 %v994_v40, %v946_v62 }
 0x36e   :  { %v1259_v17 = vadd.f32 %v1253_v57, %v1235_v61  ;;  %v970_v4 = vadd.f32 1.0, %v964_v27  ;;  %v1012_v46 = vadd.f32 %v1006_v7, %v1000_v30  ;;  %v1042_v8 = vmin.f32 %v3673_v19, %v3942_v48  ;;  %v4659_v57 = vld [vmem:[#allocation8_spill] sm:$0xff] }
 0x36f   :  { %v1185_v9 = vadd.f32 %v1179_v18, %v1137_v24  ;;  %v1239_v60 = vadd.f32 %v1197_v53, %v1191_v35  ;;  %3130 = vrcp.f32 %v1307_v32  ;;  %v1048_v31 = vmul.f32 -0.05, %v3563_v28 }
 0x370   :  { %v1301_v6 = vadd.f32 %v1295_v36, %v1259_v17  ;;  %v976_v42 = vmul.f32 %v970_v4, %v946_v62  ;;  %v1018_v34 = vadd.f32 0.7, %v1012_v46  ;;  %v1054_v59 = vmul.f32 -0.001, %v3829_v14  ;;  %v4660_v36 = vld [vmem:[#allocation9_spill] sm:$0xff] }
 0x371   :  { %v1251_v47 = vmul.f32 %v1245_v11, %v1173_v38  ;;  %v1263_v49 = vadd.f32 %v1245_v11, %v1239_v60  ;;  %v1084_v16 = vadd.f32 %v1042_v8, %v1036_v3  ;;  %v1090_v12 = vmin.f32 %v4659_v57, %v3934_v55 }
 0x372   :  { %v1024_v2 = vmul.f32 %v1018_v34, %v994_v40  ;;  %v1060_v50 = vadd.f32 %v1054_v59, %v1048_v31  ;;  %v1120_v19 = vmin.f32 %v4659_v57, %v3939_v29  ;;  %v1150_v53 = vmin.f32 %v4659_v57, %v3942_v48  ;;  %v4663_v31 = vld [vmem:[#allocation6_spill] sm:$0xff] }
 0x373   :  { %v1233_v45 = vadd.f32 %v1227_v10, %v1185_v9  ;;  %v1293_v43 = vmul.f32 %v4061_v26, %v1269_v5  ;;  %v1305_v44 = vadd.f32 %v1269_v5, %v1263_v49  ;;  %v1114_v18 = vadd.f32 %v1090_v12, %v1084_v16 }
 0x374   :  { %v1030_v0 = vadd.f32 %v1024_v2, %v976_v42  ;;  %v1066_v38 = vadd.f32 0.275, %v1060_v50  ;;  %v1096_v11 = vadd.f32 0.4, %v1060_v50  ;;  %v1126_v22 = vadd.f32 0.25, %v1060_v50 }
 0x375   :  { %3132 = vrcp.f32 %v1305_v44  ;;  %v1144_v25 = vadd.f32 %v1120_v19, %v1114_v18  ;;  %v1156_v63 = vmul.f32 -0.01, %v3563_v28  ;;  %v1162_v52 = vmul.f32 -0.0002, %v3829_v14 }
 0x376   :  { %v1072_v41 = vmul.f32 %v1066_v38, %v1042_v8  ;;  %v1102_v62 = vmul.f32 %v1096_v11, %v1090_v12  ;;  %v1132_v39 = vmul.f32 %v1126_v22, %v1120_v19  ;;  %v1198_v10 = vmin.f32 %v4660_v36, %v3934_v55  ;;  %v4111_v55 = vld [vmem:[%s4582_s1 + $0x8] sm:$0xff] }
 0x377   :  { %v1168_v37 = vadd.f32 %v1162_v52, %v1156_v63  ;;  %v1192_v26 = vadd.f32 %v1150_v53, %v1144_v25  ;;  %v1204_v5 = vmul.f32 -0.055, %v3563_v28  ;;  %v1210_v1 = vmul.f32 0.0008, %v3829_v14  ;;  %v4664_v19 = vld [vmem:[#allocation7_spill] sm:$0xff] }
 0x378   :  { %v1078_v51 = vadd.f32 %v1072_v41, %v1030_v0  ;;  %v1246_v13 = vmin.f32 %v4660_v36, %v3939_v29  ;;  %v1270_v40 = vmin.f32 %v4660_v36, %v3942_v48  ;;  %v1276_v61 = vmul.f32 0.0, %v3563_v28  ;;  %v4661_v29 = vld [vmem:[#allocation2_spill] sm:$0xff]  ;;  %v4662_v48 = vld [vmem:[#allocation13_spill] sm:$0xff]  ;;  %v4665_v0 = vld [vmem:[#allocation3_spill] sm:$0xff] }
 0x379   :  { %v1257_v27 = vadd.f32 %v1251_v47, %v1233_v45  ;;  %v1174_v30 = vadd.f32 0.07, %v1168_v37  ;;  %v1216_v7 = vadd.f32 %v1210_v1, %v1204_v5  ;;  %v1240_v24 = vadd.f32 %v1198_v10, %v1192_v26 }
 0x37a   :  { %vm1323_vm14 = vcmp.gt.f32.partialorder %v4111_v55, 0.5  ;;  %v1108_v14 = vadd.f32 %v1102_v62, %v1078_v51  ;;  %v1282_v35 = vadd.f32 %v1276_v61, %v4079_v21  ;;  %v949_v32 = vmin.f32 %v4661_v29, %v3873_v56 }
 0x37b   :  { %v961_v3 = vmul.f32 0.0, %v4662_v48  ;;  %v1180_v28 = vmul.f32 %v1174_v30, %v1150_v53  ;;  %v1222_v17 = vadd.f32 0.2225, %v1216_v7  ;;  %v1252_v4 = vmul.f32 %v1246_v13, %v1174_v30 }
 0x37c   :  { %v1264_v46 = vadd.f32 %v1246_v13, %v1240_v24  ;;  %v3131_v8 = vpop.eup %3130  ;;  %v1138_v9 = vadd.f32 %v1132_v39, %v1108_v14  ;;  %v1294_v60 = vmul.f32 %v1282_v35, %v1270_v40  ;;  %v997_v34 = vmin.f32 %v4661_v29, %v3883_v20  ;;  %v4666_v39 = vld [vmem:[#allocation4_spill] sm:$0xff] }
 0x37d   :  { %v967_v42 = vadd.f32 %v961_v3, %v4663_v31  ;;  %v4121_v59 = vmul.f32 %v3131_v8, %v1301_v6  ;;  %v1228_v21 = vmul.f32 %v1222_v17, %v1198_v10  ;;  %v1009_v49 = vmul.f32 -0.002, %v4662_v48  ;;  %v4667_v17 = vld [vmem:[#allocation26_spill] sm:$0xff]  ;;  %v4668_v31 = vld [vmem:[#allocation23_spill] sm:$0xff] }
 0x37e   :  { %v1306_v47 = vadd.f32 %v1270_v40, %v1264_v46  ;;  %v1186_v16 = vadd.f32 %v1180_v28, %v1138_v9  ;;  %v1039_v12 = vadd.f32 %v997_v34, %v949_v32  ;;  %v1045_v2 = vmin.f32 %v4661_v29, %v3922_v58 }
 0x37f   :  { %v973_v57 = vadd.f32 1.0, %v967_v42  ;;  %v1299_v50 = vadd.f32 %v1293_v43, %v1257_v27  ;;  %v1015_v53 = vadd.f32 %v1009_v49, %v4664_v19  ;;  %v1057_v45 = vmul.f32 -0.001, %v4662_v48  ;;  %v4669_v42 = vld [vmem:[#allocation10_spill] sm:$0xff] }
 0x380   :  { %3134 = vrcp.f32 %v1306_v47  ;;  %v1234_v44 = vadd.f32 %v1228_v21, %v1186_v16  ;;  %v1087_v6 = vadd.f32 %v1045_v2, %v1039_v12  ;;  %v1093_v38 = vmin.f32 %v4665_v0, %v3873_v56  ;;  %v4671_v21 = vld [vmem:[#allocation18_spill] sm:$0xff]  ;;  %v4672_v16 = vld [vmem:[#allocation24_spill] sm:$0xff] }
 0x381   :  { %v979_v18 = vmul.f32 %v973_v57, %v949_v32  ;;  %v1021_v11 = vadd.f32 0.7, %v1015_v53  ;;  %v1063_v22 = vadd.f32 %v1057_v45, %v3878_v54  ;;  %v1123_v25 = vmin.f32 %v4665_v0, %v3883_v20 }
 0x382   :  { %v1153_v43 = vmin.f32 %v4665_v0, %v3922_v58  ;;  %v3133_v63 = vpop.eup %3132  ;;  %v1258_v52 = vadd.f32 %v1252_v4, %v1234_v44  ;;  %v1117_v41 = vadd.f32 %v1093_v38, %v1087_v6  ;;  %v1165_v62 = vmul.f32 -0.0002, %v4662_v48  ;;  %v4673_v44 = vld [vmem:[#allocation25_spill] sm:$0xff] }
 0x383   :  { %v1201_v36 = vmin.f32 %v4666_v39, %v3873_v56  ;;  %v1317_v10 = vmul.f32 %v3133_v63, %v1299_v50  ;;  %v1027_v37 = vmul.f32 %v1021_v11, %v997_v34  ;;  %v1069_v26 = vadd.f32 0.275, %v1063_v22 }
 0x384   :  { %v1099_v5 = vadd.f32 0.4, %v1063_v22  ;;  %v1300_v1 = vadd.f32 %v1294_v60, %v1258_v52  ;;  %v1129_v54 = vadd.f32 0.25, %v1063_v22  ;;  %v1147_v51 = vadd.f32 %v1123_v25, %v1117_v41 }
 0x385   :  { %v1171_v13 = vadd.f32 %v1165_v62, %v3881_v33  ;;  %v1329_v40 = vsel %vm1323_vm14, 1.0, %v1317_v10  ;;  %v1033_v61 = vadd.f32 %v1027_v37, %v979_v18  ;;  %v1075_v27 = vmul.f32 %v1069_v26, %v1045_v2 }
 0x386   :  { %v1105_v30 = vmul.f32 %v1099_v5, %v1093_v38  ;;  %1574 = vperm.xlu1 %2999, %v1329_v40   ;;  %v1135_v7 = vmul.f32 %v1129_v54, %v1123_v25  ;;  %v1195_v14 = vadd.f32 %v1153_v43, %v1147_v51  ;;  %v1213_v56 = vmul.f32 0.0008, %v4662_v48  ;;  %v4153_v48 = vld [vmem:[%s4582_s1 + $0x10] sm:$0xff] }
 0x387   :  { %v1177_v24 = vadd.f32 0.07, %v1171_v13  ;;  %v1081_v35 = vadd.f32 %v1075_v27, %v1033_v61  ;;  %v1249_v29 = vmin.f32 %v4666_v39, %v3883_v20  ;;  %v1273_v32 = vmin.f32 %v4666_v39, %v3922_v58  ;;  %v4670_v58 = vld [vmem:[#allocation5_spill] sm:$0xff] }
 0x388   :  { %v1285_v33 = vadd.f32 %v3870_v23, %v961_v3  ;;  %v1219_v4 = vadd.f32 %v1213_v56, %v4667_v17  ;;  %v1243_v46 = vadd.f32 %v1201_v36, %v1195_v14  ;;  %v944_v34 = vmin.f32 %v4669_v42, %v4668_v31 }
 0x389   :  { %v1183_v28 = vmul.f32 %v1177_v24, %v1153_v43  ;;  %v1111_v8 = vadd.f32 %v1105_v30, %v1081_v35  ;;  %v1255_v9 = vmul.f32 %v1249_v29, %v1177_v24  ;;  %v950_v3 = vmul.f32 -0.2, %v4670_v58  ;;  %v4675_v24 = vld [vmem:[#allocation12_spill] sm:$0xff] }
 0x38a   :  { %v1297_v60 = vmul.f32 %v1285_v33, %v1273_v32  ;;  %1482 = vrot.lane.b32.xlu1 %v4153_v48, %s3164_s0  ;;  %v1225_v20 = vadd.f32 0.2225, %v1219_v4  ;;  %v1267_v23 = vadd.f32 %v1249_v29, %v1243_v46  ;;  %v956_v47 = vmul.f32 0.0, %v4671_v21 }
 0x38b   :  { %v1141_v49 = vadd.f32 %v1135_v7, %v1111_v8  ;;  %v992_v57 = vmin.f32 %v4669_v42, %v4672_v16  ;;  %v998_v12 = vmul.f32 -0.1, %v4670_v58  ;;  %v1004_v2 = vmul.f32 -0.002, %v4671_v21 }
 0x38c   :  { %v1231_v19 = vmul.f32 %v1225_v20, %v1201_v36  ;;  %v1309_v53 = vadd.f32 %v1273_v32, %v1267_v23  ;;  %v962_v45 = vadd.f32 %v956_v47, %v950_v3  ;;  %v1040_v18 = vmin.f32 %v4669_v42, %v4673_v44  ;;  %v4674_v36 = vld [vmem:[#allocation11_spill] sm:$0xff] }
 0x38d   :  { %v3135_v50 = vpop.eup %3134  ;;  %v1189_v0 = vadd.f32 %v1183_v28, %v1141_v49  ;;  %v1010_v38 = vadd.f32 %v1004_v2, %v998_v12  ;;  %v1034_v11 = vadd.f32 %v992_v57, %v944_v34  ;;  %v1046_v25 = vmul.f32 -0.05, %v4670_v58 }
 0x38e   :  { %v4165_v6 = vmul.f32 %v3135_v50, %v1300_v1  ;;  %1480 = vrot.lane.b32.xlu1 %v4111_v55, %s3164_s0  ;;  %3136 = vrcp.f32 %v1309_v53  ;;  %v968_v22 = vadd.f32 1.0, %v962_v45  ;;  %v1052_v43 = vmul.f32 -0.001, %v4671_v21 }
 0x38f   :  { %v1237_v63 = vadd.f32 %v1231_v19, %v1189_v0  ;;  %v1016_v52 = vadd.f32 0.7, %v1010_v38  ;;  %v1082_v41 = vadd.f32 %v1040_v18, %v1034_v11  ;;  %v1088_v10 = vmin.f32 %v4674_v36, %v4668_v31  ;;  %v4191_v0 = vld [vmem:[%s4586_s4] sm:$0xf]  ;;  %v4196_v38 = vld [vmem:[%s4586_s4 + $0x4] sm:$0xf] }
 0x390   :  { %v974_v62 = vmul.f32 %v968_v22, %v944_v34  ;;  %v1058_v39 = vadd.f32 %v1052_v43, %v1046_v25  ;;  %v1118_v37 = vmin.f32 %v4674_v36, %v4672_v16  ;;  %v1148_v1 = vmin.f32 %v4674_v36, %v4673_v44 }
 0x391   :  { %v1261_v26 = vadd.f32 %v1255_v9, %v1237_v63  ;;  %v1022_v5 = vmul.f32 %v1016_v52, %v992_v57  ;;  %v1154_v54 = vmul.f32 -0.01, %v4670_v58  ;;  %v1112_v40 = vadd.f32 %v1088_v10, %v1082_v41  ;;  %v4676_v41 = vld [vmem:[#allocation22_spill] sm:$0xff] }
 0x392   :  { %v1064_v51 = vadd.f32 0.275, %v1058_v39  ;;  %v1094_v13 = vadd.f32 0.4, %v1058_v39  ;;  %v1124_v61 = vadd.f32 0.25, %v1058_v39  ;;  %v1196_v14 = vmin.f32 %v4675_v24, %v4668_v31 }
 0x393   :  { %v1303_v27 = vadd.f32 %v1297_v60, %v1261_v26  ;;  %v1028_v30 = vadd.f32 %v1022_v5, %v974_v62  ;;  %v1160_v7 = vmul.f32 -0.0002, %v4671_v21  ;;  %v1142_v32 = vadd.f32 %v1118_v37, %v1112_v40  ;;  %v3002_v62 = vld [vmem:[%s4584_s5 + $0x18] ss:$0 sps:$4 sm:$0x11]  }
 0x394   :  { %v1070_v56 = vmul.f32 %v1064_v51, %v1040_v18  ;;  %v1100_v35 = vmul.f32 %v1094_v13, %v1088_v10  ;;  %v1130_v29 = vmul.f32 %v1124_v61, %v1118_v37  ;;  %v1202_v28 = vmul.f32 -0.055, %v4670_v58  ;;  %v3003_v10 = vld [vmem:[%s4584_s5 + $0x10] sm:$0xff]   ;;  %v4213_v37 = vld [vmem:[%s4586_s4 + $0xc] sm:$0xf]  ;;  %v4677_v13 = vld [vmem:[#allocation21_spill] sm:$0xff] }
 0x395   :  { %v1166_v33 = vadd.f32 %v1160_v7, %v1154_v54  ;;  %v1208_v17 = vmul.f32 0.0008, %v4671_v21  ;;  %v1244_v4 = vmin.f32 %v4675_v24, %v4672_v16  ;;  %v1190_v8 = vadd.f32 %v1148_v1, %v1142_v32  ;;  %v4218_v26 = vld [vmem:[%s4586_s4 + $0x8] sm:$0xf]  ;;  %v4241_v7 = vld [vmem:[%s4587_s2 + $0x18] sm:$0xff] }
 0x396   :  { %v1076_v46 = vadd.f32 %v1070_v56, %v1028_v30  ;;  %v1268_v9 = vmin.f32 %v4675_v24, %v4673_v44  ;;  %v1274_v60 = vmul.f32 0.0, %v4670_v58  ;;  %vm1325_vm15 = vcmp.gt.f32.partialorder %v4676_v41, 0.5  ;;  %v4236_v30 = vld [vmem:[%s4587_s2 + $0x10] sm:$0xff]  ;;  %1684 = vrot.lane.b32.xlu1 %v4241_v7, %s3166_s25  ;;  %v4248_v24 = vld [vmem:[%s4587_s2] sm:$0xff] }
 0x397   :  { %v1172_v31 = vadd.f32 0.07, %v1166_v33  ;;  %v1214_v42 = vadd.f32 %v1208_v17, %v1202_v28  ;;  %v1238_v20 = vadd.f32 %v1196_v14, %v1190_v8  ;;  %vm1696_vm1 = vcmask 1040384   ;;  %v4678_v8 = vld [vmem:[#allocation20_spill] sm:$0xff] }
 0x398   :  { %v1106_v34 = vadd.f32 %v1100_v35, %v1076_v46  ;;  %v1280_v23 = vadd.f32 %v1274_v60, %v956_v47  ;;  %2981 = vmatprep.subr.msk.bf16.mxu1 %vm1696_vm1, %v3002_v62  ;;  %v1331_v39 = vsel %vm1325_vm15, 1.0, %v4121_v59  ;;  %vm1324_vm2 = vcmp.gt.f32.partialorder %v4153_v48, 0.5 }
 0x399   :  { %v1178_v3 = vmul.f32 %v1172_v31, %v1148_v1  ;;  %v1220_v49 = vadd.f32 0.2225, %v1214_v42  ;;  %v1250_v57 = vmul.f32 %v1244_v4, %v1172_v31  ;;  %v1262_v21 = vadd.f32 %v1244_v4, %v1238_v20  ;;  %v4679_v42 = vld [vmem:[#allocation19_spill] sm:$0xff] }
 0x39a   :  { %v1136_v12 = vadd.f32 %v1130_v29, %v1106_v34  ;;  %v1292_v2 = vmul.f32 %v1280_v23, %v1268_v9  ;;  %v1698_v36 = vsel %vm1696_vm1, %v3002_v62, 0  ;;  %v1330_v1 = vsel %vm1324_vm2, 1.0, %v4165_v6 }
 0x39b   :  { %v3137_v50 = vpop.eup %3136  ;;  %v1226_v16 = vmul.f32 %v1220_v49, %v1196_v14  ;;  %v1304_v45 = vadd.f32 %v1268_v9, %v1262_v21  ;;  %2905 = vmatpush3.bf16.msra.mxu1 %v1698_v36  ;;  %vm1327_vm3 = vcmp.gt.f32.partialorder %v4677_v13, 0.5  ;;  %v4253_v14 = vld [vmem:[%s4587_s2 + $0x8] sm:$0xff]  ;;  %vm1749_vm8 = vcmask 392192  }
 0x39c   :  { %v1321_v19 = vmul.f32 %v3137_v50, %v1303_v27  ;;  %v1184_v53 = vadd.f32 %v1178_v3, %v1136_v12  ;;  %2906 = vmatprep.subr.bf16.mxu1 %v3003_v10  ;;  %v4228_v27 = vld [vmem:[%s4582_s1] sm:$0xff]  ;;  %1680 = vrot.lane.b32.xlu1 %v4253_v14, %s3166_s25  ;;  %v4680_v3 = vld [vmem:[#allocation17_spill] sm:$0xff]  ;;  %v4681_v12 = vld [vmem:[#allocation16_spill] sm:$0xff]  ;;  %vm1982_vm9 = vcmask 785408   ;;  %vm2449_vm4 = vcmask 64512  }
 0x39d   :  { %3138 = vrcp.f32 %v1304_v45  ;;  %vm1322_vm7 = vcmp.gt.f32.partialorder %v4228_v27, 0.5  ;;  %vm2615_vm5 = vcmask 1041409   ;;  %vm2626_vm12 = vcmask 1045509  }
 0x39e   :  { %v1232_v18 = vadd.f32 %v1226_v16, %v1184_v53  ;;  %v1333_v40 = vsel %vm1327_vm3, 1.0, %v1321_v19  ;;  %vm2617_vm13 = vcmask 1042434   ;;  %vm2619_vm14 = vcmask 1043459  }
 0x39f   :  { %2907 = vmatpush3.bf16.msra.mxu1 %v3003_v10  ;;  %vm2628_vm15 = vcmask 1046534   ;;  %vm2630_vm1 = vcmask 1047559   ;;  %vm2657_vm2 = vcmask 1043456   ;;  %vm2662_vm3 = vcmask 60416  }
 0x3a0   :  { %v1256_v44 = vadd.f32 %v1250_v57, %v1232_v18 }
 0x3a2   :  { %v1298_v58 = vadd.f32 %v1292_v2, %v1256_v44  ;;  %v4682_v2 = vld [vmem:[#allocation15_spill] sm:$0xff]  ;;  %v4683_v44 = vld [vmem:[#allocation14_spill] sm:$0xff] }
 0x3aa   :  { %v3139_v47 = vpop.eup %3138  ;;  %v1636_v11 = vpop.permute.xlu0 %1635 }
 0x3ab   :  { %v1316_v22 = vmul.f32 %v3139_v47, %v1298_v58  ;;  %v1647_v43 = vmul.bf16 %v1636_v11, %v4191_v0 }
 0x3ac   :  { %v1638_v25 = vpop.permute.xlu1 %1637 }
 0x3ad   :  { %v1648_v63 = vmul.bf16 %v1638_v25, %v4196_v38  ;;  %v1328_v6 = vsel %vm1322_vm7, 1.0, %v1316_v22 }
 0x3ae   :  { %v1640_v5 = vpop.permute.xlu0 %1639 }
 0x3af   :  { %v2728_v52 = vcombine.low %v1647_v43, %v1648_v63  ;;  %v1649_v51 = vmul.bf16 %v1640_v5, %v4218_v26 }
 0x3b0   :  { %v1642_v59 = vpop.permute.xlu1 %1641 }
 0x3b1   :  { %1661 = vrot.lane.b32.xlu0 %v2728_v52, %s3165_s12  ;;  %v1650_v54 = vmul.bf16 %v1642_v59, %v4213_v37 }
 0x3b3   :  { %v2729_v61 = vcombine.low %v1649_v51, %v1650_v54 }
 0x3b4   :  { %v1489_v56 = vpop.permute.xlu1 %1488 }
 0x3b5   :  { %1584 = vperm.xlu0 %2998, %v1331_v39   ;;  %v1564_v9 = vadd.f32 %v4678_v8, %v1489_v56 }
 0x3b8   :  { %v1487_v35 = vpop.permute.xlu1 %1486 }
 0x3b9   :  { %1579 = vperm.xlu0 %2998, %v1330_v1   ;;  %v1561_v34 = vadd.f32 %v4679_v42, %v1487_v35  ;;  %v3167_v42 = vmov 0  }
 0x3ba   :  { %2136 = vmatprep.subr.bf16.mxu0 %v3167_v42 }
 0x3bc   :  { %v1485_v32 = vpop.permute.xlu1 %1484 }
 0x3bd   :  { %1594 = vperm.xlu0 %2998, %v1333_v40   ;;  %v1556_v49 = vadd.f32 %v4680_v3, %v1485_v32  ;;  %v3010_v3 = vld [vmem:[%s4588_s6 + $0x8] sm:$0xff]  }
 0x3c1   :  { %1663 = vrot.lane.b32.xlu0 %v2729_v61, %s3165_s12 }
 0x3c5   :  { %1569 = vperm.xlu0 %2998, %v1328_v6  }
 0x3c9   :  { %1478 = vrot.lane.b32.xlu0 %v4228_v27, %s3164_s0 }
 0x3cd   :  { %1682 = vrot.lane.b32.xlu0 %v4236_v30, %s3166_s25 }
 0x3d1   :  { %1678 = vrot.lane.b32.xlu0 %v4248_v24, %s3166_s25  ;;  %s3168_s25 = smov 64  }
 0x3dc   :  { %v4258_v33 = vpop.permute.xlu1 %1589 }
 0x3dd   :  { %v1601_v57 = vmul.f32 %v4258_v33, %v1561_v34  ;;  %v3004_v34 = vld [vmem:[%s4588_s6 + $0x38] sm:$0xff]  }
 0x3de   :  { %2137 = vmatpush1.bf16.msra.mxu0 %v3004_v34 }
 0x3df   :  { %2138 = vmatprep.subr.bf16.mxu0 %v3167_v42 }
 0x401   :  { %v4260_v28 = vpop.permute.xlu1 %1574 }
 0x405   :  { %v1483_v46 = vpop.permute.xlu1 %1482 }
 0x406   :  { %v1553_v21 = vadd.f32 %v4681_v12, %v1483_v46  ;;  %v3012_v12 = vld [vmem:[%s4588_s6 + $0x48] sm:$0xff]  }
 0x409   :  { %v1481_v20 = vpop.permute.xlu1 %1480 }
 0x40a   :  { %v1548_v50 = vadd.f32 %v4682_v2, %v1481_v20  ;;  %v3005_v20 = vld [vmem:[%s4588_s6 + $0x30] sm:$0xff]  }
 0x40b   :  { %2139 = vmatpush1.bf16.msra.mxu0 %v3005_v20 }
 0x40c   :  { %v1598_v45 = vmul.f32 %v4260_v28, %v1548_v50  ;;  %2140 = vmatprep.subr.bf16.mxu0 %v3167_v42 }
 0x40d   :  { %v1685_v25 = vpop.permute.xlu1 %1684 }
 0x411   :  { %v1681_v52 = vpop.permute.xlu1 %1680 }
 0x423   :  { %v1662_v29 = vpop.permute.xlu0 %1661 }
 0x424   :  { %2908 = vmatprep.mubr.msk.bf16.mxu1 %vm1381_vm6, %v1662_v29 }
 0x430   :  { %v4262_v17 = vpop.permute.xlu0 %1584 }
 0x431   :  { %v1600_v16 = vmul.f32 %v4262_v17, %v1556_v49  ;;  %v3011_v49 = vld [vmem:[%s4588_s6] sm:$0xff]  }
 0x434   :  { %v4264_v4 = vpop.permute.xlu0 %1579 }
 0x435   :  { %v1599_v53 = vmul.f32 %v4264_v4, %v1553_v21  ;;  %v3013_v21 = vld [vmem:[%s4588_s6 + $0x78] sm:$0xff]  }
 0x438   :  { %v4267_v60 = vpop.permute.xlu0 %1594 }
 0x439   :  { %v1602_v31 = vmul.f32 %v4267_v60, %v1564_v9 }
 0x43b   :  { %2912 = vmatprep.subr.mxu1 %v1602_v31 }
 0x43c   :  { %v1664_v23 = vpop.permute.xlu0 %1663 }
 0x43d   :  { %2909 = vmatmul.mubr.msk.bf16.vlgmr.msra.gmra.mxu1 %vm1381_vm6, %v1664_v23  ;;  %v3009_v23 = vld [vmem:[%s4588_s6 + $0x10] sm:$0xff]   ;;  %vm1975_vm6 = vcmask 523264  }
 0x43e   :  { %2913 = vmatpush3.msra.mxu1 %v1602_v31  ;;  %2924 = vmatprep.mubr.msk.f32.mxu1 %vm1749_vm8, %v4248_v24 }
 0x43f   :  { %2914 = vmatprep.subr.mxu1 %v1601_v57 }
 0x440   :  { %2915 = vmatpush3.msra.mxu1 %v1601_v57  ;;  %v4279_v19 = vpop.permute.xlu0 %1569 }
 0x441   :  { %2916 = vmatprep.subr.mxu1 %v1600_v16 }
 0x442   :  { %2917 = vmatpush3.msra.mxu1 %v1600_v16 }
 0x443   :  { %2918 = vmatprep.subr.mxu1 %v1599_v53 }
 0x444   :  { %2919 = vmatpush3.msra.mxu1 %v1599_v53  ;;  %v1479_v18 = vpop.permute.xlu0 %1478 }
 0x445   :  { %2920 = vmatprep.subr.mxu1 %v1598_v45  ;;  %v1545_v58 = vadd.f32 %v4683_v44, %v1479_v18  ;;  %v3015_v18 = vld [vmem:[%s4588_s6 + $0x70] sm:$0xff]  }
 0x446   :  { %2921 = vmatpush3.msra.mxu1 %v1598_v45  ;;  %v3014_v45 = vld [vmem:[%s4588_s6 + $0x40] sm:$0xff]  }
 0x447   :  { %v1597_v47 = vmul.f32 %v4279_v19, %v1545_v58  ;;  %v3016_v58 = vld [vmem:[%s4588_s6 + $0x68] sm:$0xff]  }
 0x448   :  { %v1683_v43 = vpop.permute.xlu0 %1682 }
 0x449   :  { %2922 = vmatprep.subr.mxu1 %v1597_v47 }
 0x44a   :  { %2923 = vmatpush3.msra.mxu1 %v1597_v47 }
 0x44b   :  { %2925 = vmatmul.mubr.msk.f32.vlgmr.msra.gmra.mxu1 %vm1749_vm8, %v4253_v14 }
 0x44c   :  { %2927 = vmatprep.mubr.msk.f32.mxu1 %vm1749_vm8, %v4236_v30  ;;  %v1679_v39 = vpop.permute.xlu0 %1678 }
 0x44f   :  { %2928 = vmatmul.mubr.msk.f32.gmra.mxu1 %vm1749_vm8, %v4241_v7 }
 0x450   :  { %2938 = vmatprep.mubr.msk.f32.mxu1 %vm90_vm0, %v4228_v27 }
 0x4fd   :  { %v2910_v11 = vpop.f32.mrf.mxu1 }
 0x4fe   :  { %v1743_v61 = vadd.f32 %v2910_v11, %v1683_v43  ;;  %v3018_v43 = vld [vmem:[%s4588_s6 + $0x58] sm:$0xff]  }
 0x4ff   :  { %v1734_v22 = vpop.f32.mrf.mxu1 }
 0x500   :  { %v1735_v5 = vadd.f32 %v1734_v22, %v1679_v39  ;;  %v3148_v39 = vld [vmem:[%s4582_s1 + $0x18] sm:$0xff] }
 0x501   :  { %v2911_v63 = vpop.f32.mrf.mxu1 }
 0x502   :  { %v1746_v54 = vadd.f32 %v2911_v63, %v1685_v25  ;;  %v3017_v25 = vld [vmem:[%s4588_s6 + $0x60] sm:$0xff]   ;;  %v3019_v63 = vld [vmem:[%s4588_s6 + $0x50] sm:$0xff]  }
 0x503   :  { %v1737_v62 = vpop.f32.mrf.mxu1 }
 0x504   :  { %v1738_v36 = vadd.f32 %v1737_v62, %v1681_v52  ;;  %v3146_v52 = vld [vmem:[%s4582_s1 + $0x28] sm:$0xff]  ;;  %v3147_v62 = vld [vmem:[%s4582_s1 + $0x20] sm:$0xff] }
 0x50b   :  { %v2926_v10 = vpop.f32.mrf.mxu1 }
 0x50c   :  { %v1830_v59 = vadd.f32 %v2926_v10, %v1738_v36 }
 0x50d   :  { %v1824_v1 = vpop.f32.mrf.mxu1 }
 0x50e   :  { %v1825_v51 = vadd.f32 %v1824_v1, %v1735_v5  ;;  %v1844_v6 = vmax.f32 %v1830_v59, 0.0 }
 0x50f   :  { %v2929_v40 = vpop.f32.mrf.mxu1 }
 0x510   :  { %v1843_v56 = vmax.f32 %v1825_v51, 0.0  ;;  %v1840_v35 = vadd.f32 %v2929_v40, %v1746_v54  ;;  %v3149_v51 = vld [vmem:[%s4585_s3] sm:$0xff] }
 0x511   :  { %v1834_v29 = vpop.f32.mrf.mxu1 }
 0x512   :  { %v1846_v32 = vmax.f32 %v1840_v35, 0.0  ;;  %v1835_v46 = vadd.f32 %v1834_v29, %v1743_v61  ;;  %v4293_v8 = vpack.c.bf16 %v1844_v6, %v1843_v56  ;;  %v3150_v61 = vld [vmem:[%s4585_s3 + $0x8] sm:$0xff] }
 0x514   :  { %v1845_v9 = vmax.f32 %v1835_v46, 0.0  ;;  %2930 = vmatprep.subr.mxu1 %v1846_v32 }
 0x515   :  { %2931 = vmatpush3.msra.mxu1 %v1846_v32 }
 0x516   :  { %2932 = vmatprep.subr.mxu1 %v1845_v9  ;;  %v4295_v31 = vpack.c.bf16 %v1846_v32, %v1845_v9 }
 0x517   :  { %2933 = vmatpush3.msra.mxu1 %v1845_v9 }
 0x518   :  { %2934 = vmatprep.subr.mxu1 %v1844_v6 }
 0x519   :  { %2935 = vmatpush3.msra.mxu1 %v1844_v6 }
 0x51a   :  { %2936 = vmatprep.subr.mxu1 %v1843_v56 }
 0x51b   :  { %2937 = vmatpush3.msra.mxu1 %v1843_v56 }
 0x51c   :  { %2939 = vmatmul.mubr.msk.f32.vlgmr.msra.gmra.mxu1 %vm90_vm0, %v4111_v55  ;;  %2947 = vmatprep.subr.bf16.mxu1 %v3013_v21 }
 0x51d   :  { %2941 = vmatprep.mubr.msk.f32.mxu1 %vm90_vm0, %v4153_v48  ;;  %2948 = vmatpush3.bf16.msra.mxu1 %v3013_v21 }
 0x51e   :  { %2949 = vmatprep.subr.bf16.mxu1 %v3015_v18 }
 0x520   :  { %2942 = vmatmul.mubr.msk.f32.gmra.mxu1 %vm90_vm0, %v4676_v41  ;;  %v3007_v41 = vld [vmem:[%s4588_s6 + $0x20] sm:$0xff]  }
 0x521   :  { %2944 = vmatprep.mubr.msk.f32.mxu1 %vm90_vm0, %v3969_v15  ;;  %v3006_v15 = vld [vmem:[%s4588_s6 + $0x28] sm:$0xff]   ;;  %2950 = vmatpush3.bf16.msra.mxu1 %v3015_v18 }
 0x522   :  { %2141 = vmatpush1.bf16.msra.mxu0 %v3006_v15  ;;  %2951 = vmatprep.subr.bf16.mxu1 %v3016_v58 }
 0x523   :  { %2142 = vmatprep.subr.bf16.mxu0 %v3167_v42 }
 0x524   :  { %2945 = vmatmul.mubr.msk.f32.gmra.mxu1 %vm90_vm0, %v4677_v13  ;;  %v3008_v13 = vld [vmem:[%s4588_s6 + $0x18] sm:$0xff]  }
 0x525   :  { %2952 = vmatpush3.bf16.msra.mxu1 %v3016_v58  ;;  %v3153_v58 = vld [vmem:[%s4585_s3 + $0x20] sm:$0xff] }
 0x526   :  { %2143 = vmatpush1.bf16.msra.mxu0 %v3007_v41  ;;  %2953 = vmatprep.subr.bf16.mxu1 %v3017_v25 }
 0x527   :  { %2144 = vmatprep.subr.bf16.mxu0 %v3167_v42 }
 0x529   :  { %2954 = vmatpush3.bf16.msra.mxu1 %v3017_v25 }
 0x52a   :  { %2145 = vmatpush1.bf16.msra.mxu0 %v3008_v13  ;;  %2955 = vmatprep.subr.bf16.mxu1 %v3018_v43  ;;  %v3151_v13 = vld [vmem:[%s4585_s3 + $0x10] sm:$0xff] }
 0x52b   :  { %2146 = vmatprep.subr.bf16.mxu0 %v3167_v42 }
 0x52d   :  { %2956 = vmatpush3.bf16.msra.mxu1 %v3018_v43 }
 0x52e   :  { %2147 = vmatpush1.bf16.msra.mxu0 %v3009_v23  ;;  %2957 = vmatprep.subr.bf16.mxu1 %v3019_v63 }
 0x52f   :  { %2148 = vmatprep.subr.bf16.mxu0 %v3167_v42 }
 0x531   :  { %2958 = vmatpush3.bf16.msra.mxu1 %v3019_v63 }
 0x532   :  { %2149 = vmatpush1.bf16.msra.mxu0 %v3010_v3  ;;  %v3152_v3 = vld [vmem:[%s4585_s3 + $0x18] sm:$0xff] }
 0x533   :  { %2150 = vmatprep.subr.bf16.mxu0 %v3167_v42 }
 0x536   :  { %2151 = vmatpush1.bf16.msra.mxu0 %v3011_v49 }
 0x537   :  { %2164 = vmatprep.subr.bf16.mxu0 %v3167_v42 }
 0x53a   :  { %2165 = vmatpush2.bf16.msra.mxu0 %v3012_v12 }
 0x53b   :  { %2166 = vmatprep.subr.bf16.mxu0 %v3167_v42 }
 0x53e   :  { %2167 = vmatpush2.bf16.msra.mxu0 %v3014_v45 }
 0x5dc   :  { %v2940_v57 = vpop.f32.mrf.mxu1 }
 0x5de   :  { %v1913_v2 = vpop.f32.mrf.mxu1 }
 0x5df   :  { %v4337_v50 = vpack.c.bf16 %v2940_v57, %v1913_v2 }
 0x5e0   :  { %v2943_v16 = vpop.f32.mrf.mxu1 }
 0x5e1   :  { %1954 = vrot.lane.b32.xlu0 %v4337_v50, %s3168_s25  ;;  %1948 = vrot.lane.b32.xlu1 %v4337_v50, %s3165_s12 }
 0x5e2   :  { %v1923_v53 = vpop.f32.mrf.mxu1 }
 0x5e3   :  { %v4349_v44 = vpack.c.bf16 %v2943_v16, %v1923_v53 }
 0x5e4   :  { %v2946_v47 = vpop.f32.mrf.mxu1 }
 0x5e5   :  { %1960 = vrot.lane.b32.xlu1 %v4337_v50, %s3155_s28  ;;  %1950 = vrot.lane.b32.xlu0 %v4349_v44, %s3165_s12 }
 0x5e6   :  { %v1933_v11 = vpop.f32.mrf.mxu1 }
 0x5e7   :  { %v4362_v22 = vpack.c.bf16 %v2946_v47, %v1933_v11  ;;  %v3154_v11 = vld [vmem:[%s4585_s3 + $0x28] sm:$0xff] }
 0x5e9   :  { %1956 = vrot.lane.b32.xlu1 %v4349_v44, %s3168_s25  ;;  %1962 = vrot.lane.b32.xlu0 %v4349_v44, %s3155_s28 }
 0x5ed   :  { %1958 = vrot.lane.b32.xlu0 %v4362_v22, %s3168_s25  ;;  %1952 = vrot.lane.b32.xlu1 %v4362_v22, %s3165_s12 }
 0x5f1   :  { %2203 = vrot.lane.b32.xlu0 %v4293_v8, %s3165_s12  ;;  %1964 = vrot.lane.b32.xlu1 %v4362_v22, %s3155_s28  ;;  %s3169_s28 = smov 31  }
 0x5f5   :  { %2207 = vrot.lane.b32.xlu0 %v4293_v8, %s3168_s25  ;;  %2205 = vrot.lane.b32.xlu1 %v4295_v31, %s3165_s12  ;;  %s3170_s12 = smov 48  }
 0x5f9   :  { %2209 = vrot.lane.b32.xlu1 %v4295_v31, %s3168_s25  ;;  %2119 = vrot.lane.b32.xlu0 %v3146_v52, %s3169_s28 }
 0x5fd   :  { %2117 = vrot.lane.b32.xlu1 %v3147_v62, %s3169_s28  ;;  %2115 = vrot.lane.b32.xlu0 %v3148_v39, %s3169_s28 }
 0x601   :  { %2113 = vrot.lane.b32.xlu1 %v4153_v48, %s3169_s28  ;;  %2111 = vrot.lane.b32.xlu0 %v4111_v55, %s3169_s28 }
 0x605   :  { %2109 = vrot.lane.b32.xlu1 %v4228_v27, %s3169_s28  ;;  %2285 = vrot.lane.b32.xlu0 %v4248_v24, %s3170_s12 }
 0x609   :  { %2289 = vrot.lane.b32.xlu0 %v4236_v30, %s3170_s12  ;;  %2287 = vrot.lane.b32.xlu1 %v4253_v14, %s3170_s12 }
 0x60d   :  { %2291 = vrot.lane.b32.xlu1 %v4241_v7, %s3170_s12 }
 0x653   :  { %v1955_v36 = vpop.permute.xlu0 %1954  ;;  %v1949_v10 = vpop.permute.xlu1 %1948 }
 0x654   :  { %v1968_v5 = vsel %vm90_vm0, %v4337_v50, %v1949_v10 }
 0x655   :  { %v1977_v55 = vsel %vm1975_vm6, %v1968_v5, %v1955_v36 }
 0x657   :  { %v1961_v48 = vpop.permute.xlu1 %1960  ;;  %v1951_v27 = vpop.permute.xlu0 %1950 }
 0x658   :  { %v1984_v59 = vsel %vm1982_vm9, %v1977_v55, %v1961_v48  ;;  %v1971_v56 = vsel %vm90_vm0, %v4349_v44, %v1951_v27 }
 0x659   :  { %v2744_v1 = vcombine.low %v1984_v59, %v4337_v50  ;;  %v2745_v54 = vcombine.high %v1984_v59, %v4337_v50 }
 0x65b   :  { %v2016_v40 = vmul.bf16 %v3149_v51, %v2744_v1  ;;  %v2017_v6 = vmul.bf16 %v3150_v61, %v2745_v54  ;;  %v1957_v35 = vpop.permute.xlu1 %1956  ;;  %v1963_v29 = vpop.permute.xlu0 %1962 }
 0x65c   :  { %v1979_v32 = vsel %vm1975_vm6, %v1971_v56, %v1957_v35 }
 0x65d   :  { %v2750_v46 = vcombine.low %v2016_v40, %v2017_v6  ;;  %v2751_v9 = vcombine.high %v2016_v40, %v2017_v6  ;;  %v1986_v42 = vsel %vm1982_vm9, %v1979_v32, %v1963_v29 }
 0x65e   :  { %v2746_v34 = vcombine.low %v1986_v42, %v4349_v44  ;;  %v2747_v20 = vcombine.high %v1986_v42, %v4349_v44 }
 0x65f   :  { %2766 = vmatprep.mubr.msk.bf16.mxu0 %vm90_vm0, %v2751_v9  ;;  %v1959_v15 = vpop.permute.xlu0 %1958  ;;  %v1953_v41 = vpop.permute.xlu1 %1952 }
 0x660   :  { %v2018_v23 = vmul.bf16 %v3151_v13, %v2746_v34  ;;  %v2019_v49 = vmul.bf16 %v3152_v3, %v2747_v20  ;;  %v1974_v57 = vsel %vm90_vm0, %v4362_v22, %v1953_v41  ;;  %2169 = vmatmul.mubr.bf16.vlgmr.msra.gmra.mxu0 %v2750_v46 }
 0x661   :  { %v1981_v2 = vsel %vm1975_vm6, %v1974_v57, %v1959_v15 }
 0x662   :  { %v2753_v12 = vcombine.high %v2018_v23, %v2019_v49  ;;  %v2752_v18 = vcombine.low %v2018_v23, %v2019_v49 }
 0x663   :  { %v2204_v21 = vpop.permute.xlu0 %2203  ;;  %v1965_v50 = vpop.permute.xlu1 %1964 }
 0x664   :  { %v1988_v16 = vsel %vm1982_vm9, %v1981_v2, %v1965_v50  ;;  %2767 = vmatprep.mubr.msk.bf16.mxu0 %vm90_vm0, %v2753_v12  ;;  %v2213_v44 = vsel %vm90_vm0, %v4293_v8, %v2204_v21 }
 0x665   :  { %v2748_v53 = vcombine.low %v1988_v16, %v4362_v22  ;;  %v2749_v45 = vcombine.high %v1988_v16, %v4362_v22 }
 0x667   :  { %v2020_v47 = vmul.bf16 %v3153_v58, %v2748_v53  ;;  %v2021_v25 = vmul.bf16 %v3154_v11, %v2749_v45  ;;  %v2208_v43 = vpop.permute.xlu0 %2207  ;;  %v2206_v63 = vpop.permute.xlu1 %2205 }
 0x668   :  { %v2218_v52 = vsel %vm1975_vm6, %v2213_v44, %v2208_v43  ;;  %2177 = vmatmul.mubr.bf16.gmra.mxu0 %v2752_v18  ;;  %v2216_v10 = vsel %vm90_vm0, %v4295_v31, %v2206_v63 }
 0x669   :  { %v2755_v22 = vcombine.high %v2020_v47, %v2021_v25  ;;  %v2769_v62 = vcombine.low %v2218_v52, %v2218_v52  ;;  %v2770_v39 = vcombine.high %v2218_v52, %v2218_v52  ;;  %v2754_v1 = vcombine.low %v2020_v47, %v2021_v25 }
 0x66b   :  { %v2235_v8 = vmul.bf16 %v2769_v62, %v4191_v0  ;;  %v2236_v36 = vmul.bf16 %v2770_v39, %v4196_v38  ;;  %2768 = vmatprep.mubr.msk.bf16.mxu0 %vm90_vm0, %v2755_v22  ;;  %v2210_v5 = vpop.permute.xlu1 %2209  ;;  %v2120_v35 = vpop.permute.xlu0 %2119 }
 0x66c   :  { %v2220_v55 = vsel %vm1975_vm6, %v2216_v10, %v2210_v5 }
 0x66d   :  { %v2773_v48 = vcombine.low %v2235_v8, %v2236_v36  ;;  %v2771_v27 = vcombine.low %v2220_v55, %v2220_v55  ;;  %v2772_v59 = vcombine.high %v2220_v55, %v2220_v55 }
 0x66f   :  { %v2237_v54 = vmul.bf16 %v2771_v27, %v4218_v26  ;;  %v2238_v51 = vmul.bf16 %v2772_v59, %v4213_v37  ;;  %2959 = vmatprep.mubr.msk.bf16.mxu1 %vm1982_vm9, %v2773_v48  ;;  %v2118_v26 = vpop.permute.xlu1 %2117  ;;  %v2116_v46 = vpop.permute.xlu0 %2115 }
 0x670   :  { %2185 = vmatmul.mubr.bf16.gmra.mxu0 %v2754_v1 }
 0x671   :  { %v2774_v0 = vcombine.low %v2237_v54, %v2238_v51 }
 0x673   :  { %2960 = vmatmul.mubr.msk.bf16.vlgmr.msra.gmra.mxu1 %vm1982_vm9, %v2774_v0  ;;  %v2114_v42 = vpop.permute.xlu1 %2113  ;;  %v2112_v23 = vpop.permute.xlu0 %2111 }
 0x674   :  { %2975 = vmatprep.mubr.msk.f32.mxu1 %vm1749_vm8, %v4248_v24 }
 0x677   :  { %v2110_v57 = vpop.permute.xlu1 %2109  ;;  %v2286_v58 = vpop.permute.xlu0 %2285 }
 0x720   :  { %v2170_v38 = vpop.f32.mrf.mxu0 }
 0x721   :  { %v2171_v2 = vadd.f32 %v2170_v38, %v2110_v57  ;;  %v2290_v57 = vpop.permute.xlu0 %2289 }
 0x722   :  { %v2172_v31 = vpop.f32.mrf.mxu0 }
 0x724   :  { %v2173_v40 = vpop.f32.mrf.mxu0 }
 0x725   :  { %v2174_v12 = vadd.f32 %v2173_v40, %v2112_v23 }
 0x726   :  { %v2175_v61 = vpop.f32.mrf.mxu0 }
 0x727   :  { %v2194_v16 = vmul.f32 %v2174_v12, %v4260_v28 }
 0x728   :  { %v2178_v6 = vpop.f32.mrf.mxu0 }
 0x729   :  { %v2179_v3 = vadd.f32 %v2178_v6, %v2114_v42 }
 0x72a   :  { %v2180_v56 = vpop.f32.mrf.mxu0 }
 0x72b   :  { %v2195_v50 = vmul.f32 %v2179_v3, %v4264_v4  ;;  %v2441_v4 = vlaneseq }
 0x72c   :  { %v2181_v29 = vpop.f32.mrf.mxu0 }
 0x72d   :  { %v2182_v13 = vadd.f32 %v2181_v29, %v2116_v46  ;;  %v4470_v45 = vshrl.u32 %v2441_v4, 7 }
 0x72e   :  { %v2183_v32 = vpop.f32.mrf.mxu0 }
 0x72f   :  { %v2196_v21 = vmul.f32 %v2182_v13, %v4262_v17  ;;  %vm2443_vm0 = vcmp.ge.s32.totalorder %v4470_v45, 2  ;;  %vm2444_vm10 = vcmp.eq.s32.totalorder %v4470_v45, 0  ;;  %vm2478_vm11 = vcmp.eq.s32.totalorder %v4470_v45, 1 }
 0x730   :  { %v2186_v37 = vpop.f32.mrf.mxu0 }
 0x731   :  { %v2187_v20 = vadd.f32 %v2186_v37, %v2118_v26 }
 0x732   :  { %v2188_v9 = vpop.f32.mrf.mxu0 }
 0x733   :  { %v2197_v49 = vmul.f32 %v2187_v20, %v4258_v33  ;;  %v4468_v33 = vpop.f32.mrf.mxu1 }
 0x734   :  { %v2189_v34 = vpop.f32.mrf.mxu0 }
 0x735   :  { %v2190_v15 = vadd.f32 %v2189_v34, %v2120_v35  ;;  %v2337_v28 = vpop.f32.mrf.mxu1 }
 0x736   :  { %v2191_v41 = vpop.f32.mrf.mxu0 }
 0x737   :  { %v2198_v24 = vmul.f32 %v2190_v15, %v4267_v60  ;;  %v2193_v60 = vmul.f32 %v2171_v2, %v4279_v19  ;;  %v2962_v17 = vpop.f32.mrf.mxu1  ;;  %v2288_v19 = vpop.permute.xlu1 %2287 }
 0x739   :  { %2963 = vmatprep.subr.mxu1 %v2198_v24  ;;  %v2340_v53 = vpop.f32.mrf.mxu1 }
 0x73a   :  { %2964 = vmatpush3.msra.mxu1 %v2198_v24  ;;  %v2341_v18 = vadd.f32 %v2340_v53, %v2288_v19 }
 0x73b   :  { %2965 = vmatprep.subr.mxu1 %v2197_v49  ;;  %v2292_v27 = vpop.permute.xlu1 %2291 }
 0x73c   :  { %2966 = vmatpush3.msra.mxu1 %v2197_v49  ;;  %v2349_v29 = vadd.f32 %v2962_v17, %v2292_v27 }
 0x73d   :  { %2967 = vmatprep.subr.mxu1 %v2196_v21 }
 0x73e   :  { %2968 = vmatpush3.msra.mxu1 %v2196_v21 }
 0x73f   :  { %2969 = vmatprep.subr.mxu1 %v2195_v50 }
 0x740   :  { %2970 = vmatpush3.msra.mxu1 %v2195_v50 }
 0x741   :  { %2971 = vmatprep.subr.mxu1 %v2194_v16 }
 0x742   :  { %2972 = vmatpush3.msra.mxu1 %v2194_v16 }
 0x743   :  { %2973 = vmatprep.subr.mxu1 %v2193_v60 }
 0x744   :  { %2974 = vmatpush3.msra.mxu1 %v2193_v60 }
 0x745   :  { %2976 = vmatmul.mubr.msk.f32.vlgmr.msra.gmra.mxu1 %vm1749_vm8, %v4253_v14  ;;  %v2338_v14 = vadd.f32 %v2337_v28, %v2286_v58  ;;  %v2346_v58 = vadd.f32 %v4468_v33, %v2290_v57 }
 0x746   :  { %2978 = vmatprep.mubr.msk.f32.mxu1 %vm1749_vm8, %v4236_v30 }
 0x749   :  { %2979 = vmatmul.mubr.msk.f32.gmra.mxu1 %vm1749_vm8, %v4241_v7 }
 0x805   :  { %v2977_v44 = vpop.f32.mrf.mxu1 }
 0x806   :  { %v2424_v47 = vadd.f32 %v2977_v44, %v2341_v18 }
 0x807   :  { %v2418_v30 = vpop.f32.mrf.mxu1 }
 0x808   :  { %v2438_v7 = vmax.f32 %v2424_v47, 0.0  ;;  %v2419_v11 = vadd.f32 %v2418_v30, %v2338_v14 }
 0x809   :  { %v2980_v35 = vpop.f32.mrf.mxu1 }
 0x80a   :  { %v2446_v25 = vsel %vm2444_vm10, %v2438_v7, 0.0  ;;  %v2480_v43 = vsel %vm2478_vm11, %v2438_v7, 0.0  ;;  %v2512_v63 = vsel %vm2443_vm0, %v2438_v7, 0.0  ;;  %v2548_v52 = vsel %vm2443_vm0, %v2438_v7, -inf }
 0x80b   :  { %v2457_v22 = vsel %vm2449_vm4, %v2446_v25, 0.0  ;;  %v2490_v62 = vsel %vm2449_vm4, %v2480_v43, 0.0  ;;  %v2522_v39 = vsel %vm2449_vm4, %v2512_v63, 0.0  ;;  %v2558_v10 = vsel %vm2449_vm4, %v2548_v52, -inf  ;;  %v2428_v44 = vpop.f32.mrf.mxu1 }
 0x80c   :  { %v2458_v8 = vrot.slane %v2457_v22, 4  ;;  %v2523_v36 = vrot.slane %v2522_v39, 4  ;;  %v2580_v5 = vsel %vm2443_vm0, %v2438_v7, inf  ;;  %v2437_v55 = vmax.f32 %v2419_v11, 0.0 }
 0x80d   :  { %v2491_v48 = vrot.slane %v2490_v62, 4  ;;  %v2590_v59 = vsel %vm2449_vm4, %v2580_v5, inf  ;;  %v2559_v31 = vrot.slane %v2558_v10, 4  ;;  %v2434_v20 = vadd.f32 %v2980_v35, %v2349_v29 }
 0x80e   :  { %v2445_v1 = vsel %vm2444_vm10, %v2437_v55, 0.0  ;;  %v2479_v54 = vsel %vm2478_vm11, %v2437_v55, 0.0  ;;  %v2511_v51 = vsel %vm2443_vm0, %v2437_v55, 0.0  ;;  %v2459_v0 = vadd.f32 %v2458_v8, %v2457_v22 }
 0x80f   :  { %v2524_v38 = vadd.f32 %v2523_v36, %v2522_v39  ;;  %v2591_v40 = vrot.slane %v2590_v59, 4  ;;  %v2450_v61 = vsel %vm2449_vm4, %v2445_v1, 0.0  ;;  %v2483_v6 = vsel %vm2449_vm4, %v2479_v54, 0.0 }
 0x810   :  { %v2515_v56 = vsel %vm2449_vm4, %v2511_v51, 0.0  ;;  %v2492_v26 = vadd.f32 %v2491_v48, %v2490_v62  ;;  %v2451_v32 = vrot.slane %v2450_v61, 4  ;;  %v2484_v37 = vrot.slane %v2483_v6, 4 }
 0x811   :  { %v2516_v46 = vrot.slane %v2515_v56, 4  ;;  %v2460_v9 = vrot.slane %v2459_v0, 2  ;;  %v2525_v42 = vrot.slane %v2524_v38, 2  ;;  %v2560_v34 = vmax.f32 %v2558_v10, %v2559_v31 }
 0x812   :  { %v2592_v15 = vmin.f32 %v2590_v59, %v2591_v40  ;;  %v2452_v41 = vadd.f32 %v2451_v32, %v2450_v61  ;;  %v2485_v13 = vadd.f32 %v2484_v37, %v2483_v6  ;;  %v2493_v23 = vrot.slane %v2492_v26, 2 }
 0x813   :  { %v2517_v24 = vadd.f32 %v2516_v46, %v2515_v56  ;;  %v2547_v21 = vsel %vm2443_vm0, %v2437_v55, -inf  ;;  %v2579_v2 = vsel %vm2443_vm0, %v2437_v55, inf  ;;  %v2440_v50 = vmax.f32 %v2434_v20, 0.0 }
 0x814   :  { %v2453_v3 = vrot.slane %v2452_v41, 2  ;;  %v2486_v12 = vrot.slane %v2485_v13, 2  ;;  %v2461_v16 = vadd.f32 %v2460_v9, %v2459_v0  ;;  %v2526_v60 = vadd.f32 %v2525_v42, %v2524_v38 }
 0x815   :  { %v2518_v49 = vrot.slane %v2517_v24, 2  ;;  %v2561_v28 = vrot.slane %v2560_v34, 2  ;;  %v2593_v17 = vrot.slane %v2592_v15, 2  ;;  %v2551_v4 = vsel %vm2449_vm4, %v2547_v21, -inf }
 0x816   :  { %v2583_v53 = vsel %vm2449_vm4, %v2579_v2, inf  ;;  %v2448_v19 = vsel %vm2444_vm10, %v2440_v50, 0.0  ;;  %v2482_v18 = vsel %vm2478_vm11, %v2440_v50, 0.0  ;;  %v2494_v47 = vadd.f32 %v2493_v23, %v2492_v26 }
 0x817   :  { %v2454_v14 = vadd.f32 %v2453_v3, %v2452_v41  ;;  %v2519_v30 = vadd.f32 %v2518_v49, %v2517_v24  ;;  %v2487_v7 = vadd.f32 %v2486_v12, %v2485_v13  ;;  %v2552_v11 = vrot.slane %v2551_v4, 4 }
 0x818   :  { %v2584_v25 = vrot.slane %v2583_v53, 4  ;;  %v2471_v43 = vsel %vm2449_vm4, %v2448_v19, 0.0  ;;  %v2562_v63 = vmax.f32 %v2560_v34, %v2561_v28  ;;  %v2504_v22 = vsel %vm2449_vm4, %v2482_v18, 0.0 }
 0x819   :  { %v2472_v52 = vrot.slane %v2471_v43, 4  ;;  %v2429_v62 = vadd.f32 %v2428_v44, %v2346_v58  ;;  %v2462_v39 = vrot.slane %v2461_v16, 1  ;;  %v2527_v8 = vrot.slane %v2526_v60, 1 }
 0x81a   :  { %v2594_v36 = vmin.f32 %v2592_v15, %v2593_v17  ;;  %v2514_v33 = vsel %vm2443_vm0, %v2440_v50, 0.0  ;;  %v2495_v10 = vrot.slane %v2494_v47, 1  ;;  %v2520_v5 = vrot.slane %v2519_v30, 1 }
 0x81b   :  { %v2553_v55 = vmax.f32 %v2551_v4, %v2552_v11  ;;  %v2585_v48 = vmin.f32 %v2583_v53, %v2584_v25  ;;  %v2455_v27 = vrot.slane %v2454_v14, 1  ;;  %v2488_v59 = vrot.slane %v2487_v7, 1 }
 0x81c   :  { %v2505_v1 = vrot.slane %v2504_v22, 4  ;;  %v2536_v54 = vsel %vm2449_vm4, %v2514_v33, 0.0  ;;  %v2563_v51 = vrot.slane %v2562_v63, 1  ;;  %v2473_v0 = vadd.f32 %v2472_v52, %v2471_v43 }
 0x81d   :  { %v2537_v38 = vrot.slane %v2536_v54, 4  ;;  %v2550_v31 = vsel %vm2443_vm0, %v2440_v50, -inf  ;;  %v2463_v40 = vadd.f32 %v2462_v39, %v2461_v16  ;;  %v2528_v61 = vadd.f32 %v2527_v8, %v2526_v60 }
 0x81e   :  { %v2595_v6 = vrot.slane %v2594_v36, 1  ;;  %v2572_v56 = vsel %vm2449_vm4, %v2550_v31, -inf  ;;  %v2521_v35 = vadd.f32 %v2520_v5, %v2519_v30  ;;  %v2554_v29 = vrot.slane %v2553_v55, 2 }
 0x81f   :  { %v2586_v26 = vrot.slane %v2585_v48, 2  ;;  %v2582_v32 = vsel %vm2443_vm0, %v2440_v50, inf  ;;  %v2456_v37 = vadd.f32 %v2455_v27, %v2454_v14  ;;  %v2489_v46 = vadd.f32 %v2488_v59, %v2487_v7 }
 0x820   :  { %v2506_v9 = vadd.f32 %v2505_v1, %v2504_v22  ;;  %v2604_v42 = vsel %vm2449_vm4, %v2582_v32, inf  ;;  %v2496_v34 = vadd.f32 %v2495_v10, %v2494_v47  ;;  %v2474_v20 = vrot.slane %v2473_v0, 2 }
 0x821   :  { %v2538_v15 = vadd.f32 %v2537_v38, %v2536_v54  ;;  %v2573_v41 = vrot.slane %v2572_v56, 4  ;;  %v4521_v13 = vmul.f32 0.16666667, %v2528_v61  ;;  %v4523_v24 = vmax.f32 %v2562_v63, %v2563_v51 }
 0x822   :  { %v4525_v23 = vmin.f32 %v2594_v36, %v2595_v6  ;;  %v2439_v3 = vmax.f32 %v2429_v62, 0.0  ;;  %v4527_v49 = vmul.f32 0.16666667, %v2521_v35  ;;  %v2555_v57 = vmax.f32 %v2553_v55, %v2554_v29 }
 0x823   :  { %v2587_v12 = vmin.f32 %v2585_v48, %v2586_v26  ;;  %v2605_v21 = vrot.slane %v2604_v42, 4  ;;  %v4530_v2 = vsel %vm2615_vm5, %v2463_v40, %v2456_v37  ;;  %v4533_v50 = vsel %vm2626_vm12, %v2496_v34, %v2489_v46 }
 0x824   :  { %v2507_v16 = vrot.slane %v2506_v9, 2  ;;  %v2447_v60 = vsel %vm2444_vm10, %v2439_v3, 0.0  ;;  %v2475_v28 = vadd.f32 %v2474_v20, %v2473_v0  ;;  %v2539_v17 = vrot.slane %v2538_v15, 2 }
 0x825   :  { %v2574_v4 = vmax.f32 %v2572_v56, %v2573_v41  ;;  %v2464_v53 = vsel %vm2449_vm4, %v2447_v60, 0.0  ;;  %v2481_v18 = vsel %vm2478_vm11, %v2439_v3, 0.0  ;;  %v2513_v44 = vsel %vm2443_vm0, %v2439_v3, 0.0 }
 0x826   :  { %v2465_v19 = vrot.slane %v2464_v53, 4  ;;  %v2549_v58 = vsel %vm2443_vm0, %v2439_v3, -inf  ;;  %v2556_v47 = vrot.slane %v2555_v57, 1  ;;  %v2588_v14 = vrot.slane %v2587_v12, 1 }
 0x827   :  { %v2606_v30 = vmin.f32 %v2604_v42, %v2605_v21  ;;  %v2497_v7 = vsel %vm2449_vm4, %v2481_v18, 0.0  ;;  %v2529_v43 = vsel %vm2449_vm4, %v2513_v44, 0.0  ;;  %v2565_v63 = vsel %vm2449_vm4, %v2549_v58, -inf }
 0x828   :  { %v2466_v11 = vadd.f32 %v2465_v19, %v2464_v53  ;;  %v2498_v25 = vrot.slane %v2497_v7, 4  ;;  %v2508_v52 = vadd.f32 %v2507_v16, %v2506_v9  ;;  %v2540_v22 = vadd.f32 %v2539_v17, %v2538_v15 }
 0x829   :  { %v2575_v62 = vrot.slane %v2574_v4, 2  ;;  %v2530_v39 = vrot.slane %v2529_v43, 4  ;;  %v2566_v33 = vrot.slane %v2565_v63, 4  ;;  %v2581_v10 = vsel %vm2443_vm0, %v2439_v3, inf }
 0x82a   :  { %v2467_v8 = vrot.slane %v2466_v11, 2  ;;  %v2499_v36 = vadd.f32 %v2498_v25, %v2497_v7  ;;  %v2476_v5 = vrot.slane %v2475_v28, 1  ;;  %v2607_v55 = vrot.slane %v2606_v30, 2 }
 0x82b   :  { %v2531_v48 = vadd.f32 %v2530_v39, %v2529_v43  ;;  %v2597_v27 = vsel %vm2449_vm4, %v2581_v10, inf  ;;  %v2567_v54 = vmax.f32 %v2565_v63, %v2566_v33  ;;  %v2557_v0 = vmax.f32 %v2555_v57, %v2556_v47 }
 0x82c   :  { %v2468_v59 = vadd.f32 %v2467_v8, %v2466_v11  ;;  %v2500_v1 = vrot.slane %v2499_v36, 2  ;;  %v2598_v51 = vrot.slane %v2597_v27, 4  ;;  %v2541_v38 = vrot.slane %v2540_v22, 1 }
 0x82d   :  { %v2576_v31 = vmax.f32 %v2574_v4, %v2575_v62  ;;  %v2532_v40 = vrot.slane %v2531_v48, 2  ;;  %v2568_v56 = vrot.slane %v2567_v54, 2  ;;  %v2589_v35 = vmin.f32 %v2587_v12, %v2588_v14 }
 0x82e   :  { %v2469_v61 = vrot.slane %v2468_v59, 1  ;;  %v2501_v6 = vadd.f32 %v2500_v1, %v2499_v36  ;;  %v2599_v45 = vmin.f32 %v2597_v27, %v2598_v51  ;;  %v2509_v29 = vrot.slane %v2508_v52, 1 }
 0x82f   :  { %v2608_v26 = vmin.f32 %v2606_v30, %v2607_v55  ;;  %v2533_v32 = vadd.f32 %v2532_v40, %v2531_v48  ;;  %v2569_v9 = vmax.f32 %v2567_v54, %v2568_v56  ;;  %v2477_v34 = vadd.f32 %v2476_v5, %v2475_v28 }
 0x830   :  { %v2470_v37 = vadd.f32 %v2469_v61, %v2468_v59  ;;  %v2502_v46 = vrot.slane %v2501_v6, 1  ;;  %v2600_v42 = vrot.slane %v2599_v45, 2  ;;  %v2542_v20 = vadd.f32 %v2541_v38, %v2540_v22 }
 0x831   :  { %v2577_v15 = vrot.slane %v2576_v31, 1  ;;  %v2534_v41 = vrot.slane %v2533_v32, 1  ;;  %v2570_v57 = vrot.slane %v2569_v9, 1  ;;  %v2510_v60 = vadd.f32 %v2509_v29, %v2508_v52 }
 0x832   :  { %v2503_v3 = vadd.f32 %v2502_v46, %v2501_v6  ;;  %v2601_v21 = vmin.f32 %v2599_v45, %v2600_v42  ;;  %v2618_v16 = vsel %vm2617_vm13, %v2470_v37, %v4530_v2  ;;  %v2609_v17 = vrot.slane %v2608_v26, 1 }
 0x833   :  { %v2535_v12 = vadd.f32 %v2534_v41, %v2533_v32  ;;  %v2620_v4 = vsel %vm2619_vm14, %v2477_v34, %v2618_v16  ;;  %v2637_v53 = vsel %vm2615_vm5, %v4521_v13, %v4527_v49  ;;  %v2571_v19 = vmax.f32 %v2569_v9, %v2570_v57 }
 0x834   :  { %v2602_v28 = vrot.slane %v2601_v21, 1  ;;  %v2629_v18 = vsel %vm2628_vm15, %v2503_v3, %v4533_v50  ;;  %v2645_v44 = vsel %vm2626_vm12, %v4523_v24, %v2557_v0  ;;  %v2546_v58 = vmul.f32 0.16666667, %v2542_v20 }
 0x835   :  { %v2545_v47 = vmul.f32 0.16666667, %v2535_v12  ;;  %v2631_v2 = vsel %vm2630_vm1, %v2510_v60, %v2629_v18  ;;  %v2578_v14 = vmax.f32 %v2576_v31, %v2577_v15  ;;  %v2646_v7 = vsel %vm2628_vm15, %v2571_v19, %v2645_v44 }
 0x836   :  { %v2603_v30 = vmin.f32 %v2601_v21, %v2602_v28  ;;  %v2658_v11 = vsel %vm2657_vm2, %v2620_v4, %v2631_v2  ;;  %v2653_v13 = vsel %vm2615_vm5, %v4525_v23, %v2589_v35  ;;  %v2610_v49 = vmin.f32 %v2608_v26, %v2609_v17 }
 0x837   :  { %v2638_v25 = vsel %vm2617_vm13, %v2545_v47, %v2637_v53  ;;  %2660 = vst.msk [vmem:[%s4589_s7] sm:$0xff] %vm2449_vm4, %v2658_v11  ;;  %v2647_v50 = vsel %vm2630_vm1, %v2578_v14, %v2646_v7 }
 0x838   :  { %v2639_v24 = vsel %vm2619_vm14, %v2546_v58, %v2638_v25  ;;  %v2654_v43 = vsel %vm2617_vm13, %v2603_v30, %v2653_v13 }
 0x839   :  { %v2655_v63 = vsel %vm2619_vm14, %v2610_v49, %v2654_v43  ;;  %v2659_v52 = vsel %vm2657_vm2, %v2639_v24, %v2647_v50 }
 0x83a   :  { %2661 = vst.msk [vmem:[%s4589_s7 + $0x8] sm:$0xff] %vm2449_vm4, %v2659_v52 }
 0x83b   :  { %2663 = vst.msk [vmem:[%s4589_s7 + $0x10] sm:$0xf] %vm2662_vm3, %v2655_v63 }

</bundles_post_ra>
